<compile_context>
chip_gen: v6e
topology: v6e:2x2x1
jax: 0.10.0
libtpu: 0.0.40
codegen_flags: <defaults>
</compile_context>

<pallas_src>
import functools

import jax
import jax.numpy as jnp
from jax.experimental import pallas as pl
from jax.experimental.pallas import tpu as pltpu


# ---------------------------------------------------------------------------
# Fused Pallas kernel: 2-layer biLSTM -> last-timestep gather -> Linear head
# ---------------------------------------------------------------------------
def _basic_lstm_kernel(
    xstag_ref,     # (L*Bp, 2D) f32  staggered rows: step s block = [x[t=s] | x[t=L-1-s]]
    lenm1_ref,     # (Bp, 1)    int32 lengths - 1 (pad rows = -1)
    w0_ih_ref,     # (2D, 8H)   bf16  layer-0 input weights, merged gate columns
    b0_ref,        # (1, 8H)    f32
    w0_hh_ref,     # (2H, 8H)   bf16  block-interleaved recurrent weights (both dirs)
    w1_a_ref,      # (2H, 8H)   bf16  layer-1 input weights, "same-step" contribution
    w1_b_ref,      # (2H, 8H)   bf16  layer-1 input weights, "mirrored-step" contribution
    b1_ref,        # (1, 8H)    f32
    w1_hh_ref,     # (2H, 8H)   bf16
    wout_ref,      # (2H, O)    bf16
    bout_ref,      # (1, O)     f32
    out_ref,       # (Bp, O)    f32   -> logits (padded batch)
    gx0_ref,       # scratch (L*Bp, 8H) f32  layer-0 hoisted input-gate projections
    gx1_ref,       # scratch (L*Bp, 8H) f32  layer-1 gate projections (accumulated)
    *, L, Bp, H,
):
    f32 = jnp.float32
    bf16 = jnp.bfloat16

    def cell(gates, c):
        # merged gate column order [i_f,i_b,f_f,f_b,o_f,o_b,g_f,g_b]:
        # one wide sigmoid over 6H lanes, one tanh over 2H lanes; all slices 2H-aligned.
        sig = jax.nn.sigmoid(gates[:, :6 * H])
        i = sig[:, 0 * H:2 * H]
        f = sig[:, 2 * H:4 * H]
        o = sig[:, 4 * H:6 * H]
        g = jnp.tanh(gates[:, 6 * H:8 * H])
        c_new = f * c + i * g
        h_new = o * jnp.tanh(c_new)
        return h_new, c_new

    # ---- Layer 0: hoisted input projection (both directions, staggered per step) ----
    gx0_ref[...] = (
        jnp.dot(xstag_ref[...].astype(bf16), w0_ih_ref[...], preferred_element_type=f32)
        + b0_ref[...])

    # Layer-1 gate projections start from the fused bias; contributions accumulate below.
    gx1_ref[...] = jnp.broadcast_to(b1_ref[...], (L * Bp, 8 * H))

    w0_hh = w0_hh_ref[...]
    w1_a = w1_a_ref[...]
    w1_b = w1_b_ref[...]

    # ---- Layer 0 recurrence (fwd + bwd fused into one packed state) ----
    # packed state at step s = [h_fwd(time s) | h_bwd(time L-1-s)]
    h = jnp.zeros((Bp, 2 * H), f32)
    c = jnp.zeros((Bp, 2 * H), f32)
    h_bf = h.astype(bf16)
    # TODO(synk): at large batch, split the batch over the 2 v7x TensorCores (grid=(2,),
    #             dimension_semantics=("parallel",)); not worth the sync cost at Bp=8.
    for s in range(L):
        rows = slice(s * Bp, (s + 1) * Bp)
        gates = gx0_ref[rows, :] + jnp.dot(h_bf, w0_hh, preferred_element_type=f32)
        h, c = cell(gates, c)
        h_bf = h.astype(bf16)                       # single cast, reused by 3 matmuls
        # Hide the layer-1 input projection under the recurrence's MXU slack:
        # packed h contributes to layer-1 step s (W1_A) and step L-1-s (W1_B).
        gx1_ref[rows, :] += jnp.dot(h_bf, w1_a, preferred_element_type=f32)
        rows_r = slice((L - 1 - s) * Bp, (L - s) * Bp)
        gx1_ref[rows_r, :] += jnp.dot(h_bf, w1_b, preferred_element_type=f32)

    # ---- Layer 1 recurrence ----
    w1_hh = w1_hh_ref[...]
    lenm1 = lenm1_ref[...]                          # (Bp, 1) int32

    h = jnp.zeros((Bp, 2 * H), f32)
    c = jnp.zeros((Bp, 2 * H), f32)
    h_bf = h.astype(bf16)
    last = jnp.zeros((Bp, 2 * H), f32)
    for s in range(L):
        rows = slice(s * Bp, (s + 1) * Bp)
        gates = gx1_ref[rows, :] + jnp.dot(h_bf, w1_hh, preferred_element_type=f32)
        h, c = cell(gates, c)
        h_bf = h.astype(bf16)
        # snapshot packed state at t == length-1 (forward-direction gather)
        last = jnp.where(lenm1 == s, h, last)

    # fwd lanes (0:H): snapshot at t=len-1; bwd lanes (H:2H): final backward state (t=0)
    lane = jax.lax.broadcasted_iota(jnp.int32, (Bp, 2 * H), 1)
    final = jnp.where(lane < H, last, h)

    # ---- Head: dropout (eval -> identity) + Linear, single K=2H matmul ----
    out_ref[...] = (
        jnp.dot(final.astype(bf16), wout_ref[...], preferred_element_type=f32)
        + bout_ref[...])


# ---------------------------------------------------------------------------
# Model wrapper
# ---------------------------------------------------------------------------
@jax.jit
def basic_lstm_forward(x, lengths, params):
    """Mirrors BasicLSTM.forward (eval mode). x: (N, L, D) f32, lengths: (N,)."""
    N, L, D = x.shape
    H = params["w0_hh"].shape[0] // 2
    O = params["bout"].shape[1]
    Bp = ((N + 7) // 8) * 8                                   # pad batch to 8-sublane tile

    xp = jnp.pad(x, ((0, Bp - N), (0, 0), (0, 0)))
    x_tm = jnp.transpose(xp, (1, 0, 2))                       # (L, Bp, D) time-major
    # staggered input: step s block = [x[t=s] | x[t=L-1-s]]  -> one hoisted matmul per layer 0
    x_stag = jnp.concatenate([x_tm, x_tm[::-1]], axis=-1).reshape(L * Bp, 2 * D)

    lengths_p = jnp.pad(lengths.astype(jnp.int32), (0, Bp - N))   # pad rows -> length 0
    lenm1 = (lengths_p - 1).reshape(Bp, 1)                        # pad rows get -1 (never match)

    kernel = functools.partial(_basic_lstm_kernel, L=L, Bp=Bp, H=H)
    out = pl.pallas_call(
        kernel,
        out_shape=jax.ShapeDtypeStruct((Bp, O), jnp.float32),
        scratch_shapes=[
            pltpu.VMEM((L * Bp, 8 * H), jnp.float32),   # layer-0 gate projections
            pltpu.VMEM((L * Bp, 8 * H), jnp.float32),   # layer-1 gate projections (accum)
        ],
    )(x_stag, lenm1,
      params["w0_ih"], params["b0"], params["w0_hh"],
      params["w1_a"], params["w1_b"], params["b1"], params["w1_hh"],
      params["wout"], params["bout"])
    return out[:N]


# ---------------------------------------------------------------------------
# Parameter init (PyTorch nn.LSTM / nn.Linear shapes) + kernel-friendly repack
# ---------------------------------------------------------------------------
def init_raw_params(key, D, H, O):
    k_lstm = 1.0 / jnp.sqrt(H)
    raw = {}
    for layer, din in ((0, D), (1, 2 * H)):
        for tag in ("f", "b"):
            key, k1, k2, k3, k4 = jax.random.split(key, 5)
            wih = jax.random.uniform(k1, (4 * H, din), jnp.float32, -k_lstm, k_lstm)
            whh = jax.random.uniform(k2, (4 * H, H), jnp.float32, -k_lstm, k_lstm)
            bih = jax.random.uniform(k3, (4 * H,), jnp.float32, -k_lstm, k_lstm)
            bhh = jax.random.uniform(k4, (4 * H,), jnp.float32, -k_lstm, k_lstm)
            raw[f"l{layer}_{tag}"] = (wih, whh, bih, bhh)
    k_out = 1.0 / jnp.sqrt(2 * H)
    key, k1, k2 = jax.random.split(key, 3)
    raw["out_w"] = jax.random.uniform(k1, (O, 2 * H), jnp.float32, -k_out, k_out)
    raw["out_b"] = jax.random.uniform(k2, (O,), jnp.float32, -k_out, k_out)
    return raw


def _place_gate_cols(w, direction, H):
    """w: (4H, din) in PyTorch gate order [i, f, g, o]. Returns (din, 8H) with this
    direction's gates scattered into merged column order [i_f,i_b,f_f,f_b,o_f,o_b,g_f,g_b]
    (zeros elsewhere)."""
    i_, f_, g_, o_ = jnp.split(w, 4, axis=0)
    din = w.shape[1]
    out = jnp.zeros((din, 8 * H), w.dtype)
    for k, blk in enumerate((i_, f_, o_, g_)):            # kernel order i, f, o, g
        c0 = (2 * k + direction) * H
        out = out.at[:, c0:c0 + H].set(blk.T)
    return out


def _place_bias(b, direction, H):
    i_, f_, g_, o_ = jnp.split(b, 4)
    out = jnp.zeros((8 * H,), b.dtype)
    for k, blk in enumerate((i_, f_, o_, g_)):
        c0 = (2 * k + direction) * H
        out = out.at[c0:c0 + H].set(blk)
    return out


def prepare_params(raw, H, O):
    """Repack PyTorch-style weights into the merged-direction kernel layout (bf16 matmul
    operands, f32 biases)."""
    bf16 = jnp.bfloat16
    w0f_ih, w0f_hh, b0f_ih, b0f_hh = raw["l0_f"]
    w0b_ih, w0b_hh, b0b_ih, b0b_hh = raw["l0_b"]
    w1f_ih, w1f_hh, b1f_ih, b1f_hh = raw["l1_f"]
    w1b_ih, w1b_hh, b1b_ih, b1b_hh = raw["l1_b"]

    # Layer 0: staggered input weight (rows 0:D multiply x[t=s], rows D:2D multiply x[t=L-1-s])
    w0_ih = jnp.concatenate([_place_gate_cols(w0f_ih, 0, H),
                             _place_gate_cols(w0b_ih, 1, H)], axis=0)          # (2D, 8H)
    b0 = (_place_bias(b0f_ih + b0f_hh, 0, H)
          + _place_bias(b0b_ih + b0b_hh, 1, H)).reshape(1, 8 * H)
    w0_hh = jnp.concatenate([_place_gate_cols(w0f_hh, 0, H),
                             _place_gate_cols(w0b_hh, 1, H)], axis=0)          # (2H, 8H)

    # Layer 1 input weights (din = 2H; cols 0:H multiply h0_fwd, cols H:2H multiply h0_bwd).
    # W1_A: packed layer-0 state at step s -> layer-1 gate projections at step s.
    w1_a = jnp.concatenate([_place_gate_cols(w1f_ih[:, :H], 0, H),
                            _place_gate_cols(w1b_ih[:, H:], 1, H)], axis=0)    # (2H, 8H)
    # W1_B: packed layer-0 state at step s -> layer-1 gate projections at step L-1-s.
    w1_b = jnp.concatenate([_place_gate_cols(w1b_ih[:, :H], 1, H),
                            _place_gate_cols(w1f_ih[:, H:], 0, H)], axis=0)    # (2H, 8H)
    b1 = (_place_bias(b1f_ih + b1f_hh, 0, H)
          + _place_bias(b1b_ih + b1b_hh, 1, H)).reshape(1, 8 * H)
    w1_hh = jnp.concatenate([_place_gate_cols(w1f_hh, 0, H),
                             _place_gate_cols(w1b_hh, 1, H)], axis=0)          # (2H, 8H)

    return {
        "w0_ih": w0_ih.astype(bf16),
        "b0": b0,
        "w0_hh": w0_hh.astype(bf16),
        "w1_a": w1_a.astype(bf16),
        "w1_b": w1_b.astype(bf16),
        "b1": b1,
        "w1_hh": w1_hh.astype(bf16),
        "wout": raw["out_w"].T.astype(bf16),      # (2H, O); [fwd | bwd] rows match packed state
        "bout": raw["out_b"].reshape(1, O),
    }


# ---------------------------------------------------------------------------
# Pure-JAX f32 reference (PyTorch semantics) for correctness check
# ---------------------------------------------------------------------------
def _lstm_dir_ref(x, wih, whh, bih, bhh, reverse):
    B, L, _ = x.shape
    H = whh.shape[1]
    h = jnp.zeros((B, H), jnp.float32)
    c = jnp.zeros((B, H), jnp.float32)
    outs = [None] * L
    ts = range(L - 1, -1, -1) if reverse else range(L)
    for t in ts:
        gates = x[:, t] @ wih.T + h @ whh.T + bih + bhh
        i = jax.nn.sigmoid(gates[:, :H])
        f = jax.nn.sigmoid(gates[:, H:2 * H])
        g = jnp.tanh(gates[:, 2 * H:3 * H])
        o = jax.nn.sigmoid(gates[:, 3 * H:4 * H])
        c = f * c + i * g
        h = o * jnp.tanh(c)
        outs[t] = h
    return jnp.stack(outs, axis=1)  # (B, L, H)


def reference_forward(x, lengths, raw, H):
    h = x
    for layer in range(2):
        f = _lstm_dir_ref(h, *raw[f"l{layer}_f"], reverse=False)
        b = _lstm_dir_ref(h, *raw[f"l{layer}_b"], reverse=True)
        h = jnp.concatenate([f, b], axis=-1)
    fwd, bwd = h[:, :, :H], h[:, :, H:]
    idx = (lengths - 1).astype(jnp.int32)[:, None, None]
    last_fwd = jnp.take_along_axis(fwd, idx, axis=1)[:, 0, :]
    last_bwd = bwd[:, 0, :]
    last = jnp.concatenate([last_fwd, last_bwd], axis=-1)
    return last @ raw["out_w"].T + raw["out_b"]


# ---------------------------------------------------------------------------
if __name__ == "__main__":
    # Shapes implied by the module: rnn_size=64, num_layers=2, bidirectional=True,
    # output_dim=10; small batch N=2, seq L=8, feature_dim D=16.
    N, L, D, H, O = 2, 8, 16, 64, 10

    key = jax.random.PRNGKey(0)
    key, kx = jax.random.split(key)
    x = jax.random.normal(kx, (N, L, D), jnp.float32)
    lengths = jnp.array([8, 5], jnp.int32)     # zero-padded sequence lengths

    raw = init_raw_params(key, D, H, O)
    params = prepare_params(raw, H, O)

    logits = basic_lstm_forward(x, lengths, params)
    logits = jax.block_until_ready(logits)

    ref = reference_forward(x, lengths, raw, H)
    assert logits.shape == (N, O)
    assert jnp.allclose(logits, ref, rtol=2e-2, atol=2e-2), (
        f"mismatch: max abs err {jnp.max(jnp.abs(logits - ref))}")

    print("KERNEL_OK")
</pallas_src>

<mosaic_0001>
module attributes {stable_mosaic.version = 11 : i64} {
  func.func @_basic_lstm_kernel(%arg0: memref<64x32xf32, #tpu.memory_space<vmem>>, %arg1: memref<8x1xi32, #tpu.memory_space<vmem>>, %arg2: memref<32x512xbf16, #tpu.memory_space<vmem>>, %arg3: memref<1x512xf32, #tpu.memory_space<vmem>>, %arg4: memref<128x512xbf16, #tpu.memory_space<vmem>>, %arg5: memref<128x512xbf16, #tpu.memory_space<vmem>>, %arg6: memref<128x512xbf16, #tpu.memory_space<vmem>>, %arg7: memref<1x512xf32, #tpu.memory_space<vmem>>, %arg8: memref<128x512xbf16, #tpu.memory_space<vmem>>, %arg9: memref<128x10xbf16, #tpu.memory_space<vmem>>, %arg10: memref<1x10xf32, #tpu.memory_space<vmem>>, %arg11: memref<8x10xf32, #tpu.memory_space<vmem>>, %arg12: memref<64x512xf32, #tpu.memory_space<vmem>>, %arg13: memref<64x512xf32, #tpu.memory_space<vmem>>) attributes {dimension_semantics = [], scalar_prefetch = 0 : i64, scratch_operands = 2 : i64, tpu.core_type = #tpu.core_type<tc>} {
    %c0 = arith.constant 0 : index
    %c0_0 = arith.constant 0 : index
    %0 = vector.load %arg0[%c0, %c0_0] : memref<64x32xf32, #tpu.memory_space<vmem>>, vector<64x32xf32>
    %1 = arith.truncf %0 : vector<64x32xf32> to vector<64x32xbf16>
    %c0_1 = arith.constant 0 : index
    %c0_2 = arith.constant 0 : index
    %2 = vector.load %arg2[%c0_1, %c0_2] : memref<32x512xbf16, #tpu.memory_space<vmem>>, vector<32x512xbf16>
    %cst = arith.constant dense<0.000000e+00> : vector<64x512xf32>
    %3 = tpu.matmul %1, %2, %cst {dimension_numbers = #tpu.dot_dimension_numbers<[1], [0], [0], [1], [0, 0, 1, 1], [], []>} : vector<64x32xbf16>, vector<32x512xbf16>, vector<64x512xf32> -> vector<64x512xf32>
    %c0_3 = arith.constant 0 : index
    %c0_4 = arith.constant 0 : index
    %4 = vector.load %arg3[%c0_3, %c0_4] : memref<1x512xf32, #tpu.memory_space<vmem>>, vector<1x512xf32>
    %5 = vector.broadcast %4 : vector<1x512xf32> to vector<64x512xf32>
    %6 = arith.addf %3, %5 : vector<64x512xf32>
    %c0_5 = arith.constant 0 : index
    %c0_6 = arith.constant 0 : index
    %7 = vector.load %arg12[%c0_5, %c0_6] : memref<64x512xf32, #tpu.memory_space<vmem>>, vector<64x512xf32>
    tpu.vector_store %arg12[%c0_5, %c0_6], %6 {strides = array<i32>} : memref<64x512xf32, #tpu.memory_space<vmem>>, vector<64x512xf32>,
    %c0_7 = arith.constant 0 : index
    %c0_8 = arith.constant 0 : index
    %8 = vector.load %arg7[%c0_7, %c0_8] : memref<1x512xf32, #tpu.memory_space<vmem>>, vector<1x512xf32>
    %9 = vector.shape_cast %8 : vector<1x512xf32> to vector<1x512xf32>
    %10 = vector.broadcast %9 : vector<1x512xf32> to vector<64x512xf32>
    %c0_9 = arith.constant 0 : index
    %c0_10 = arith.constant 0 : index
    %11 = vector.load %arg13[%c0_9, %c0_10] : memref<64x512xf32, #tpu.memory_space<vmem>>, vector<64x512xf32>
    tpu.vector_store %arg13[%c0_9, %c0_10], %10 {strides = array<i32>} : memref<64x512xf32, #tpu.memory_space<vmem>>, vector<64x512xf32>,
    %c0_11 = arith.constant 0 : index
    %c0_12 = arith.constant 0 : index
    %12 = vector.load %arg4[%c0_11, %c0_12] : memref<128x512xbf16, #tpu.memory_space<vmem>>, vector<128x512xbf16>
    %c0_13 = arith.constant 0 : index
    %c0_14 = arith.constant 0 : index
    %13 = vector.load %arg5[%c0_13, %c0_14] : memref<128x512xbf16, #tpu.memory_space<vmem>>, vector<128x512xbf16>
    %c0_15 = arith.constant 0 : index
    %c0_16 = arith.constant 0 : index
    %14 = vector.load %arg6[%c0_15, %c0_16] : memref<128x512xbf16, #tpu.memory_space<vmem>>, vector<128x512xbf16>
    %cst_17 = arith.constant 0.000000e+00 : f32
    %15 = vector.broadcast %cst_17 : f32 to vector<8x128xf32>
    %cst_18 = arith.constant 0.000000e+00 : f32
    %16 = vector.broadcast %cst_18 : f32 to vector<8x128xf32>
    %17 = arith.truncf %15 : vector<8x128xf32> to vector<8x128xbf16>
    %c0_19 = arith.constant 0 : index
    %c0_20 = arith.constant 0 : index
    %18 = vector.load %arg12[%c0_19, %c0_20] : memref<64x512xf32, #tpu.memory_space<vmem>>, vector<8x512xf32>
    %cst_21 = arith.constant dense<0.000000e+00> : vector<8x512xf32>
    %19 = tpu.matmul %17, %12, %cst_21 {dimension_numbers = #tpu.dot_dimension_numbers<[1], [0], [0], [1], [0, 0, 1, 1], [], []>} : vector<8x128xbf16>, vector<128x512xbf16>, vector<8x512xf32> -> vector<8x512xf32>
    %20 = arith.addf %18, %19 : vector<8x512xf32>
    %21 = vector.extract_strided_slice %20 {offsets = [0, 0], sizes = [8, 384], strides = [1, 1]} : vector<8x512xf32> to vector<8x384xf32>
    %22 = arith.negf %21 : vector<8x384xf32>
    %23 = math.exp %22 : vector<8x384xf32>
    %cst_22 = arith.constant 1.000000e+00 : f32
    %24 = vector.broadcast %cst_22 : f32 to vector<8x384xf32>
    %25 = arith.addf %24, %23 : vector<8x384xf32>
    %26 = arith.divf %24, %25 : vector<8x384xf32>
    %27 = vector.extract_strided_slice %26 {offsets = [0, 0], sizes = [8, 128], strides = [1, 1]} : vector<8x384xf32> to vector<8x128xf32>
    %28 = vector.extract_strided_slice %26 {offsets = [0, 128], sizes = [8, 128], strides = [1, 1]} : vector<8x384xf32> to vector<8x128xf32>
    %29 = vector.extract_strided_slice %26 {offsets = [0, 256], sizes = [8, 128], strides = [1, 1]} : vector<8x384xf32> to vector<8x128xf32>
    %30 = vector.extract_strided_slice %20 {offsets = [0, 384], sizes = [8, 128], strides = [1, 1]} : vector<8x512xf32> to vector<8x128xf32>
    %31 = math.tanh %30 : vector<8x128xf32>
    %32 = arith.mulf %28, %16 : vector<8x128xf32>
    %33 = arith.mulf %27, %31 : vector<8x128xf32>
    %34 = arith.addf %32, %33 : vector<8x128xf32>
    %35 = math.tanh %34 : vector<8x128xf32>
    %36 = arith.mulf %29, %35 : vector<8x128xf32>
    %37 = arith.truncf %36 : vector<8x128xf32> to vector<8x128xbf16>
    %c0_23 = arith.constant 0 : index
    %c0_24 = arith.constant 0 : index
    %38 = vector.load %arg13[%c0_23, %c0_24] : memref<64x512xf32, #tpu.memory_space<vmem>>, vector<8x512xf32>
    %cst_25 = arith.constant dense<0.000000e+00> : vector<8x512xf32>
    %39 = tpu.matmul %37, %13, %cst_25 {dimension_numbers = #tpu.dot_dimension_numbers<[1], [0], [0], [1], [0, 0, 1, 1], [], []>} : vector<8x128xbf16>, vector<128x512xbf16>, vector<8x512xf32> -> vector<8x512xf32>
    %40 = arith.addf %38, %39 : vector<8x512xf32>
    %c0_26 = arith.constant 0 : index
    %c0_27 = arith.constant 0 : index
    %41 = vector.load %arg13[%c0_26, %c0_27] : memref<64x512xf32, #tpu.memory_space<vmem>>, vector<8x512xf32>
    tpu.vector_store %arg13[%c0_26, %c0_27], %40 {strides = array<i32>} : memref<64x512xf32, #tpu.memory_space<vmem>>, vector<8x512xf32>,
    %c56 = arith.constant 56 : index
    %c0_28 = arith.constant 0 : index
    %42 = vector.load %arg13[%c56, %c0_28] : memref<64x512xf32, #tpu.memory_space<vmem>>, vector<8x512xf32>
    %cst_29 = arith.constant dense<0.000000e+00> : vector<8x512xf32>
    %43 = tpu.matmul %37, %14, %cst_29 {dimension_numbers = #tpu.dot_dimension_numbers<[1], [0], [0], [1], [0, 0, 1, 1], [], []>} : vector<8x128xbf16>, vector<128x512xbf16>, vector<8x512xf32> -> vector<8x512xf32>
    %44 = arith.addf %42, %43 : vector<8x512xf32>
    %c56_30 = arith.constant 56 : index
    %c0_31 = arith.constant 0 : index
    %45 = vector.load %arg13[%c56_30, %c0_31] : memref<64x512xf32, #tpu.memory_space<vmem>>, vector<8x512xf32>
    tpu.vector_store %arg13[%c56_30, %c0_31], %44 {strides = array<i32>} : memref<64x512xf32, #tpu.memory_space<vmem>>, vector<8x512xf32>,
    %c8 = arith.constant 8 : index
    %c0_32 = arith.constant 0 : index
    %46 = vector.load %arg12[%c8, %c0_32] : memref<64x512xf32, #tpu.memory_space<vmem>>, vector<8x512xf32>
    %cst_33 = arith.constant dense<0.000000e+00> : vector<8x512xf32>
    %47 = tpu.matmul %37, %12, %cst_33 {dimension_numbers = #tpu.dot_dimension_numbers<[1], [0], [0], [1], [0, 0, 1, 1], [], []>} : vector<8x128xbf16>, vector<128x512xbf16>, vector<8x512xf32> -> vector<8x512xf32>
    %48 = arith.addf %46, %47 : vector<8x512xf32>
    %49 = vector.extract_strided_slice %48 {offsets = [0, 0], sizes = [8, 384], strides = [1, 1]} : vector<8x512xf32> to vector<8x384xf32>
    %50 = arith.negf %49 : vector<8x384xf32>
    %51 = math.exp %50 : vector<8x384xf32>
    %cst_34 = arith.constant 1.000000e+00 : f32
    %52 = vector.broadcast %cst_34 : f32 to vector<8x384xf32>
    %53 = arith.addf %52, %51 : vector<8x384xf32>
    %54 = arith.divf %52, %53 : vector<8x384xf32>
    %55 = vector.extract_strided_slice %54 {offsets = [0, 0], sizes = [8, 128], strides = [1, 1]} : vector<8x384xf32> to vector<8x128xf32>
    %56 = vector.extract_strided_slice %54 {offsets = [0, 128], sizes = [8, 128], strides = [1, 1]} : vector<8x384xf32> to vector<8x128xf32>
    %57 = vector.extract_strided_slice %54 {offsets = [0, 256], sizes = [8, 128], strides = [1, 1]} : vector<8x384xf32> to vector<8x128xf32>
    %58 = vector.extract_strided_slice %48 {offsets = [0, 384], sizes = [8, 128], strides = [1, 1]} : vector<8x512xf32> to vector<8x128xf32>
    %59 = math.tanh %58 : vector<8x128xf32>
    %60 = arith.mulf %56, %34 : vector<8x128xf32>
    %61 = arith.mulf %55, %59 : vector<8x128xf32>
    %62 = arith.addf %60, %61 : vector<8x128xf32>
    %63 = math.tanh %62 : vector<8x128xf32>
    %64 = arith.mulf %57, %63 : vector<8x128xf32>
    %65 = arith.truncf %64 : vector<8x128xf32> to vector<8x128xbf16>
    %c8_35 = arith.constant 8 : index
    %c0_36 = arith.constant 0 : index
    %66 = vector.load %arg13[%c8_35, %c0_36] : memref<64x512xf32, #tpu.memory_space<vmem>>, vector<8x512xf32>
    %cst_37 = arith.constant dense<0.000000e+00> : vector<8x512xf32>
    %67 = tpu.matmul %65, %13, %cst_37 {dimension_numbers = #tpu.dot_dimension_numbers<[1], [0], [0], [1], [0, 0, 1, 1], [], []>} : vector<8x128xbf16>, vector<128x512xbf16>, vector<8x512xf32> -> vector<8x512xf32>
    %68 = arith.addf %66, %67 : vector<8x512xf32>
    %c8_38 = arith.constant 8 : index
    %c0_39 = arith.constant 0 : index
    %69 = vector.load %arg13[%c8_38, %c0_39] : memref<64x512xf32, #tpu.memory_space<vmem>>, vector<8x512xf32>
    tpu.vector_store %arg13[%c8_38, %c0_39], %68 {strides = array<i32>} : memref<64x512xf32, #tpu.memory_space<vmem>>, vector<8x512xf32>,
    %c48 = arith.constant 48 : index
    %c0_40 = arith.constant 0 : index
    %70 = vector.load %arg13[%c48, %c0_40] : memref<64x512xf32, #tpu.memory_space<vmem>>, vector<8x512xf32>
    %cst_41 = arith.constant dense<0.000000e+00> : vector<8x512xf32>
    %71 = tpu.matmul %65, %14, %cst_41 {dimension_numbers = #tpu.dot_dimension_numbers<[1], [0], [0], [1], [0, 0, 1, 1], [], []>} : vector<8x128xbf16>, vector<128x512xbf16>, vector<8x512xf32> -> vector<8x512xf32>
    %72 = arith.addf %70, %71 : vector<8x512xf32>
    %c48_42 = arith.constant 48 : index
    %c0_43 = arith.constant 0 : index
    %73 = vector.load %arg13[%c48_42, %c0_43] : memref<64x512xf32, #tpu.memory_space<vmem>>, vector<8x512xf32>
    tpu.vector_store %arg13[%c48_42, %c0_43], %72 {strides = array<i32>} : memref<64x512xf32, #tpu.memory_space<vmem>>, vector<8x512xf32>,
    %c16 = arith.constant 16 : index
    %c0_44 = arith.constant 0 : index
    %74 = vector.load %arg12[%c16, %c0_44] : memref<64x512xf32, #tpu.memory_space<vmem>>, vector<8x512xf32>
    %cst_45 = arith.constant dense<0.000000e+00> : vector<8x512xf32>
    %75 = tpu.matmul %65, %12, %cst_45 {dimension_numbers = #tpu.dot_dimension_numbers<[1], [0], [0], [1], [0, 0, 1, 1], [], []>} : vector<8x128xbf16>, vector<128x512xbf16>, vector<8x512xf32> -> vector<8x512xf32>
    %76 = arith.addf %74, %75 : vector<8x512xf32>
    %77 = vector.extract_strided_slice %76 {offsets = [0, 0], sizes = [8, 384], strides = [1, 1]} : vector<8x512xf32> to vector<8x384xf32>
    %78 = arith.negf %77 : vector<8x384xf32>
    %79 = math.exp %78 : vector<8x384xf32>
    %cst_46 = arith.constant 1.000000e+00 : f32
    %80 = vector.broadcast %cst_46 : f32 to vector<8x384xf32>
    %81 = arith.addf %80, %79 : vector<8x384xf32>
    %82 = arith.divf %80, %81 : vector<8x384xf32>
    %83 = vector.extract_strided_slice %82 {offsets = [0, 0], sizes = [8, 128], strides = [1, 1]} : vector<8x384xf32> to vector<8x128xf32>
    %84 = vector.extract_strided_slice %82 {offsets = [0, 128], sizes = [8, 128], strides = [1, 1]} : vector<8x384xf32> to vector<8x128xf32>
    %85 = vector.extract_strided_slice %82 {offsets = [0, 256], sizes = [8, 128], strides = [1, 1]} : vector<8x384xf32> to vector<8x128xf32>
    %86 = vector.extract_strided_slice %76 {offsets = [0, 384], sizes = [8, 128], strides = [1, 1]} : vector<8x512xf32> to vector<8x128xf32>
    %87 = math.tanh %86 : vector<8x128xf32>
    %88 = arith.mulf %84, %62 : vector<8x128xf32>
    %89 = arith.mulf %83, %87 : vector<8x128xf32>
    %90 = arith.addf %88, %89 : vector<8x128xf32>
    %91 = math.tanh %90 : vector<8x128xf32>
    %92 = arith.mulf %85, %91 : vector<8x128xf32>
    %93 = arith.truncf %92 : vector<8x128xf32> to vector<8x128xbf16>
    %c16_47 = arith.constant 16 : index
    %c0_48 = arith.constant 0 : index
    %94 = vector.load %arg13[%c16_47, %c0_48] : memref<64x512xf32, #tpu.memory_space<vmem>>, vector<8x512xf32>
    %cst_49 = arith.constant dense<0.000000e+00> : vector<8x512xf32>
    %95 = tpu.matmul %93, %13, %cst_49 {dimension_numbers = #tpu.dot_dimension_numbers<[1], [0], [0], [1], [0, 0, 1, 1], [], []>} : vector<8x128xbf16>, vector<128x512xbf16>, vector<8x512xf32> -> vector<8x512xf32>
    %96 = arith.addf %94, %95 : vector<8x512xf32>
    %c16_50 = arith.constant 16 : index
    %c0_51 = arith.constant 0 : index
    %97 = vector.load %arg13[%c16_50, %c0_51] : memref<64x512xf32, #tpu.memory_space<vmem>>, vector<8x512xf32>
    tpu.vector_store %arg13[%c16_50, %c0_51], %96 {strides = array<i32>} : memref<64x512xf32, #tpu.memory_space<vmem>>, vector<8x512xf32>,
    %c40 = arith.constant 40 : index
    %c0_52 = arith.constant 0 : index
    %98 = vector.load %arg13[%c40, %c0_52] : memref<64x512xf32, #tpu.memory_space<vmem>>, vector<8x512xf32>
    %cst_53 = arith.constant dense<0.000000e+00> : vector<8x512xf32>
    %99 = tpu.matmul %93, %14, %cst_53 {dimension_numbers = #tpu.dot_dimension_numbers<[1], [0], [0], [1], [0, 0, 1, 1], [], []>} : vector<8x128xbf16>, vector<128x512xbf16>, vector<8x512xf32> -> vector<8x512xf32>
    %100 = arith.addf %98, %99 : vector<8x512xf32>
    %c40_54 = arith.constant 40 : index
    %c0_55 = arith.constant 0 : index
    %101 = vector.load %arg13[%c40_54, %c0_55] : memref<64x512xf32, #tpu.memory_space<vmem>>, vector<8x512xf32>
    tpu.vector_store %arg13[%c40_54, %c0_55], %100 {strides = array<i32>} : memref<64x512xf32, #tpu.memory_space<vmem>>, vector<8x512xf32>,
    %c24 = arith.constant 24 : index
    %c0_56 = arith.constant 0 : index
    %102 = vector.load %arg12[%c24, %c0_56] : memref<64x512xf32, #tpu.memory_space<vmem>>, vector<8x512xf32>
    %cst_57 = arith.constant dense<0.000000e+00> : vector<8x512xf32>
    %103 = tpu.matmul %93, %12, %cst_57 {dimension_numbers = #tpu.dot_dimension_numbers<[1], [0], [0], [1], [0, 0, 1, 1], [], []>} : vector<8x128xbf16>, vector<128x512xbf16>, vector<8x512xf32> -> vector<8x512xf32>
    %104 = arith.addf %102, %103 : vector<8x512xf32>
    %105 = vector.extract_strided_slice %104 {offsets = [0, 0], sizes = [8, 384], strides = [1, 1]} : vector<8x512xf32> to vector<8x384xf32>
    %106 = arith.negf %105 : vector<8x384xf32>
    %107 = math.exp %106 : vector<8x384xf32>
    %cst_58 = arith.constant 1.000000e+00 : f32
    %108 = vector.broadcast %cst_58 : f32 to vector<8x384xf32>
    %109 = arith.addf %108, %107 : vector<8x384xf32>
    %110 = arith.divf %108, %109 : vector<8x384xf32>
    %111 = vector.extract_strided_slice %110 {offsets = [0, 0], sizes = [8, 128], strides = [1, 1]} : vector<8x384xf32> to vector<8x128xf32>
    %112 = vector.extract_strided_slice %110 {offsets = [0, 128], sizes = [8, 128], strides = [1, 1]} : vector<8x384xf32> to vector<8x128xf32>
    %113 = vector.extract_strided_slice %110 {offsets = [0, 256], sizes = [8, 128], strides = [1, 1]} : vector<8x384xf32> to vector<8x128xf32>
    %114 = vector.extract_strided_slice %104 {offsets = [0, 384], sizes = [8, 128], strides = [1, 1]} : vector<8x512xf32> to vector<8x128xf32>
    %115 = math.tanh %114 : vector<8x128xf32>
    %116 = arith.mulf %112, %90 : vector<8x128xf32>
    %117 = arith.mulf %111, %115 : vector<8x128xf32>
    %118 = arith.addf %116, %117 : vector<8x128xf32>
    %119 = math.tanh %118 : vector<8x128xf32>
    %120 = arith.mulf %113, %119 : vector<8x128xf32>
    %121 = arith.truncf %120 : vector<8x128xf32> to vector<8x128xbf16>
    %c24_59 = arith.constant 24 : index
    %c0_60 = arith.constant 0 : index
    %122 = vector.load %arg13[%c24_59, %c0_60] : memref<64x512xf32, #tpu.memory_space<vmem>>, vector<8x512xf32>
    %cst_61 = arith.constant dense<0.000000e+00> : vector<8x512xf32>
    %123 = tpu.matmul %121, %13, %cst_61 {dimension_numbers = #tpu.dot_dimension_numbers<[1], [0], [0], [1], [0, 0, 1, 1], [], []>} : vector<8x128xbf16>, vector<128x512xbf16>, vector<8x512xf32> -> vector<8x512xf32>
    %124 = arith.addf %122, %123 : vector<8x512xf32>
    %c24_62 = arith.constant 24 : index
    %c0_63 = arith.constant 0 : index
    %125 = vector.load %arg13[%c24_62, %c0_63] : memref<64x512xf32, #tpu.memory_space<vmem>>, vector<8x512xf32>
    tpu.vector_store %arg13[%c24_62, %c0_63], %124 {strides = array<i32>} : memref<64x512xf32, #tpu.memory_space<vmem>>, vector<8x512xf32>,
    %c32 = arith.constant 32 : index
    %c0_64 = arith.constant 0 : index
    %126 = vector.load %arg13[%c32, %c0_64] : memref<64x512xf32, #tpu.memory_space<vmem>>, vector<8x512xf32>
    %cst_65 = arith.constant dense<0.000000e+00> : vector<8x512xf32>
    %127 = tpu.matmul %121, %14, %cst_65 {dimension_numbers = #tpu.dot_dimension_numbers<[1], [0], [0], [1], [0, 0, 1, 1], [], []>} : vector<8x128xbf16>, vector<128x512xbf16>, vector<8x512xf32> -> vector<8x512xf32>
    %128 = arith.addf %126, %127 : vector<8x512xf32>
    %c32_66 = arith.constant 32 : index
    %c0_67 = arith.constant 0 : index
    %129 = vector.load %arg13[%c32_66, %c0_67] : memref<64x512xf32, #tpu.memory_space<vmem>>, vector<8x512xf32>
    tpu.vector_store %arg13[%c32_66, %c0_67], %128 {strides = array<i32>} : memref<64x512xf32, #tpu.memory_space<vmem>>, vector<8x512xf32>,
    %c32_68 = arith.constant 32 : index
    %c0_69 = arith.constant 0 : index
    %130 = vector.load %arg12[%c32_68, %c0_69] : memref<64x512xf32, #tpu.memory_space<vmem>>, vector<8x512xf32>
    %cst_70 = arith.constant dense<0.000000e+00> : vector<8x512xf32>
    %131 = tpu.matmul %121, %12, %cst_70 {dimension_numbers = #tpu.dot_dimension_numbers<[1], [0], [0], [1], [0, 0, 1, 1], [], []>} : vector<8x128xbf16>, vector<128x512xbf16>, vector<8x512xf32> -> vector<8x512xf32>
    %132 = arith.addf %130, %131 : vector<8x512xf32>
    %133 = vector.extract_strided_slice %132 {offsets = [0, 0], sizes = [8, 384], strides = [1, 1]} : vector<8x512xf32> to vector<8x384xf32>
    %134 = arith.negf %133 : vector<8x384xf32>
    %135 = math.exp %134 : vector<8x384xf32>
    %cst_71 = arith.constant 1.000000e+00 : f32
    %136 = vector.broadcast %cst_71 : f32 to vector<8x384xf32>
    %137 = arith.addf %136, %135 : vector<8x384xf32>
    %138 = arith.divf %136, %137 : vector<8x384xf32>
    %139 = vector.extract_strided_slice %138 {offsets = [0, 0], sizes = [8, 128], strides = [1, 1]} : vector<8x384xf32> to vector<8x128xf32>
    %140 = vector.extract_strided_slice %138 {offsets = [0, 128], sizes = [8, 128], strides = [1, 1]} : vector<8x384xf32> to vector<8x128xf32>
    %141 = vector.extract_strided_slice %138 {offsets = [0, 256], sizes = [8, 128], strides = [1, 1]} : vector<8x384xf32> to vector<8x128xf32>
    %142 = vector.extract_strided_slice %132 {offsets = [0, 384], sizes = [8, 128], strides = [1, 1]} : vector<8x512xf32> to vector<8x128xf32>
    %143 = math.tanh %142 : vector<8x128xf32>
    %144 = arith.mulf %140, %118 : vector<8x128xf32>
    %145 = arith.mulf %139, %143 : vector<8x128xf32>
    %146 = arith.addf %144, %145 : vector<8x128xf32>
    %147 = math.tanh %146 : vector<8x128xf32>
    %148 = arith.mulf %141, %147 : vector<8x128xf32>
    %149 = arith.truncf %148 : vector<8x128xf32> to vector<8x128xbf16>
    %c32_72 = arith.constant 32 : index
    %c0_73 = arith.constant 0 : index
    %150 = vector.load %arg13[%c32_72, %c0_73] : memref<64x512xf32, #tpu.memory_space<vmem>>, vector<8x512xf32>
    %cst_74 = arith.constant dense<0.000000e+00> : vector<8x512xf32>
    %151 = tpu.matmul %149, %13, %cst_74 {dimension_numbers = #tpu.dot_dimension_numbers<[1], [0], [0], [1], [0, 0, 1, 1], [], []>} : vector<8x128xbf16>, vector<128x512xbf16>, vector<8x512xf32> -> vector<8x512xf32>
    %152 = arith.addf %150, %151 : vector<8x512xf32>
    %c32_75 = arith.constant 32 : index
    %c0_76 = arith.constant 0 : index
    %153 = vector.load %arg13[%c32_75, %c0_76] : memref<64x512xf32, #tpu.memory_space<vmem>>, vector<8x512xf32>
    tpu.vector_store %arg13[%c32_75, %c0_76], %152 {strides = array<i32>} : memref<64x512xf32, #tpu.memory_space<vmem>>, vector<8x512xf32>,
    %c24_77 = arith.constant 24 : index
    %c0_78 = arith.constant 0 : index
    %154 = vector.load %arg13[%c24_77, %c0_78] : memref<64x512xf32, #tpu.memory_space<vmem>>, vector<8x512xf32>
    %cst_79 = arith.constant dense<0.000000e+00> : vector<8x512xf32>
    %155 = tpu.matmul %149, %14, %cst_79 {dimension_numbers = #tpu.dot_dimension_numbers<[1], [0], [0], [1], [0, 0, 1, 1], [], []>} : vector<8x128xbf16>, vector<128x512xbf16>, vector<8x512xf32> -> vector<8x512xf32>
    %156 = arith.addf %154, %155 : vector<8x512xf32>
    %c24_80 = arith.constant 24 : index
    %c0_81 = arith.constant 0 : index
    %157 = vector.load %arg13[%c24_80, %c0_81] : memref<64x512xf32, #tpu.memory_space<vmem>>, vector<8x512xf32>
    tpu.vector_store %arg13[%c24_80, %c0_81], %156 {strides = array<i32>} : memref<64x512xf32, #tpu.memory_space<vmem>>, vector<8x512xf32>,
    %c40_82 = arith.constant 40 : index
    %c0_83 = arith.constant 0 : index
    %158 = vector.load %arg12[%c40_82, %c0_83] : memref<64x512xf32, #tpu.memory_space<vmem>>, vector<8x512xf32>
    %cst_84 = arith.constant dense<0.000000e+00> : vector<8x512xf32>
    %159 = tpu.matmul %149, %12, %cst_84 {dimension_numbers = #tpu.dot_dimension_numbers<[1], [0], [0], [1], [0, 0, 1, 1], [], []>} : vector<8x128xbf16>, vector<128x512xbf16>, vector<8x512xf32> -> vector<8x512xf32>
    %160 = arith.addf %158, %159 : vector<8x512xf32>
    %161 = vector.extract_strided_slice %160 {offsets = [0, 0], sizes = [8, 384], strides = [1, 1]} : vector<8x512xf32> to vector<8x384xf32>
    %162 = arith.negf %161 : vector<8x384xf32>
    %163 = math.exp %162 : vector<8x384xf32>
    %cst_85 = arith.constant 1.000000e+00 : f32
    %164 = vector.broadcast %cst_85 : f32 to vector<8x384xf32>
    %165 = arith.addf %164, %163 : vector<8x384xf32>
    %166 = arith.divf %164, %165 : vector<8x384xf32>
    %167 = vector.extract_strided_slice %166 {offsets = [0, 0], sizes = [8, 128], strides = [1, 1]} : vector<8x384xf32> to vector<8x128xf32>
    %168 = vector.extract_strided_slice %166 {offsets = [0, 128], sizes = [8, 128], strides = [1, 1]} : vector<8x384xf32> to vector<8x128xf32>
    %169 = vector.extract_strided_slice %166 {offsets = [0, 256], sizes = [8, 128], strides = [1, 1]} : vector<8x384xf32> to vector<8x128xf32>
    %170 = vector.extract_strided_slice %160 {offsets = [0, 384], sizes = [8, 128], strides = [1, 1]} : vector<8x512xf32> to vector<8x128xf32>
    %171 = math.tanh %170 : vector<8x128xf32>
    %172 = arith.mulf %168, %146 : vector<8x128xf32>
    %173 = arith.mulf %167, %171 : vector<8x128xf32>
    %174 = arith.addf %172, %173 : vector<8x128xf32>
    %175 = math.tanh %174 : vector<8x128xf32>
    %176 = arith.mulf %169, %175 : vector<8x128xf32>
    %177 = arith.truncf %176 : vector<8x128xf32> to vector<8x128xbf16>
    %c40_86 = arith.constant 40 : index
    %c0_87 = arith.constant 0 : index
    %178 = vector.load %arg13[%c40_86, %c0_87] : memref<64x512xf32, #tpu.memory_space<vmem>>, vector<8x512xf32>
    %cst_88 = arith.constant dense<0.000000e+00> : vector<8x512xf32>
    %179 = tpu.matmul %177, %13, %cst_88 {dimension_numbers = #tpu.dot_dimension_numbers<[1], [0], [0], [1], [0, 0, 1, 1], [], []>} : vector<8x128xbf16>, vector<128x512xbf16>, vector<8x512xf32> -> vector<8x512xf32>
    %180 = arith.addf %178, %179 : vector<8x512xf32>
    %c40_89 = arith.constant 40 : index
    %c0_90 = arith.constant 0 : index
    %181 = vector.load %arg13[%c40_89, %c0_90] : memref<64x512xf32, #tpu.memory_space<vmem>>, vector<8x512xf32>
    tpu.vector_store %arg13[%c40_89, %c0_90], %180 {strides = array<i32>} : memref<64x512xf32, #tpu.memory_space<vmem>>, vector<8x512xf32>,
    %c16_91 = arith.constant 16 : index
    %c0_92 = arith.constant 0 : index
    %182 = vector.load %arg13[%c16_91, %c0_92] : memref<64x512xf32, #tpu.memory_space<vmem>>, vector<8x512xf32>
    %cst_93 = arith.constant dense<0.000000e+00> : vector<8x512xf32>
    %183 = tpu.matmul %177, %14, %cst_93 {dimension_numbers = #tpu.dot_dimension_numbers<[1], [0], [0], [1], [0, 0, 1, 1], [], []>} : vector<8x128xbf16>, vector<128x512xbf16>, vector<8x512xf32> -> vector<8x512xf32>
    %184 = arith.addf %182, %183 : vector<8x512xf32>
    %c16_94 = arith.constant 16 : index
    %c0_95 = arith.constant 0 : index
    %185 = vector.load %arg13[%c16_94, %c0_95] : memref<64x512xf32, #tpu.memory_space<vmem>>, vector<8x512xf32>
    tpu.vector_store %arg13[%c16_94, %c0_95], %184 {strides = array<i32>} : memref<64x512xf32, #tpu.memory_space<vmem>>, vector<8x512xf32>,
    %c48_96 = arith.constant 48 : index
    %c0_97 = arith.constant 0 : index
    %186 = vector.load %arg12[%c48_96, %c0_97] : memref<64x512xf32, #tpu.memory_space<vmem>>, vector<8x512xf32>
    %cst_98 = arith.constant dense<0.000000e+00> : vector<8x512xf32>
    %187 = tpu.matmul %177, %12, %cst_98 {dimension_numbers = #tpu.dot_dimension_numbers<[1], [0], [0], [1], [0, 0, 1, 1], [], []>} : vector<8x128xbf16>, vector<128x512xbf16>, vector<8x512xf32> -> vector<8x512xf32>
    %188 = arith.addf %186, %187 : vector<8x512xf32>
    %189 = vector.extract_strided_slice %188 {offsets = [0, 0], sizes = [8, 384], strides = [1, 1]} : vector<8x512xf32> to vector<8x384xf32>
    %190 = arith.negf %189 : vector<8x384xf32>
    %191 = math.exp %190 : vector<8x384xf32>
    %cst_99 = arith.constant 1.000000e+00 : f32
    %192 = vector.broadcast %cst_99 : f32 to vector<8x384xf32>
    %193 = arith.addf %192, %191 : vector<8x384xf32>
    %194 = arith.divf %192, %193 : vector<8x384xf32>
    %195 = vector.extract_strided_slice %194 {offsets = [0, 0], sizes = [8, 128], strides = [1, 1]} : vector<8x384xf32> to vector<8x128xf32>
    %196 = vector.extract_strided_slice %194 {offsets = [0, 128], sizes = [8, 128], strides = [1, 1]} : vector<8x384xf32> to vector<8x128xf32>
    %197 = vector.extract_strided_slice %194 {offsets = [0, 256], sizes = [8, 128], strides = [1, 1]} : vector<8x384xf32> to vector<8x128xf32>
    %198 = vector.extract_strided_slice %188 {offsets = [0, 384], sizes = [8, 128], strides = [1, 1]} : vector<8x512xf32> to vector<8x128xf32>
    %199 = math.tanh %198 : vector<8x128xf32>
    %200 = arith.mulf %196, %174 : vector<8x128xf32>
    %201 = arith.mulf %195, %199 : vector<8x128xf32>
    %202 = arith.addf %200, %201 : vector<8x128xf32>
    %203 = math.tanh %202 : vector<8x128xf32>
    %204 = arith.mulf %197, %203 : vector<8x128xf32>
    %205 = arith.truncf %204 : vector<8x128xf32> to vector<8x128xbf16>
    %c48_100 = arith.constant 48 : index
    %c0_101 = arith.constant 0 : index
    %206 = vector.load %arg13[%c48_100, %c0_101] : memref<64x512xf32, #tpu.memory_space<vmem>>, vector<8x512xf32>
    %cst_102 = arith.constant dense<0.000000e+00> : vector<8x512xf32>
    %207 = tpu.matmul %205, %13, %cst_102 {dimension_numbers = #tpu.dot_dimension_numbers<[1], [0], [0], [1], [0, 0, 1, 1], [], []>} : vector<8x128xbf16>, vector<128x512xbf16>, vector<8x512xf32> -> vector<8x512xf32>
    %208 = arith.addf %206, %207 : vector<8x512xf32>
    %c48_103 = arith.constant 48 : index
    %c0_104 = arith.constant 0 : index
    %209 = vector.load %arg13[%c48_103, %c0_104] : memref<64x512xf32, #tpu.memory_space<vmem>>, vector<8x512xf32>
    tpu.vector_store %arg13[%c48_103, %c0_104], %208 {strides = array<i32>} : memref<64x512xf32, #tpu.memory_space<vmem>>, vector<8x512xf32>,
    %c8_105 = arith.constant 8 : index
    %c0_106 = arith.constant 0 : index
    %210 = vector.load %arg13[%c8_105, %c0_106] : memref<64x512xf32, #tpu.memory_space<vmem>>, vector<8x512xf32>
    %cst_107 = arith.constant dense<0.000000e+00> : vector<8x512xf32>
    %211 = tpu.matmul %205, %14, %cst_107 {dimension_numbers = #tpu.dot_dimension_numbers<[1], [0], [0], [1], [0, 0, 1, 1], [], []>} : vector<8x128xbf16>, vector<128x512xbf16>, vector<8x512xf32> -> vector<8x512xf32>
    %212 = arith.addf %210, %211 : vector<8x512xf32>
    %c8_108 = arith.constant 8 : index
    %c0_109 = arith.constant 0 : index
    %213 = vector.load %arg13[%c8_108, %c0_109] : memref<64x512xf32, #tpu.memory_space<vmem>>, vector<8x512xf32>
    tpu.vector_store %arg13[%c8_108, %c0_109], %212 {strides = array<i32>} : memref<64x512xf32, #tpu.memory_space<vmem>>, vector<8x512xf32>,
    %c56_110 = arith.constant 56 : index
    %c0_111 = arith.constant 0 : index
    %214 = vector.load %arg12[%c56_110, %c0_111] : memref<64x512xf32, #tpu.memory_space<vmem>>, vector<8x512xf32>
    %cst_112 = arith.constant dense<0.000000e+00> : vector<8x512xf32>
    %215 = tpu.matmul %205, %12, %cst_112 {dimension_numbers = #tpu.dot_dimension_numbers<[1], [0], [0], [1], [0, 0, 1, 1], [], []>} : vector<8x128xbf16>, vector<128x512xbf16>, vector<8x512xf32> -> vector<8x512xf32>
    %216 = arith.addf %214, %215 : vector<8x512xf32>
    %217 = vector.extract_strided_slice %216 {offsets = [0, 0], sizes = [8, 384], strides = [1, 1]} : vector<8x512xf32> to vector<8x384xf32>
    %218 = arith.negf %217 : vector<8x384xf32>
    %219 = math.exp %218 : vector<8x384xf32>
    %cst_113 = arith.constant 1.000000e+00 : f32
    %220 = vector.broadcast %cst_113 : f32 to vector<8x384xf32>
    %221 = arith.addf %220, %219 : vector<8x384xf32>
    %222 = arith.divf %220, %221 : vector<8x384xf32>
    %223 = vector.extract_strided_slice %222 {offsets = [0, 0], sizes = [8, 128], strides = [1, 1]} : vector<8x384xf32> to vector<8x128xf32>
    %224 = vector.extract_strided_slice %222 {offsets = [0, 128], sizes = [8, 128], strides = [1, 1]} : vector<8x384xf32> to vector<8x128xf32>
    %225 = vector.extract_strided_slice %222 {offsets = [0, 256], sizes = [8, 128], strides = [1, 1]} : vector<8x384xf32> to vector<8x128xf32>
    %226 = vector.extract_strided_slice %216 {offsets = [0, 384], sizes = [8, 128], strides = [1, 1]} : vector<8x512xf32> to vector<8x128xf32>
    %227 = math.tanh %226 : vector<8x128xf32>
    %228 = arith.mulf %224, %202 : vector<8x128xf32>
    %229 = arith.mulf %223, %227 : vector<8x128xf32>
    %230 = arith.addf %228, %229 : vector<8x128xf32>
    %231 = math.tanh %230 : vector<8x128xf32>
    %232 = arith.mulf %225, %231 : vector<8x128xf32>
    %233 = arith.truncf %232 : vector<8x128xf32> to vector<8x128xbf16>
    %c56_114 = arith.constant 56 : index
    %c0_115 = arith.constant 0 : index
    %234 = vector.load %arg13[%c56_114, %c0_115] : memref<64x512xf32, #tpu.memory_space<vmem>>, vector<8x512xf32>
    %cst_116 = arith.constant dense<0.000000e+00> : vector<8x512xf32>
    %235 = tpu.matmul %233, %13, %cst_116 {dimension_numbers = #tpu.dot_dimension_numbers<[1], [0], [0], [1], [0, 0, 1, 1], [], []>} : vector<8x128xbf16>, vector<128x512xbf16>, vector<8x512xf32> -> vector<8x512xf32>
    %236 = arith.addf %234, %235 : vector<8x512xf32>
    %c56_117 = arith.constant 56 : index
    %c0_118 = arith.constant 0 : index
    %237 = vector.load %arg13[%c56_117, %c0_118] : memref<64x512xf32, #tpu.memory_space<vmem>>, vector<8x512xf32>
    tpu.vector_store %arg13[%c56_117, %c0_118], %236 {strides = array<i32>} : memref<64x512xf32, #tpu.memory_space<vmem>>, vector<8x512xf32>,
    %c0_119 = arith.constant 0 : index
    %c0_120 = arith.constant 0 : index
    %238 = vector.load %arg13[%c0_119, %c0_120] : memref<64x512xf32, #tpu.memory_space<vmem>>, vector<8x512xf32>
    %cst_121 = arith.constant dense<0.000000e+00> : vector<8x512xf32>
    %239 = tpu.matmul %233, %14, %cst_121 {dimension_numbers = #tpu.dot_dimension_numbers<[1], [0], [0], [1], [0, 0, 1, 1], [], []>} : vector<8x128xbf16>, vector<128x512xbf16>, vector<8x512xf32> -> vector<8x512xf32>
    %240 = arith.addf %238, %239 : vector<8x512xf32>
    %c0_122 = arith.constant 0 : index
    %c0_123 = arith.constant 0 : index
    %241 = vector.load %arg13[%c0_122, %c0_123] : memref<64x512xf32, #tpu.memory_space<vmem>>, vector<8x512xf32>
    tpu.vector_store %arg13[%c0_122, %c0_123], %240 {strides = array<i32>} : memref<64x512xf32, #tpu.memory_space<vmem>>, vector<8x512xf32>,
    %c0_124 = arith.constant 0 : index
    %c0_125 = arith.constant 0 : index
    %242 = vector.load %arg8[%c0_124, %c0_125] : memref<128x512xbf16, #tpu.memory_space<vmem>>, vector<128x512xbf16>
    %c0_126 = arith.constant 0 : index
    %c0_127 = arith.constant 0 : index
    %243 = vector.load %arg1[%c0_126, %c0_127] : memref<8x1xi32, #tpu.memory_space<vmem>>, vector<8x1xi32>
    %cst_128 = arith.constant 0.000000e+00 : f32
    %244 = vector.broadcast %cst_128 : f32 to vector<8x128xf32>
    %cst_129 = arith.constant 0.000000e+00 : f32
    %245 = vector.broadcast %cst_129 : f32 to vector<8x128xf32>
    %246 = arith.truncf %244 : vector<8x128xf32> to vector<8x128xbf16>
    %cst_130 = arith.constant 0.000000e+00 : f32
    %247 = vector.broadcast %cst_130 : f32 to vector<8x128xf32>
    %c0_131 = arith.constant 0 : index
    %c0_132 = arith.constant 0 : index
    %248 = vector.load %arg13[%c0_131, %c0_132] : memref<64x512xf32, #tpu.memory_space<vmem>>, vector<8x512xf32>
    %cst_133 = arith.constant dense<0.000000e+00> : vector<8x512xf32>
    %249 = tpu.matmul %246, %242, %cst_133 {dimension_numbers = #tpu.dot_dimension_numbers<[1], [0], [0], [1], [0, 0, 1, 1], [], []>} : vector<8x128xbf16>, vector<128x512xbf16>, vector<8x512xf32> -> vector<8x512xf32>
    %250 = arith.addf %248, %249 : vector<8x512xf32>
    %251 = vector.extract_strided_slice %250 {offsets = [0, 0], sizes = [8, 384], strides = [1, 1]} : vector<8x512xf32> to vector<8x384xf32>
    %252 = arith.negf %251 : vector<8x384xf32>
    %253 = math.exp %252 : vector<8x384xf32>
    %cst_134 = arith.constant 1.000000e+00 : f32
    %254 = vector.broadcast %cst_134 : f32 to vector<8x384xf32>
    %255 = arith.addf %254, %253 : vector<8x384xf32>
    %256 = arith.divf %254, %255 : vector<8x384xf32>
    %257 = vector.extract_strided_slice %256 {offsets = [0, 0], sizes = [8, 128], strides = [1, 1]} : vector<8x384xf32> to vector<8x128xf32>
    %258 = vector.extract_strided_slice %256 {offsets = [0, 128], sizes = [8, 128], strides = [1, 1]} : vector<8x384xf32> to vector<8x128xf32>
    %259 = vector.extract_strided_slice %256 {offsets = [0, 256], sizes = [8, 128], strides = [1, 1]} : vector<8x384xf32> to vector<8x128xf32>
    %260 = vector.extract_strided_slice %250 {offsets = [0, 384], sizes = [8, 128], strides = [1, 1]} : vector<8x512xf32> to vector<8x128xf32>
    %261 = math.tanh %260 : vector<8x128xf32>
    %262 = arith.mulf %258, %245 : vector<8x128xf32>
    %263 = arith.mulf %257, %261 : vector<8x128xf32>
    %264 = arith.addf %262, %263 : vector<8x128xf32>
    %265 = math.tanh %264 : vector<8x128xf32>
    %266 = arith.mulf %259, %265 : vector<8x128xf32>
    %267 = arith.truncf %266 : vector<8x128xf32> to vector<8x128xbf16>
    %c0_i32 = arith.constant 0 : i32
    %268 = vector.broadcast %c0_i32 : i32 to vector<8x1xi32>
    %269 = arith.cmpi eq, %243, %268 : vector<8x1xi32>
    %270 = vector.shape_cast %269 : vector<8x1xi1> to vector<8x1xi1>
    %271 = vector.broadcast %270 : vector<8x1xi1> to vector<8x128xi1>
    %272 = arith.select %271, %266, %247 : vector<8x128xi1>, vector<8x128xf32>
    %c8_135 = arith.constant 8 : index
    %c0_136 = arith.constant 0 : index
    %273 = vector.load %arg13[%c8_135, %c0_136] : memref<64x512xf32, #tpu.memory_space<vmem>>, vector<8x512xf32>
    %cst_137 = arith.constant dense<0.000000e+00> : vector<8x512xf32>
    %274 = tpu.matmul %267, %242, %cst_137 {dimension_numbers = #tpu.dot_dimension_numbers<[1], [0], [0], [1], [0, 0, 1, 1], [], []>} : vector<8x128xbf16>, vector<128x512xbf16>, vector<8x512xf32> -> vector<8x512xf32>
    %275 = arith.addf %273, %274 : vector<8x512xf32>
    %276 = vector.extract_strided_slice %275 {offsets = [0, 0], sizes = [8, 384], strides = [1, 1]} : vector<8x512xf32> to vector<8x384xf32>
    %277 = arith.negf %276 : vector<8x384xf32>
    %278 = math.exp %277 : vector<8x384xf32>
    %cst_138 = arith.constant 1.000000e+00 : f32
    %279 = vector.broadcast %cst_138 : f32 to vector<8x384xf32>
    %280 = arith.addf %279, %278 : vector<8x384xf32>
    %281 = arith.divf %279, %280 : vector<8x384xf32>
    %282 = vector.extract_strided_slice %281 {offsets = [0, 0], sizes = [8, 128], strides = [1, 1]} : vector<8x384xf32> to vector<8x128xf32>
    %283 = vector.extract_strided_slice %281 {offsets = [0, 128], sizes = [8, 128], strides = [1, 1]} : vector<8x384xf32> to vector<8x128xf32>
    %284 = vector.extract_strided_slice %281 {offsets = [0, 256], sizes = [8, 128], strides = [1, 1]} : vector<8x384xf32> to vector<8x128xf32>
    %285 = vector.extract_strided_slice %275 {offsets = [0, 384], sizes = [8, 128], strides = [1, 1]} : vector<8x512xf32> to vector<8x128xf32>
    %286 = math.tanh %285 : vector<8x128xf32>
    %287 = arith.mulf %283, %264 : vector<8x128xf32>
    %288 = arith.mulf %282, %286 : vector<8x128xf32>
    %289 = arith.addf %287, %288 : vector<8x128xf32>
    %290 = math.tanh %289 : vector<8x128xf32>
    %291 = arith.mulf %284, %290 : vector<8x128xf32>
    %292 = arith.truncf %291 : vector<8x128xf32> to vector<8x128xbf16>
    %c1_i32 = arith.constant 1 : i32
    %293 = vector.broadcast %c1_i32 : i32 to vector<8x1xi32>
    %294 = arith.cmpi eq, %243, %293 : vector<8x1xi32>
    %295 = vector.shape_cast %294 : vector<8x1xi1> to vector<8x1xi1>
    %296 = vector.broadcast %295 : vector<8x1xi1> to vector<8x128xi1>
    %297 = arith.select %296, %291, %272 : vector<8x128xi1>, vector<8x128xf32>
    %c16_139 = arith.constant 16 : index
    %c0_140 = arith.constant 0 : index
    %298 = vector.load %arg13[%c16_139, %c0_140] : memref<64x512xf32, #tpu.memory_space<vmem>>, vector<8x512xf32>
    %cst_141 = arith.constant dense<0.000000e+00> : vector<8x512xf32>
    %299 = tpu.matmul %292, %242, %cst_141 {dimension_numbers = #tpu.dot_dimension_numbers<[1], [0], [0], [1], [0, 0, 1, 1], [], []>} : vector<8x128xbf16>, vector<128x512xbf16>, vector<8x512xf32> -> vector<8x512xf32>
    %300 = arith.addf %298, %299 : vector<8x512xf32>
    %301 = vector.extract_strided_slice %300 {offsets = [0, 0], sizes = [8, 384], strides = [1, 1]} : vector<8x512xf32> to vector<8x384xf32>
    %302 = arith.negf %301 : vector<8x384xf32>
    %303 = math.exp %302 : vector<8x384xf32>
    %cst_142 = arith.constant 1.000000e+00 : f32
    %304 = vector.broadcast %cst_142 : f32 to vector<8x384xf32>
    %305 = arith.addf %304, %303 : vector<8x384xf32>
    %306 = arith.divf %304, %305 : vector<8x384xf32>
    %307 = vector.extract_strided_slice %306 {offsets = [0, 0], sizes = [8, 128], strides = [1, 1]} : vector<8x384xf32> to vector<8x128xf32>
    %308 = vector.extract_strided_slice %306 {offsets = [0, 128], sizes = [8, 128], strides = [1, 1]} : vector<8x384xf32> to vector<8x128xf32>
    %309 = vector.extract_strided_slice %306 {offsets = [0, 256], sizes = [8, 128], strides = [1, 1]} : vector<8x384xf32> to vector<8x128xf32>
    %310 = vector.extract_strided_slice %300 {offsets = [0, 384], sizes = [8, 128], strides = [1, 1]} : vector<8x512xf32> to vector<8x128xf32>
    %311 = math.tanh %310 : vector<8x128xf32>
    %312 = arith.mulf %308, %289 : vector<8x128xf32>
    %313 = arith.mulf %307, %311 : vector<8x128xf32>
    %314 = arith.addf %312, %313 : vector<8x128xf32>
    %315 = math.tanh %314 : vector<8x128xf32>
    %316 = arith.mulf %309, %315 : vector<8x128xf32>
    %317 = arith.truncf %316 : vector<8x128xf32> to vector<8x128xbf16>
    %c2_i32 = arith.constant 2 : i32
    %318 = vector.broadcast %c2_i32 : i32 to vector<8x1xi32>
    %319 = arith.cmpi eq, %243, %318 : vector<8x1xi32>
    %320 = vector.shape_cast %319 : vector<8x1xi1> to vector<8x1xi1>
    %321 = vector.broadcast %320 : vector<8x1xi1> to vector<8x128xi1>
    %322 = arith.select %321, %316, %297 : vector<8x128xi1>, vector<8x128xf32>
    %c24_143 = arith.constant 24 : index
    %c0_144 = arith.constant 0 : index
    %323 = vector.load %arg13[%c24_143, %c0_144] : memref<64x512xf32, #tpu.memory_space<vmem>>, vector<8x512xf32>
    %cst_145 = arith.constant dense<0.000000e+00> : vector<8x512xf32>
    %324 = tpu.matmul %317, %242, %cst_145 {dimension_numbers = #tpu.dot_dimension_numbers<[1], [0], [0], [1], [0, 0, 1, 1], [], []>} : vector<8x128xbf16>, vector<128x512xbf16>, vector<8x512xf32> -> vector<8x512xf32>
    %325 = arith.addf %323, %324 : vector<8x512xf32>
    %326 = vector.extract_strided_slice %325 {offsets = [0, 0], sizes = [8, 384], strides = [1, 1]} : vector<8x512xf32> to vector<8x384xf32>
    %327 = arith.negf %326 : vector<8x384xf32>
    %328 = math.exp %327 : vector<8x384xf32>
    %cst_146 = arith.constant 1.000000e+00 : f32
    %329 = vector.broadcast %cst_146 : f32 to vector<8x384xf32>
    %330 = arith.addf %329, %328 : vector<8x384xf32>
    %331 = arith.divf %329, %330 : vector<8x384xf32>
    %332 = vector.extract_strided_slice %331 {offsets = [0, 0], sizes = [8, 128], strides = [1, 1]} : vector<8x384xf32> to vector<8x128xf32>
    %333 = vector.extract_strided_slice %331 {offsets = [0, 128], sizes = [8, 128], strides = [1, 1]} : vector<8x384xf32> to vector<8x128xf32>
    %334 = vector.extract_strided_slice %331 {offsets = [0, 256], sizes = [8, 128], strides = [1, 1]} : vector<8x384xf32> to vector<8x128xf32>
    %335 = vector.extract_strided_slice %325 {offsets = [0, 384], sizes = [8, 128], strides = [1, 1]} : vector<8x512xf32> to vector<8x128xf32>
    %336 = math.tanh %335 : vector<8x128xf32>
    %337 = arith.mulf %333, %314 : vector<8x128xf32>
    %338 = arith.mulf %332, %336 : vector<8x128xf32>
    %339 = arith.addf %337, %338 : vector<8x128xf32>
    %340 = math.tanh %339 : vector<8x128xf32>
    %341 = arith.mulf %334, %340 : vector<8x128xf32>
    %342 = arith.truncf %341 : vector<8x128xf32> to vector<8x128xbf16>
    %c3_i32 = arith.constant 3 : i32
    %343 = vector.broadcast %c3_i32 : i32 to vector<8x1xi32>
    %344 = arith.cmpi eq, %243, %343 : vector<8x1xi32>
    %345 = vector.shape_cast %344 : vector<8x1xi1> to vector<8x1xi1>
    %346 = vector.broadcast %345 : vector<8x1xi1> to vector<8x128xi1>
    %347 = arith.select %346, %341, %322 : vector<8x128xi1>, vector<8x128xf32>
    %c32_147 = arith.constant 32 : index
    %c0_148 = arith.constant 0 : index
    %348 = vector.load %arg13[%c32_147, %c0_148] : memref<64x512xf32, #tpu.memory_space<vmem>>, vector<8x512xf32>
    %cst_149 = arith.constant dense<0.000000e+00> : vector<8x512xf32>
    %349 = tpu.matmul %342, %242, %cst_149 {dimension_numbers = #tpu.dot_dimension_numbers<[1], [0], [0], [1], [0, 0, 1, 1], [], []>} : vector<8x128xbf16>, vector<128x512xbf16>, vector<8x512xf32> -> vector<8x512xf32>
    %350 = arith.addf %348, %349 : vector<8x512xf32>
    %351 = vector.extract_strided_slice %350 {offsets = [0, 0], sizes = [8, 384], strides = [1, 1]} : vector<8x512xf32> to vector<8x384xf32>
    %352 = arith.negf %351 : vector<8x384xf32>
    %353 = math.exp %352 : vector<8x384xf32>
    %cst_150 = arith.constant 1.000000e+00 : f32
    %354 = vector.broadcast %cst_150 : f32 to vector<8x384xf32>
    %355 = arith.addf %354, %353 : vector<8x384xf32>
    %356 = arith.divf %354, %355 : vector<8x384xf32>
    %357 = vector.extract_strided_slice %356 {offsets = [0, 0], sizes = [8, 128], strides = [1, 1]} : vector<8x384xf32> to vector<8x128xf32>
    %358 = vector.extract_strided_slice %356 {offsets = [0, 128], sizes = [8, 128], strides = [1, 1]} : vector<8x384xf32> to vector<8x128xf32>
    %359 = vector.extract_strided_slice %356 {offsets = [0, 256], sizes = [8, 128], strides = [1, 1]} : vector<8x384xf32> to vector<8x128xf32>
    %360 = vector.extract_strided_slice %350 {offsets = [0, 384], sizes = [8, 128], strides = [1, 1]} : vector<8x512xf32> to vector<8x128xf32>
    %361 = math.tanh %360 : vector<8x128xf32>
    %362 = arith.mulf %358, %339 : vector<8x128xf32>
    %363 = arith.mulf %357, %361 : vector<8x128xf32>
    %364 = arith.addf %362, %363 : vector<8x128xf32>
    %365 = math.tanh %364 : vector<8x128xf32>
    %366 = arith.mulf %359, %365 : vector<8x128xf32>
    %367 = arith.truncf %366 : vector<8x128xf32> to vector<8x128xbf16>
    %c4_i32 = arith.constant 4 : i32
    %368 = vector.broadcast %c4_i32 : i32 to vector<8x1xi32>
    %369 = arith.cmpi eq, %243, %368 : vector<8x1xi32>
    %370 = vector.shape_cast %369 : vector<8x1xi1> to vector<8x1xi1>
    %371 = vector.broadcast %370 : vector<8x1xi1> to vector<8x128xi1>
    %372 = arith.select %371, %366, %347 : vector<8x128xi1>, vector<8x128xf32>
    %c40_151 = arith.constant 40 : index
    %c0_152 = arith.constant 0 : index
    %373 = vector.load %arg13[%c40_151, %c0_152] : memref<64x512xf32, #tpu.memory_space<vmem>>, vector<8x512xf32>
    %cst_153 = arith.constant dense<0.000000e+00> : vector<8x512xf32>
    %374 = tpu.matmul %367, %242, %cst_153 {dimension_numbers = #tpu.dot_dimension_numbers<[1], [0], [0], [1], [0, 0, 1, 1], [], []>} : vector<8x128xbf16>, vector<128x512xbf16>, vector<8x512xf32> -> vector<8x512xf32>
    %375 = arith.addf %373, %374 : vector<8x512xf32>
    %376 = vector.extract_strided_slice %375 {offsets = [0, 0], sizes = [8, 384], strides = [1, 1]} : vector<8x512xf32> to vector<8x384xf32>
    %377 = arith.negf %376 : vector<8x384xf32>
    %378 = math.exp %377 : vector<8x384xf32>
    %cst_154 = arith.constant 1.000000e+00 : f32
    %379 = vector.broadcast %cst_154 : f32 to vector<8x384xf32>
    %380 = arith.addf %379, %378 : vector<8x384xf32>
    %381 = arith.divf %379, %380 : vector<8x384xf32>
    %382 = vector.extract_strided_slice %381 {offsets = [0, 0], sizes = [8, 128], strides = [1, 1]} : vector<8x384xf32> to vector<8x128xf32>
    %383 = vector.extract_strided_slice %381 {offsets = [0, 128], sizes = [8, 128], strides = [1, 1]} : vector<8x384xf32> to vector<8x128xf32>
    %384 = vector.extract_strided_slice %381 {offsets = [0, 256], sizes = [8, 128], strides = [1, 1]} : vector<8x384xf32> to vector<8x128xf32>
    %385 = vector.extract_strided_slice %375 {offsets = [0, 384], sizes = [8, 128], strides = [1, 1]} : vector<8x512xf32> to vector<8x128xf32>
    %386 = math.tanh %385 : vector<8x128xf32>
    %387 = arith.mulf %383, %364 : vector<8x128xf32>
    %388 = arith.mulf %382, %386 : vector<8x128xf32>
    %389 = arith.addf %387, %388 : vector<8x128xf32>
    %390 = math.tanh %389 : vector<8x128xf32>
    %391 = arith.mulf %384, %390 : vector<8x128xf32>
    %392 = arith.truncf %391 : vector<8x128xf32> to vector<8x128xbf16>
    %c5_i32 = arith.constant 5 : i32
    %393 = vector.broadcast %c5_i32 : i32 to vector<8x1xi32>
    %394 = arith.cmpi eq, %243, %393 : vector<8x1xi32>
    %395 = vector.shape_cast %394 : vector<8x1xi1> to vector<8x1xi1>
    %396 = vector.broadcast %395 : vector<8x1xi1> to vector<8x128xi1>
    %397 = arith.select %396, %391, %372 : vector<8x128xi1>, vector<8x128xf32>
    %c48_155 = arith.constant 48 : index
    %c0_156 = arith.constant 0 : index
    %398 = vector.load %arg13[%c48_155, %c0_156] : memref<64x512xf32, #tpu.memory_space<vmem>>, vector<8x512xf32>
    %cst_157 = arith.constant dense<0.000000e+00> : vector<8x512xf32>
    %399 = tpu.matmul %392, %242, %cst_157 {dimension_numbers = #tpu.dot_dimension_numbers<[1], [0], [0], [1], [0, 0, 1, 1], [], []>} : vector<8x128xbf16>, vector<128x512xbf16>, vector<8x512xf32> -> vector<8x512xf32>
    %400 = arith.addf %398, %399 : vector<8x512xf32>
    %401 = vector.extract_strided_slice %400 {offsets = [0, 0], sizes = [8, 384], strides = [1, 1]} : vector<8x512xf32> to vector<8x384xf32>
    %402 = arith.negf %401 : vector<8x384xf32>
    %403 = math.exp %402 : vector<8x384xf32>
    %cst_158 = arith.constant 1.000000e+00 : f32
    %404 = vector.broadcast %cst_158 : f32 to vector<8x384xf32>
    %405 = arith.addf %404, %403 : vector<8x384xf32>
    %406 = arith.divf %404, %405 : vector<8x384xf32>
    %407 = vector.extract_strided_slice %406 {offsets = [0, 0], sizes = [8, 128], strides = [1, 1]} : vector<8x384xf32> to vector<8x128xf32>
    %408 = vector.extract_strided_slice %406 {offsets = [0, 128], sizes = [8, 128], strides = [1, 1]} : vector<8x384xf32> to vector<8x128xf32>
    %409 = vector.extract_strided_slice %406 {offsets = [0, 256], sizes = [8, 128], strides = [1, 1]} : vector<8x384xf32> to vector<8x128xf32>
    %410 = vector.extract_strided_slice %400 {offsets = [0, 384], sizes = [8, 128], strides = [1, 1]} : vector<8x512xf32> to vector<8x128xf32>
    %411 = math.tanh %410 : vector<8x128xf32>
    %412 = arith.mulf %408, %389 : vector<8x128xf32>
    %413 = arith.mulf %407, %411 : vector<8x128xf32>
    %414 = arith.addf %412, %413 : vector<8x128xf32>
    %415 = math.tanh %414 : vector<8x128xf32>
    %416 = arith.mulf %409, %415 : vector<8x128xf32>
    %417 = arith.truncf %416 : vector<8x128xf32> to vector<8x128xbf16>
    %c6_i32 = arith.constant 6 : i32
    %418 = vector.broadcast %c6_i32 : i32 to vector<8x1xi32>
    %419 = arith.cmpi eq, %243, %418 : vector<8x1xi32>
    %420 = vector.shape_cast %419 : vector<8x1xi1> to vector<8x1xi1>
    %421 = vector.broadcast %420 : vector<8x1xi1> to vector<8x128xi1>
    %422 = arith.select %421, %416, %397 : vector<8x128xi1>, vector<8x128xf32>
    %c56_159 = arith.constant 56 : index
    %c0_160 = arith.constant 0 : index
    %423 = vector.load %arg13[%c56_159, %c0_160] : memref<64x512xf32, #tpu.memory_space<vmem>>, vector<8x512xf32>
    %cst_161 = arith.constant dense<0.000000e+00> : vector<8x512xf32>
    %424 = tpu.matmul %417, %242, %cst_161 {dimension_numbers = #tpu.dot_dimension_numbers<[1], [0], [0], [1], [0, 0, 1, 1], [], []>} : vector<8x128xbf16>, vector<128x512xbf16>, vector<8x512xf32> -> vector<8x512xf32>
    %425 = arith.addf %423, %424 : vector<8x512xf32>
    %426 = vector.extract_strided_slice %425 {offsets = [0, 0], sizes = [8, 384], strides = [1, 1]} : vector<8x512xf32> to vector<8x384xf32>
    %427 = arith.negf %426 : vector<8x384xf32>
    %428 = math.exp %427 : vector<8x384xf32>
    %cst_162 = arith.constant 1.000000e+00 : f32
    %429 = vector.broadcast %cst_162 : f32 to vector<8x384xf32>
    %430 = arith.addf %429, %428 : vector<8x384xf32>
    %431 = arith.divf %429, %430 : vector<8x384xf32>
    %432 = vector.extract_strided_slice %431 {offsets = [0, 0], sizes = [8, 128], strides = [1, 1]} : vector<8x384xf32> to vector<8x128xf32>
    %433 = vector.extract_strided_slice %431 {offsets = [0, 128], sizes = [8, 128], strides = [1, 1]} : vector<8x384xf32> to vector<8x128xf32>
    %434 = vector.extract_strided_slice %431 {offsets = [0, 256], sizes = [8, 128], strides = [1, 1]} : vector<8x384xf32> to vector<8x128xf32>
    %435 = vector.extract_strided_slice %425 {offsets = [0, 384], sizes = [8, 128], strides = [1, 1]} : vector<8x512xf32> to vector<8x128xf32>
    %436 = math.tanh %435 : vector<8x128xf32>
    %437 = arith.mulf %433, %414 : vector<8x128xf32>
    %438 = arith.mulf %432, %436 : vector<8x128xf32>
    %439 = arith.addf %437, %438 : vector<8x128xf32>
    %440 = math.tanh %439 : vector<8x128xf32>
    %441 = arith.mulf %434, %440 : vector<8x128xf32>
    %c7_i32 = arith.constant 7 : i32
    %442 = vector.broadcast %c7_i32 : i32 to vector<8x1xi32>
    %443 = arith.cmpi eq, %243, %442 : vector<8x1xi32>
    %444 = vector.shape_cast %443 : vector<8x1xi1> to vector<8x1xi1>
    %445 = vector.broadcast %444 : vector<8x1xi1> to vector<8x128xi1>
    %446 = arith.select %445, %441, %422 : vector<8x128xi1>, vector<8x128xf32>
    %447 = tpu.iota {dimensions = array<i32: 1>} : vector<8x128xi32>
    %c64_i32 = arith.constant 64 : i32
    %448 = vector.broadcast %c64_i32 : i32 to vector<8x128xi32>
    %449 = arith.cmpi slt, %447, %448 : vector<8x128xi32>
    %450 = arith.select %449, %446, %441 : vector<8x128xi1>, vector<8x128xf32>
    %451 = arith.truncf %450 : vector<8x128xf32> to vector<8x128xbf16>
    %c0_163 = arith.constant 0 : index
    %c0_164 = arith.constant 0 : index
    %452 = vector.load %arg9[%c0_163, %c0_164] : memref<128x10xbf16, #tpu.memory_space<vmem>>, vector<128x10xbf16>
    %cst_165 = arith.constant dense<0.000000e+00> : vector<8x10xf32>
    %453 = tpu.matmul %451, %452, %cst_165 {dimension_numbers = #tpu.dot_dimension_numbers<[1], [0], [0], [1], [0, 0, 1, 1], [], []>} : vector<8x128xbf16>, vector<128x10xbf16>, vector<8x10xf32> -> vector<8x10xf32>
    %c0_166 = arith.constant 0 : index
    %c0_167 = arith.constant 0 : index
    %454 = vector.load %arg10[%c0_166, %c0_167] : memref<1x10xf32, #tpu.memory_space<vmem>>, vector<1x10xf32>
    %455 = vector.broadcast %454 : vector<1x10xf32> to vector<8x10xf32>
    %456 = arith.addf %453, %455 : vector<8x10xf32>
    %c0_168 = arith.constant 0 : index
    %c0_169 = arith.constant 0 : index
    %457 = vector.load %arg11[%c0_168, %c0_169] : memref<8x10xf32, #tpu.memory_space<vmem>>, vector<8x10xf32>
    tpu.vector_store %arg11[%c0_168, %c0_169], %456 {strides = array<i32>} : memref<8x10xf32, #tpu.memory_space<vmem>>, vector<8x10xf32>,
    return
  }
}

</mosaic_0001>

<bundles_post_ra>
// kernel: basic_lstm_forward.1
= control target key start
LH: loop header
LB: loop body
LE: loop exit
PB: predicated region body
PF: predicated region fallthrough
CT: control target
= control target key end

     0   :  { %16 = vsyncpa [#allocation5], 0  ;;  %s8590_s0 = inlined_call_operand.vmem [shape: f32[64,32], index: 0, kind: input, shape index: {}]   ;;  %s8591_s1 = inlined_call_operand.vmem [shape: s32[8,1], index: 1, kind: input, shape index: {}]   ;;  %s8592_s2 = inlined_call_operand.vmem [shape: bf16[32,512], index: 2, kind: input, shape index: {}]   ;;  %s8593_s3 = inlined_call_operand.vmem [shape: f32[1,512], index: 3, kind: input, shape index: {}]   ;;  %s8594_s4 = inlined_call_operand.vmem [shape: bf16[128,512], index: 4, kind: input, shape index: {}]   ;;  %s8595_s5 = inlined_call_operand.vmem [shape: bf16[128,512], index: 5, kind: input, shape index: {}]   ;;  %s8596_s6 = inlined_call_operand.hbm [shape: bf16[128,512], index: 6, kind: input, shape index: {}]   ;;  %s8597_s7 = inlined_call_operand.vmem [shape: f32[1,512], index: 7, kind: input, shape index: {}]   ;;  %s8598_s8 = inlined_call_operand.hbm [shape: bf16[128,512], index: 8, kind: input, shape index: {}]   ;;  %s8599_s9 = inlined_call_operand.vmem [shape: bf16[128,10], index: 9, kind: input, shape index: {}]   ;;  %s8600_s10 = inlined_call_operand.vmem [shape: f32[1,10], index: 10, kind: input, shape index: {}]   ;;  %s8601_s11 = inlined_call_operand.vmem [shape: f32[8,10], index: 11, kind: output, shape index: {}]  }
   0x1   :  { %17 = vsyncpa [#allocation7], 0  ;;  %s5662_s17 = smov [#allocation4]  }
   0x2   :  { %s35_s18 = sshll.u32 %s5662_s17, 4  ;;  %s36_s18 = int_to_ptr.vmem [resolvable:$true] %s35_s18 }
   0x3   :  { %s5626_s19 = scalar_lea.vmem %s36_s18, 4096  ;;  %p5631_p1 = scmp.lt.s32.totalorder %s36_s18, %s36_s18 }
   0x4   :  { %p5627_p0 = scmp.ne.s32.totalorder %s36_s18, %s5626_s19  ;;  %p5632_p2 = scmp.lt.s32.totalorder %s5626_s19, %s5626_s19 }
   0x6   :  { %p5633_p3 = por %p5632_p2, %p5631_p1 }
   0x8   :  { %p5634_p4 = pnand %p5633_p3, %p5627_p0 }
   0xa   :  { %5637 = shalt.err (!%p5634_p4)
}
   0xb   :  { %s5663_s20 = smov 256   ;;  %s5664_s21 = smov 16  }
   0xc   :  { %41 = dma.hbm_to_vmem [thread:$0]  %s8596_s6, 4096, %s36_s18, [#allocation5], %s5663_s20, %s5663_s20, %s5664_s21  }
   0xd   :  { %s5665_s24 = smov [#allocation6]  }
   0xe   :  { %s49_s25 = sshll.u32 %s5665_s24, 4  ;;  %s50_s25 = int_to_ptr.vmem [resolvable:$true] %s49_s25 }
   0xf   :  { %s5646_s26 = scalar_lea.vmem %s50_s25, 4096  ;;  %p5651_p6 = scmp.lt.s32.totalorder %s50_s25, %s50_s25 }
  0x10   :  { %p5647_p5 = scmp.ne.s32.totalorder %s50_s25, %s5646_s26  ;;  %p5652_p7 = scmp.lt.s32.totalorder %s5646_s26, %s5646_s26 }
  0x12   :  { %p5653_p8 = por %p5652_p7, %p5651_p6 }
  0x14   :  { %p5654_p9 = pnand %p5653_p8, %p5647_p5 }
  0x16   :  { %5657 = shalt.err (!%p5654_p9)
}
  0x17   :  { %55 = dma.hbm_to_vmem [thread:$0]  %s8598_s8, 4096, %s50_s25, [#allocation7], %s5663_s20, %s5663_s20, %s5664_s21  }
  0x18   :  { %5658 = dma.done.wait [#allocation5], 4096  }
  0x19   :  { %5659 = vsyncadd [#allocation5], 4294963200 }
  0x1a   :  { %5660 = dma.done.wait [#allocation7], 4096  }
  0x1b   :  { %5661 = vsyncadd [#allocation7], 4294963200  ;;  %v8602_v0 = vmov 0   ;;  %v4925_v1 = vld [vmem:[%s8592_s2 + $0x24] ss:$16 sps:$4 sm:$0xff]   ;;  %v68_v10 = vld [vmem:[%s8590_s0 + $0x8] sm:$0xff] }
  0x1c   :  { %194 = vmatprep.mubr.bf16.mxu0 %v8602_v0  ;;  %267 = vmatprep.mubr.bf16.mxu1 %v8602_v0  ;;  %v4927_v2 = vld [vmem:[%s8592_s2 + $0x2c] ss:$16 sps:$4 sm:$0xff]   ;;  %v4929_v3 = vld [vmem:[%s8592_s2 + $0x20] ss:$16 sps:$4 sm:$0xff]   ;;  %v4930_v4 = vld [vmem:[%s8592_s2 + $0x28] ss:$16 sps:$4 sm:$0xff]  }
  0x1d   :  { %4923 = vset.pattern.permute.xlu0 %v8602_v0  ;;  %4924 = vset.pattern.permute.xlu1 %v8602_v0  ;;  %v4931_v5 = vld [vmem:[%s8592_s2 + $0x4] ss:$16 sps:$4 sm:$0xff]   ;;  %v4933_v6 = vld [vmem:[%s8592_s2 + $0xc] ss:$16 sps:$4 sm:$0xff]   ;;  %v4935_v7 = vld [vmem:[%s8592_s2] ss:$16 sps:$4 sm:$0xff]  }
  0x1e   :  { %174 = vmatprep.subr.bf16.mxu0 %v4925_v1  ;;  %247 = vmatprep.subr.bf16.mxu1 %v4927_v2  ;;  %v4936_v8 = vld [vmem:[%s8592_s2 + $0x8] ss:$16 sps:$4 sm:$0xff]   ;;  %v67_v9 = vld [vmem:[%s8590_s0] sm:$0xff]  ;;  %v5777_v13 = vld [vmem:[%s8594_s4 + $0xec] ss:$16 sps:$4 sm:$0xff]   ;;  %vm149_vm0 = vcmask 261120  }
  0x1f   :  { %175 = vmatpush1.bf16.msra.mxu0 %v4929_v3  ;;  %248 = vmatpush1.bf16.msra.mxu1 %v4930_v4  ;;  %v5772_v11 = vld [vmem:[%s8594_s4 + $0xe4] ss:$16 sps:$4 sm:$0xff]   ;;  %v75_v12 = vpack.c.bf16 %v68_v10, %v67_v9  ;;  %v5782_v14 = vld [vmem:[%s8594_s4 + $0xe0] ss:$16 sps:$4 sm:$0xff]   ;;  %v5787_v15 = vld [vmem:[%s8594_s4 + $0xe8] ss:$16 sps:$4 sm:$0xff]  }
  0x20   :  { %176 = vmatprep.subr.bf16.mxu0 %v4931_v5  ;;  %249 = vmatprep.subr.bf16.mxu1 %v4933_v6  ;;  %v5794_v16 = vld [vmem:[%s8594_s4 + $0xc4] ss:$16 sps:$4 sm:$0xff]   ;;  %v5799_v17 = vld [vmem:[%s8594_s4 + $0xcc] ss:$16 sps:$4 sm:$0xff]   ;;  %v5804_v18 = vld [vmem:[%s8594_s4 + $0xc0] ss:$16 sps:$4 sm:$0xff]  }
  0x21   :  { %v5811_v19 = vld [vmem:[%s8594_s4 + $0xc8] ss:$16 sps:$4 sm:$0xff]   ;;  %v69_v20 = vld [vmem:[%s8590_s0 + $0x10] sm:$0xff]  ;;  %v5831_v23 = vld [vmem:[%s8594_s4 + $0xac] ss:$16 sps:$4 sm:$0xff]  }
  0x22   :  { %v70_v21 = vld [vmem:[%s8590_s0 + $0x18] sm:$0xff]  ;;  %v5824_v22 = vld [vmem:[%s8594_s4 + $0xa4] ss:$16 sps:$4 sm:$0xff]   ;;  %v5840_v25 = vld [vmem:[%s8594_s4 + $0xa0] ss:$16 sps:$4 sm:$0xff]  }
  0x23   :  { %177 = vmatpush1.bf16.msra.mxu0 %v4935_v7  ;;  %250 = vmatpush1.bf16.msra.mxu1 %v4936_v8  ;;  %v76_v24 = vpack.c.bf16 %v70_v21, %v69_v20  ;;  %v5845_v26 = vld [vmem:[%s8594_s4 + $0xa8] ss:$16 sps:$4 sm:$0xff]   ;;  %v5852_v27 = vld [vmem:[%s8594_s4 + $0x84] ss:$16 sps:$4 sm:$0xff]   ;;  %v5857_v28 = vld [vmem:[%s8594_s4 + $0x8c] ss:$16 sps:$4 sm:$0xff]  }
  0x24   :  { %654 = vmatprep.subr.bf16.mxu0 %v5772_v11  ;;  %695 = vmatprep.subr.bf16.mxu1 %v5777_v13  ;;  %v5862_v29 = vld [vmem:[%s8594_s4 + $0x80] ss:$16 sps:$4 sm:$0xff]   ;;  %v5867_v30 = vld [vmem:[%s8594_s4 + $0x88] ss:$16 sps:$4 sm:$0xff]   ;;  %v5882_v33 = vld [vmem:[%s8594_s4 + $0x64] ss:$16 sps:$4 sm:$0xff]  }
  0x25   :  { %v71_v31 = vld [vmem:[%s8590_s0 + $0x20] sm:$0xff]  ;;  %v72_v32 = vld [vmem:[%s8590_s0 + $0x28] sm:$0xff]  ;;  %v73_v42 = vld [vmem:[%s8590_s0 + $0x30] sm:$0xff] }
  0x26   :  { %4694 = vmatmul.mubr.msk.bf16.vlgmr.msra.gmra.mxu0 %vm149_vm0, %v75_v12  ;;  %4698 = vmatmul.mubr.msk.bf16.vlgmr.msra.gmra.mxu1 %vm149_vm0, %v75_v12  ;;  %v5889_v34 = vld [vmem:[%s8594_s4 + $0x6c] ss:$16 sps:$4 sm:$0xff]   ;;  %v77_v35 = vpack.c.bf16 %v72_v32, %v71_v31  ;;  %v5896_v36 = vld [vmem:[%s8594_s4 + $0x60] ss:$16 sps:$4 sm:$0xff]   ;;  %v5901_v37 = vld [vmem:[%s8594_s4 + $0x68] ss:$16 sps:$4 sm:$0xff]  }
  0x27   :  { %655 = vmatpush1.bf16.msra.mxu0 %v5782_v14  ;;  %696 = vmatpush1.bf16.msra.mxu1 %v5787_v15  ;;  %v5908_v38 = vld [vmem:[%s8594_s4 + $0x44] ss:$16 sps:$4 sm:$0xff]   ;;  %v5915_v39 = vld [vmem:[%s8594_s4 + $0x4c] ss:$16 sps:$4 sm:$0xff]   ;;  %v5920_v40 = vld [vmem:[%s8594_s4 + $0x40] ss:$16 sps:$4 sm:$0xff]  }
  0x28   :  { %656 = vmatprep.subr.bf16.mxu0 %v5794_v16  ;;  %697 = vmatprep.subr.bf16.mxu1 %v5799_v17  ;;  %v5927_v41 = vld [vmem:[%s8594_s4 + $0x48] ss:$16 sps:$4 sm:$0xff]   ;;  %v5942_v44 = vld [vmem:[%s8594_s4 + $0x24] ss:$16 sps:$4 sm:$0xff]   ;;  %v5947_v45 = vld [vmem:[%s8594_s4 + $0x2c] ss:$16 sps:$4 sm:$0xff]  }
  0x29   :  { %204 = vmatprep.mubr.bf16.mxu0 %v8602_v0  ;;  %277 = vmatprep.mubr.bf16.mxu1 %v8602_v0  ;;  %v74_v43 = vld [vmem:[%s8590_s0 + $0x38] sm:$0xff]  ;;  %v5954_v46 = vld [vmem:[%s8594_s4 + $0x20] ss:$16 sps:$4 sm:$0xff]   ;;  %v5964_v49 = vld [vmem:[%s8594_s4 + $0x4] ss:$16 sps:$4 sm:$0xff]  }
  0x2a   :  { %v5959_v47 = vld [vmem:[%s8594_s4 + $0x28] ss:$16 sps:$4 sm:$0xff]   ;;  %v78_v48 = vpack.c.bf16 %v74_v43, %v73_v42  ;;  %v5969_v50 = vld [vmem:[%s8594_s4 + $0xc] ss:$16 sps:$4 sm:$0xff]   ;;  %v5978_v51 = vld [vmem:[%s8594_s4] ss:$16 sps:$4 sm:$0xff]  }
  0x2b   :  { %657 = vmatpush1.bf16.msra.mxu0 %v5804_v18  ;;  %698 = vmatpush1.bf16.msra.mxu1 %v5811_v19  ;;  %v5983_v52 = vld [vmem:[%s8594_s4 + $0x8] ss:$16 sps:$4 sm:$0xff]   ;;  %v6002_v53 = vld [vmem:[%s8595_s5 + $0xe4] ss:$16 sps:$4 sm:$0xff]   ;;  %v6007_v54 = vld [vmem:[%s8595_s5 + $0xec] ss:$16 sps:$4 sm:$0xff]  }
  0x2c   :  { %658 = vmatprep.subr.bf16.mxu0 %v5824_v22  ;;  %699 = vmatprep.subr.bf16.mxu1 %v5831_v23  ;;  %v6012_v55 = vld [vmem:[%s8595_s5 + $0xe0] ss:$16 sps:$4 sm:$0xff]   ;;  %v6017_v56 = vld [vmem:[%s8595_s5 + $0xe8] ss:$16 sps:$4 sm:$0xff]   ;;  %v6026_v57 = vld [vmem:[%s8595_s5 + $0xc4] ss:$16 sps:$4 sm:$0xff]  }
  0x2d   :  { %v6031_v58 = vld [vmem:[%s8595_s5 + $0xcc] ss:$16 sps:$4 sm:$0xff]   ;;  %v6036_v59 = vld [vmem:[%s8595_s5 + $0xc0] ss:$16 sps:$4 sm:$0xff]   ;;  %v6041_v60 = vld [vmem:[%s8595_s5 + $0xc8] ss:$16 sps:$4 sm:$0xff]  }
  0x2e   :  { %4695 = vmatmul.mubr.msk.bf16.gmra.mxu0 %vm149_vm0, %v76_v24  ;;  %4699 = vmatmul.mubr.msk.bf16.gmra.mxu1 %vm149_vm0, %v76_v24  ;;  %v6050_v61 = vld [vmem:[%s8595_s5 + $0xa4] ss:$16 sps:$4 sm:$0xff]   ;;  %v6055_v62 = vld [vmem:[%s8595_s5 + $0xac] ss:$16 sps:$4 sm:$0xff]   ;;  %v6060_v63 = vld [vmem:[%s8595_s5 + $0xa0] ss:$16 sps:$4 sm:$0xff]  }
  0x2f   :  { %659 = vmatpush1.bf16.msra.mxu0 %v5840_v25  ;;  %700 = vmatpush1.bf16.msra.mxu1 %v5845_v26  ;;  %8857 = vst [vmem:[#allocation10_spill] sm:$0xff] %v6050_v61  ;;  %8858 = vst [vmem:[#allocation11_spill] sm:$0xff] %v6055_v62  ;;  %v6065_v1 = vld [vmem:[%s8595_s5 + $0xa8] ss:$16 sps:$4 sm:$0xff]   ;;  %v6074_v2 = vld [vmem:[%s8595_s5 + $0x84] ss:$16 sps:$4 sm:$0xff]  }
  0x30   :  { %660 = vmatprep.subr.bf16.mxu0 %v5852_v27  ;;  %701 = vmatprep.subr.bf16.mxu1 %v5857_v28  ;;  %8859 = vst [vmem:[#allocation12_spill] sm:$0xff] %v6060_v63  ;;  %8860 = vst [vmem:[#allocation13_spill] sm:$0xff] %v6065_v1  ;;  %v6079_v3 = vld [vmem:[%s8595_s5 + $0x8c] ss:$16 sps:$4 sm:$0xff]   ;;  %v6084_v4 = vld [vmem:[%s8595_s5 + $0x80] ss:$16 sps:$4 sm:$0xff]  }
  0x31   :  { %214 = vmatprep.mubr.bf16.mxu0 %v8602_v0  ;;  %287 = vmatprep.mubr.bf16.mxu1 %v8602_v0  ;;  %8861 = vst [vmem:[#allocation14_spill] sm:$0xff] %v6074_v2  ;;  %8862 = vst [vmem:[#allocation15_spill] sm:$0xff] %v6079_v3  ;;  %v6089_v5 = vld [vmem:[%s8595_s5 + $0x88] ss:$16 sps:$4 sm:$0xff]   ;;  %v6096_v6 = vld [vmem:[%s8595_s5 + $0x64] ss:$16 sps:$4 sm:$0xff]  }
  0x32   :  { %8863 = vst [vmem:[#allocation16_spill] sm:$0xff] %v6084_v4  ;;  %8864 = vst [vmem:[#allocation17_spill] sm:$0xff] %v6089_v5  ;;  %v6101_v7 = vld [vmem:[%s8595_s5 + $0x6c] ss:$16 sps:$4 sm:$0xff]   ;;  %v6108_v8 = vld [vmem:[%s8595_s5 + $0x60] ss:$16 sps:$4 sm:$0xff]  }
  0x33   :  { %661 = vmatpush1.bf16.msra.mxu0 %v5862_v29  ;;  %702 = vmatpush1.bf16.msra.mxu1 %v5867_v30  ;;  %8865 = vst [vmem:[#allocation18_spill] sm:$0xff] %v6096_v6  ;;  %8866 = vst [vmem:[#allocation19_spill] sm:$0xff] %v6101_v7  ;;  %v6113_v9 = vld [vmem:[%s8595_s5 + $0x68] ss:$16 sps:$4 sm:$0xff]   ;;  %v6120_v10 = vld [vmem:[%s8595_s5 + $0x44] ss:$16 sps:$4 sm:$0xff]  }
  0x34   :  { %662 = vmatprep.subr.bf16.mxu0 %v5882_v33  ;;  %703 = vmatprep.subr.bf16.mxu1 %v5889_v34  ;;  %8867 = vst [vmem:[#allocation20_spill] sm:$0xff] %v6108_v8  ;;  %8868 = vst [vmem:[#allocation21_spill] sm:$0xff] %v6113_v9  ;;  %v6125_v12 = vld [vmem:[%s8595_s5 + $0x4c] ss:$16 sps:$4 sm:$0xff]   ;;  %v6132_v20 = vld [vmem:[%s8595_s5 + $0x40] ss:$16 sps:$4 sm:$0xff]  }
  0x35   :  { %8869 = vst [vmem:[#allocation22_spill] sm:$0xff] %v6120_v10  ;;  %8870 = vst [vmem:[#allocation23_spill] sm:$0xff] %v6125_v12  ;;  %v6137_v21 = vld [vmem:[%s8595_s5 + $0x48] ss:$16 sps:$4 sm:$0xff]   ;;  %v6144_v24 = vld [vmem:[%s8595_s5 + $0x24] ss:$16 sps:$4 sm:$0xff]  }
  0x36   :  { %4696 = vmatmul.mubr.msk.bf16.gmra.mxu0 %vm149_vm0, %v77_v35  ;;  %4700 = vmatmul.mubr.msk.bf16.gmra.mxu1 %vm149_vm0, %v77_v35  ;;  %8871 = vst [vmem:[#allocation24_spill] sm:$0xff] %v6132_v20  ;;  %8872 = vst [vmem:[#allocation25_spill] sm:$0xff] %v6137_v21  ;;  %v6149_v31 = vld [vmem:[%s8595_s5 + $0x2c] ss:$16 sps:$4 sm:$0xff]   ;;  %v6156_v32 = vld [vmem:[%s8595_s5 + $0x20] ss:$16 sps:$4 sm:$0xff]  }
  0x37   :  { %663 = vmatpush1.bf16.msra.mxu0 %v5896_v36  ;;  %704 = vmatpush1.bf16.msra.mxu1 %v5901_v37  ;;  %8873 = vst [vmem:[#allocation26_spill] sm:$0xff] %v6144_v24  ;;  %8874 = vst [vmem:[#allocation27_spill] sm:$0xff] %v6149_v31  ;;  %v6161_v35 = vld [vmem:[%s8595_s5 + $0x28] ss:$16 sps:$4 sm:$0xff]   ;;  %v6168_v42 = vld [vmem:[%s8595_s5 + $0x4] ss:$16 sps:$4 sm:$0xff]  }
  0x38   :  { %664 = vmatprep.subr.bf16.mxu0 %v5908_v38  ;;  %705 = vmatprep.subr.bf16.mxu1 %v5915_v39  ;;  %8875 = vst [vmem:[#allocation28_spill] sm:$0xff] %v6156_v32  ;;  %8876 = vst [vmem:[#allocation29_spill] sm:$0xff] %v6161_v35  ;;  %v6173_v43 = vld [vmem:[%s8595_s5 + $0xc] ss:$16 sps:$4 sm:$0xff]  }
  0x39   :  { %224 = vmatprep.mubr.bf16.mxu0 %v8602_v0  ;;  %297 = vmatprep.mubr.bf16.mxu1 %v8602_v0  ;;  %8877 = vst [vmem:[#allocation30_spill] sm:$0xff] %v6168_v42  ;;  %8878 = vst [vmem:[#allocation31_spill] sm:$0xff] %v6173_v43 }
  0x3b   :  { %665 = vmatpush1.bf16.msra.mxu0 %v5920_v40  ;;  %706 = vmatpush1.bf16.msra.mxu1 %v5927_v41 }
  0x3c   :  { %666 = vmatprep.subr.bf16.mxu0 %v5942_v44  ;;  %707 = vmatprep.subr.bf16.mxu1 %v5947_v45 }
  0x3e   :  { %4697 = vmatmul.mubr.msk.bf16.gmra.mxu0 %vm149_vm0, %v78_v48  ;;  %4701 = vmatmul.mubr.msk.bf16.gmra.mxu1 %vm149_vm0, %v78_v48  ;;  %v6180_v48 = vld [vmem:[%s8595_s5] ss:$16 sps:$4 sm:$0xff]   ;;  %vm5668_vm0 = vmmov 0  }
  0x3f   :  { %667 = vmatpush1.bf16.msra.mxu0 %v5954_v46  ;;  %708 = vmatpush1.bf16.msra.mxu1 %v5959_v47  ;;  %8879 = vst [vmem:[#allocation32_spill] sm:$0xff] %v6180_v48 }
  0x40   :  { %668 = vmatprep.subr.bf16.mxu0 %v5964_v49  ;;  %709 = vmatprep.subr.bf16.mxu1 %v5969_v50 }
  0x41   :  { %686 = vmatprep.mubr.bf16.mxu0 %v8602_v0  ;;  %727 = vmatprep.mubr.bf16.mxu1 %v8602_v0 }
  0x43   :  { %669 = vmatpush1.bf16.msra.mxu0 %v5978_v51  ;;  %710 = vmatpush1.bf16.msra.mxu1 %v5983_v52 }
  0x44   :  { %929 = vmatprep.subr.bf16.mxu0 %v6002_v53  ;;  %970 = vmatprep.subr.bf16.mxu1 %v6007_v54 }
  0x46   :  { %687 = vmatmul.mubr.bf16.vlgmr.msra.gmra.mxu0 %v8602_v0  ;;  %728 = vmatmul.mubr.bf16.vlgmr.msra.gmra.mxu1 %v8602_v0 }
  0x47   :  { %961 = vmatprep.mubr.bf16.mxu0 %v8602_v0  ;;  %1002 = vmatprep.mubr.bf16.mxu1 %v8602_v0  ;;  %v6185_v0 = vld [vmem:[%s8595_s5 + $0x8] ss:$16 sps:$4 sm:$0xff]  }
  0x48   :  { %930 = vmatpush1.bf16.msra.mxu0 %v6012_v55  ;;  %971 = vmatpush1.bf16.msra.mxu1 %v6017_v56  ;;  %8880 = vst [vmem:[#allocation33_spill] sm:$0xff] %v6185_v0 }
  0x49   :  { %931 = vmatprep.subr.bf16.mxu0 %v6026_v57  ;;  %972 = vmatprep.subr.bf16.mxu1 %v6031_v58 }
  0x4c   :  { %932 = vmatpush1.bf16.msra.mxu0 %v6036_v59  ;;  %973 = vmatpush1.bf16.msra.mxu1 %v6041_v60 }
  0x4d   :  { %933 = vmatprep.subr.bf16.mxu0 %v6050_v61  ;;  %974 = vmatprep.subr.bf16.mxu1 %v6055_v62 }
  0x50   :  { %934 = vmatpush1.bf16.msra.mxu0 %v6060_v63  ;;  %975 = vmatpush1.bf16.msra.mxu1 %v6065_v1 }
  0x51   :  { %935 = vmatprep.subr.bf16.mxu0 %v6074_v2  ;;  %976 = vmatprep.subr.bf16.mxu1 %v6079_v3 }
  0x54   :  { %936 = vmatpush1.bf16.msra.mxu0 %v6084_v4  ;;  %977 = vmatpush1.bf16.msra.mxu1 %v6089_v5 }
  0x55   :  { %937 = vmatprep.subr.bf16.mxu0 %v6096_v6  ;;  %978 = vmatprep.subr.bf16.mxu1 %v6101_v7 }
  0x58   :  { %938 = vmatpush1.bf16.msra.mxu0 %v6108_v8  ;;  %979 = vmatpush1.bf16.msra.mxu1 %v6113_v9 }
  0x59   :  { %939 = vmatprep.subr.bf16.mxu0 %v6120_v10  ;;  %980 = vmatprep.subr.bf16.mxu1 %v6125_v12 }
  0x5c   :  { %940 = vmatpush1.bf16.msra.mxu0 %v6132_v20  ;;  %981 = vmatpush1.bf16.msra.mxu1 %v6137_v21  ;;  %v87_v21 = vld [vmem:[%s8593_s3] sm:$0xf] }
  0x5d   :  { %941 = vmatprep.subr.bf16.mxu0 %v6144_v24  ;;  %982 = vmatprep.subr.bf16.mxu1 %v6149_v31  ;;  %v6189_v31 = vld [vmem:[#allocation4 + $0xe4] ss:$16 sps:$4 sm:$0xff]   ;;  %v6191_v24 = vld [vmem:[#allocation4 + $0xec] ss:$16 sps:$4 sm:$0xff]  }
  0x5e   :  { %8881 = vst [vmem:[#allocation34_spill] sm:$0xff] %v6189_v31  ;;  %8882 = vst [vmem:[#allocation35_spill] sm:$0xff] %v6191_v24 }
  0x60   :  { %942 = vmatpush1.bf16.msra.mxu0 %v6156_v32  ;;  %983 = vmatpush1.bf16.msra.mxu1 %v6161_v35  ;;  %v8628_v35 = vlaneseq }
  0x61   :  { %943 = vmatprep.subr.bf16.mxu0 %v6168_v42  ;;  %984 = vmatprep.subr.bf16.mxu1 %v6173_v43 }
  0x62   :  { %v6198_v32 = vshrl.u32 %v8628_v35, 7 }
  0x64   :  { %944 = vmatpush1.bf16.msra.mxu0 %v6180_v48  ;;  %985 = vmatpush1.bf16.msra.mxu1 %v6185_v0  ;;  %8883 = vst [vmem:[#allocation36_spill] sm:$0xff] %v6198_v32  ;;  %v8643_v42 = vsub.s32 2, %v6198_v32  ;;  %v8648_v43 = vsub.s32 0, %v6198_v32  ;;  %v8653_v9 = vsub.s32 1, %v6198_v32  ;;  %v8656_v8 = vsub.s32 3, %v6198_v32 }
  0x65   :  { %1183 = vmatprep.subr.bf16.mxu0 %v6189_v31  ;;  %1224 = vmatprep.subr.bf16.mxu1 %v6191_v24 }
  0x66   :  { %v6209_v31 = vrot.slane %v87_v21, %v8643_v42  ;;  %v92_v35 = vrot.slane %v87_v21, %v8648_v43  ;;  %v6228_v43 = vrot.slane %v87_v21, %v8653_v9  ;;  %v6232_v2 = vrot.slane %v87_v21, %v8656_v8 }
  0x68   :  { %8888 = vst [vmem:[#allocation41_spill] sm:$0xff] %v6228_v43  ;;  %8889 = vst [vmem:[#allocation42_spill] sm:$0xff] %v6232_v2 }
  0xe6   :  { %v196_v20 = vpop.f32.mrf.mxu0  ;;  %v6205_v48 = vpop.f32.mrf.mxu1 }
  0xe8   :  { %v198_v24 = vpop.f32.mrf.mxu0  ;;  %v6211_v0 = vpop.f32.mrf.mxu1 }
  0xea   :  { %v200_v12 = vpop.f32.mrf.mxu0  ;;  %v273_v10 = vpop.f32.mrf.mxu1 }
  0xeb   :  { %v6217_v7 = vadd.f32 %v200_v12, %v92_v35  ;;  %v6220_v6 = vadd.f32 %v273_v10, %v6209_v31 }
  0xec   :  { %v6222_v5 = vpop.f32.mrf.mxu0  ;;  %v6224_v42 = vpop.f32.mrf.mxu1 }
  0xed   :  { %8884 = vst [vmem:[#allocation37_spill] sm:$0xff] %v6217_v7  ;;  %8885 = vst [vmem:[#allocation38_spill] sm:$0xff] %v6220_v6 }
  0xee   :  { %8886 = vst [vmem:[#allocation39_spill] sm:$0xff] %v6222_v5  ;;  %8887 = vst [vmem:[#allocation40_spill] sm:$0xff] %v6224_v42  ;;  %v206_v4 = vpop.f32.mrf.mxu0  ;;  %v279_v3 = vpop.f32.mrf.mxu1 }
  0xef   :  { %v6234_v1 = vadd.f32 %v206_v4, %v92_v35  ;;  %v6237_v12 = vadd.f32 %v279_v3, %v6209_v31 }
  0xf0   :  { %v208_v10 = vpop.f32.mrf.mxu0  ;;  %v281_v6 = vpop.f32.mrf.mxu1 }
  0xf1   :  { %8890 = vst [vmem:[#allocation43_spill] sm:$0xff] %v6234_v1  ;;  %8891 = vst [vmem:[#allocation44_spill] sm:$0xff] %v6237_v12  ;;  %v6240_v7 = vadd.f32 %v208_v10, %v6228_v43  ;;  %v6243_v42 = vadd.f32 %v281_v6, %v6232_v2 }
  0xf2   :  { %v210_v5 = vpop.f32.mrf.mxu0  ;;  %v283_v9 = vpop.f32.mrf.mxu1 }
  0xf3   :  { %8892 = vst [vmem:[#allocation45_spill] sm:$0xff] %v6240_v7  ;;  %8893 = vst [vmem:[#allocation46_spill] sm:$0xff] %v6243_v42  ;;  %v6245_v63 = vadd.f32 %v210_v5, %v92_v35  ;;  %v6248_v21 = vadd.f32 %v283_v9, %v6209_v31 }
  0xf4   :  { %v6250_v4 = vpop.f32.mrf.mxu0  ;;  %v6252_v8 = vpop.f32.mrf.mxu1 }
  0xf5   :  { %8894 = vst [vmem:[#allocation47_spill] sm:$0xff] %v6245_v63  ;;  %8895 = vst [vmem:[#allocation48_spill] sm:$0xff] %v6248_v21 }
  0xf6   :  { %8896 = vst [vmem:[#allocation49_spill] sm:$0xff] %v6250_v4  ;;  %8897 = vst [vmem:[#allocation50_spill] sm:$0xff] %v6252_v8  ;;  %v216_v3 = vpop.f32.mrf.mxu0  ;;  %v289_v32 = vpop.f32.mrf.mxu1 }
  0xf7   :  { %v6254_v12 = vadd.f32 %v216_v3, %v92_v35  ;;  %v6257_v10 = vadd.f32 %v289_v32, %v6209_v31 }
  0xf8   :  { %v218_v6 = vpop.f32.mrf.mxu0  ;;  %v291_v42 = vpop.f32.mrf.mxu1 }
  0xf9   :  { %8898 = vst [vmem:[#allocation51_spill] sm:$0xff] %v6254_v12  ;;  %8899 = vst [vmem:[#allocation52_spill] sm:$0xff] %v6257_v10  ;;  %v6260_v7 = vadd.f32 %v218_v6, %v6228_v43  ;;  %v6263_v5 = vadd.f32 %v291_v42, %v6232_v2 }
  0xfa   :  { %v220_v9 = vpop.f32.mrf.mxu0  ;;  %v293_v21 = vpop.f32.mrf.mxu1 }
  0xfb   :  { %8900 = vst [vmem:[#allocation53_spill] sm:$0xff] %v6260_v7  ;;  %8901 = vst [vmem:[#allocation54_spill] sm:$0xff] %v6263_v5  ;;  %v6265_v63 = vadd.f32 %v220_v9, %v92_v35  ;;  %v6268_v8 = vadd.f32 %v293_v21, %v6209_v31 }
  0xfc   :  { %v6270_v3 = vpop.f32.mrf.mxu0  ;;  %v6272_v12 = vpop.f32.mrf.mxu1 }
  0xfd   :  { %8902 = vst [vmem:[#allocation55_spill] sm:$0xff] %v6265_v63  ;;  %8903 = vst [vmem:[#allocation56_spill] sm:$0xff] %v6268_v8 }
  0xfe   :  { %8904 = vst [vmem:[#allocation57_spill] sm:$0xff] %v6270_v3  ;;  %8905 = vst [vmem:[#allocation58_spill] sm:$0xff] %v6272_v12  ;;  %v226_v32 = vpop.f32.mrf.mxu0  ;;  %v299_v10 = vpop.f32.mrf.mxu1 }
  0xff   :  { %v6274_v4 = vadd.f32 %v226_v32, %v92_v35  ;;  %v6277_v6 = vadd.f32 %v299_v10, %v6209_v31  ;;  %v197_v10 = vadd.f32 %v196_v20, %v92_v35 }
 0x100   :  { %v228_v42 = vpop.f32.mrf.mxu0  ;;  %v301_v5 = vpop.f32.mrf.mxu1 }
 0x101   :  { %8906 = vst [vmem:[#allocation59_spill] sm:$0xff] %v6274_v4  ;;  %8907 = vst [vmem:[#allocation60_spill] sm:$0xff] %v6277_v6  ;;  %v6280_v7 = vadd.f32 %v228_v42, %v6228_v43  ;;  %v6283_v9 = vadd.f32 %v301_v5, %v6232_v2  ;;  %v199_v42 = vadd.f32 %v198_v24, %v6228_v43 }
 0x102   :  { %v230_v21 = vpop.f32.mrf.mxu0  ;;  %v303_v8 = vpop.f32.mrf.mxu1 }
 0x103   :  { %8908 = vst [vmem:[#allocation61_spill] sm:$0xff] %v6280_v7  ;;  %8909 = vst [vmem:[#allocation62_spill] sm:$0xff] %v6283_v9  ;;  %v6285_v63 = vadd.f32 %v230_v21, %v92_v35  ;;  %v6288_v12 = vadd.f32 %v303_v8, %v6209_v31  ;;  %v272_v35 = vadd.f32 %v6211_v0, %v6232_v2 }
 0x104   :  { %v6290_v32 = vpop.f32.mrf.mxu0  ;;  %v6292_v4 = vpop.f32.mrf.mxu1 }
 0x105   :  { %8910 = vst [vmem:[#allocation63_spill] sm:$0xff] %v6285_v63  ;;  %8911 = vst [vmem:[#allocation64_spill] sm:$0xff] %v6288_v12 }
 0x106   :  { %8912 = vst [vmem:[#allocation65_spill] sm:$0xff] %v6290_v32  ;;  %8913 = vst [vmem:[#allocation66_spill] sm:$0xff] %v6292_v4  ;;  %v688_v6 = vpop.f32.mrf.mxu0  ;;  %v729_v3 = vpop.f32.mrf.mxu1  ;;  %v270_v4 = vadd.f32 %v6205_v48, %v6209_v31 }
 0x107   :  { %v736_v7 = vadd.f32 %v688_v6, %v197_v10 }
 0x108   :  { %v690_v1 = vpop.f32.mrf.mxu0  ;;  %v731_v5 = vpop.f32.mrf.mxu1  ;;  %v738_v20 = vadd.f32 %v729_v3, %v270_v4 }
 0x109   :  { %v4734_v9 = vmul.f32 -1.442695, %v736_v7  ;;  %v737_v62 = vadd.f32 %v690_v1, %v199_v42  ;;  %v739_v10 = vadd.f32 %v731_v5, %v272_v35  ;;  %v6302_v5 = vld [vmem:[#allocation4 + $0xe0] ss:$16 sps:$4 sm:$0xff]  }
 0x10a   :  { %v692_v61 = vpop.f32.mrf.mxu0  ;;  %v733_v21 = vpop.f32.mrf.mxu1  ;;  %v4736_v24 = vmul.f32 -1.442695, %v738_v20  ;;  %v6310_v20 = vld [vmem:[#allocation4 + $0xcc] ss:$16 sps:$4 sm:$0xff]   ;;  %v6316_v35 = vld [vmem:[#allocation4 + $0xc0] ss:$16 sps:$4 sm:$0xff]  }
 0x10b   :  { %5137 = vpow2.f32 %v4734_v9  ;;  %v4735_v63 = vmul.f32 -1.442695, %v737_v62 }
 0x10c   :  { %v693_v8 = vpop.f32.mrf.mxu0  ;;  %v734_v12 = vpop.f32.mrf.mxu1 }
 0x10d   :  { %5139 = vpow2.f32 %v4735_v63  ;;  %v6308_v8 = vld [vmem:[#allocation4 + $0xc4] ss:$16 sps:$4 sm:$0xff]  }
 0x10e   :  { %5141 = vpow2.f32 %v4736_v24  ;;  %v6318_v24 = vld [vmem:[#allocation4 + $0xc8] ss:$16 sps:$4 sm:$0xff]  }
 0x118   :  { %v5138_v6 = vpop.eup %5137 }
 0x119   :  { %v749_v32 = vadd.f32 1.0, %v5138_v6  ;;  %v6322_v6 = vld [vmem:[#allocation4 + $0xa4] ss:$16 sps:$4 sm:$0xff]  }
 0x11a   :  { %v5140_v7 = vpop.eup %5139 }
 0x11b   :  { %5143 = vrcp.f32 %v749_v32  ;;  %v750_v61 = vadd.f32 1.0, %v5140_v7  ;;  %v5142_v62 = vpop.eup %5141  ;;  %v6304_v32 = vld [vmem:[#allocation4 + $0xe8] ss:$16 sps:$4 sm:$0xff]   ;;  %v8914_v7 = vmov 0  }
 0x11c   :  { %5145 = vtanh.f32 %v739_v10  ;;  %v751_v9 = vadd.f32 1.0, %v5142_v62  ;;  %v6324_v10 = vld [vmem:[#allocation4 + $0xac] ss:$16 sps:$4 sm:$0xff]   ;;  %v6332_v62 = vld [vmem:[#allocation4 + $0xa8] ss:$16 sps:$4 sm:$0xff]  }
 0x11d   :  { %5147 = vrcp.f32 %v750_v61  ;;  %v6330_v61 = vld [vmem:[#allocation4 + $0xa0] ss:$16 sps:$4 sm:$0xff]  }
 0x11e   :  { %5149 = vrcp.f32 %v751_v9  ;;  %v6344_v9 = vld [vmem:[#allocation4 + $0x88] ss:$16 sps:$4 sm:$0xff]  }
 0x11f   :  { %8918 = vst [vmem:[#allocation70_spill] sm:$0xff] %v6344_v9 }
 0x128   :  { %v5144_v1 = vpop.eup %5143 }
 0x129   :  { %v5146_v63 = vpop.eup %5145 }
 0x12a   :  { %v5148_v12 = vpop.eup %5147  ;;  %v760_v48 = vmul.f32 %v5146_v63, %v5144_v1  ;;  %v6336_v1 = vld [vmem:[#allocation4 + $0x84] ss:$16 sps:$4 sm:$0xff]   ;;  %v6338_v63 = vld [vmem:[#allocation4 + $0x8c] ss:$16 sps:$4 sm:$0xff]  }
 0x12b   :  { %v759_v31 = vmul.f32 0.0, %v5148_v12  ;;  %v5150_v0 = vpop.eup %5149  ;;  %8915 = vst [vmem:[#allocation67_spill] sm:$0xff] %v6336_v1  ;;  %8916 = vst [vmem:[#allocation68_spill] sm:$0xff] %v6338_v63  ;;  %v6342_v12 = vld [vmem:[#allocation4 + $0x80] ss:$16 sps:$4 sm:$0xff]  }
 0x12c   :  { %8917 = vst [vmem:[#allocation69_spill] sm:$0xff] %v6342_v12 }
 0x12d   :  { %v6299_v4 = vadd.f32 %v760_v48, %v759_v31  ;;  %v6348_v31 = vld [vmem:[#allocation4 + $0x64] ss:$16 sps:$4 sm:$0xff]   ;;  %v6350_v48 = vld [vmem:[#allocation4 + $0x6c] ss:$16 sps:$4 sm:$0xff]  }
 0x12e   :  { %8919 = vst [vmem:[#allocation71_spill] sm:$0xff] %v6348_v31  ;;  %8920 = vst [vmem:[#allocation72_spill] sm:$0xff] %v6350_v48 }
 0x12f   :  { %5151 = vtanh.f32 %v6299_v4 }
 0x13c   :  { %v5152_v3 = vpop.eup %5151 }
 0x13d   :  { %v763_v42 = vmul.f32 %v5152_v3, %v5150_v0  ;;  %v6354_v0 = vld [vmem:[#allocation4 + $0x60] ss:$16 sps:$4 sm:$0xff]   ;;  %v6356_v3 = vld [vmem:[#allocation4 + $0x68] ss:$16 sps:$4 sm:$0xff]  }
 0x13e   :  { %8921 = vst [vmem:[#allocation73_spill] sm:$0xff] %v6354_v0  ;;  %8922 = vst [vmem:[#allocation74_spill] sm:$0xff] %v6356_v3 }
 0x13f   :  { %v6306_v21 = vpack.c.bf16 %v763_v42, %v763_v42  ;;  %v6360_v42 = vld [vmem:[#allocation4 + $0x44] ss:$16 sps:$4 sm:$0xff]  }
 0x140   :  { %8923 = vst [vmem:[#allocation75_spill] sm:$0xff] %v6360_v42 }
 0x141   :  { %962 = vmatmul.mubr.bf16.vlgmr.msra.gmra.mxu0 %v6306_v21  ;;  %1003 = vmatmul.mubr.bf16.vlgmr.msra.gmra.mxu1 %v6306_v21 }
 0x142   :  { %1184 = vmatpush1.bf16.msra.mxu0 %v6302_v5  ;;  %1225 = vmatpush1.bf16.msra.mxu1 %v6304_v32 }
 0x143   :  { %1185 = vmatprep.subr.bf16.mxu0 %v6308_v8  ;;  %1226 = vmatprep.subr.bf16.mxu1 %v6310_v20 }
 0x144   :  { %1215 = vmatprep.mubr.bf16.mxu0 %v8914_v7  ;;  %1256 = vmatprep.mubr.bf16.mxu1 %v8914_v7 }
 0x146   :  { %1186 = vmatpush1.bf16.msra.mxu0 %v6316_v35  ;;  %1227 = vmatpush1.bf16.msra.mxu1 %v6318_v24 }
 0x147   :  { %1187 = vmatprep.subr.bf16.mxu0 %v6322_v6  ;;  %1228 = vmatprep.subr.bf16.mxu1 %v6324_v10 }
 0x14a   :  { %1188 = vmatpush1.bf16.msra.mxu0 %v6330_v61  ;;  %1229 = vmatpush1.bf16.msra.mxu1 %v6332_v62 }
 0x14b   :  { %1189 = vmatprep.subr.bf16.mxu0 %v6336_v1  ;;  %1230 = vmatprep.subr.bf16.mxu1 %v6338_v63  ;;  %v6362_v1 = vld [vmem:[#allocation4 + $0x4c] ss:$16 sps:$4 sm:$0xff]   ;;  %v6366_v63 = vld [vmem:[#allocation4 + $0x40] ss:$16 sps:$4 sm:$0xff]  }
 0x14c   :  { %8924 = vst [vmem:[#allocation76_spill] sm:$0xff] %v6362_v1  ;;  %8925 = vst [vmem:[#allocation77_spill] sm:$0xff] %v6366_v63 }
 0x14e   :  { %1190 = vmatpush1.bf16.msra.mxu0 %v6342_v12  ;;  %1231 = vmatpush1.bf16.msra.mxu1 %v6344_v9  ;;  %v6368_v12 = vld [vmem:[#allocation4 + $0x48] ss:$16 sps:$4 sm:$0xff]   ;;  %v6372_v9 = vld [vmem:[#allocation4 + $0x24] ss:$16 sps:$4 sm:$0xff]  }
 0x14f   :  { %1191 = vmatprep.subr.bf16.mxu0 %v6348_v31  ;;  %1232 = vmatprep.subr.bf16.mxu1 %v6350_v48  ;;  %v6374_v31 = vld [vmem:[#allocation4 + $0x2c] ss:$16 sps:$4 sm:$0xff]   ;;  %v6378_v48 = vld [vmem:[#allocation4 + $0x20] ss:$16 sps:$4 sm:$0xff]  }
 0x152   :  { %1192 = vmatpush1.bf16.msra.mxu0 %v6354_v0  ;;  %1233 = vmatpush1.bf16.msra.mxu1 %v6356_v3  ;;  %v6380_v0 = vld [vmem:[#allocation4 + $0x28] ss:$16 sps:$4 sm:$0xff]   ;;  %v6384_v3 = vld [vmem:[#allocation4 + $0x4] ss:$16 sps:$4 sm:$0xff]  }
 0x153   :  { %1193 = vmatprep.subr.bf16.mxu0 %v6360_v42  ;;  %1234 = vmatprep.subr.bf16.mxu1 %v6362_v1  ;;  %v6386_v42 = vld [vmem:[#allocation4 + $0xc] ss:$16 sps:$4 sm:$0xff]   ;;  %v6390_v1 = vld [vmem:[#allocation4] ss:$16 sps:$4 sm:$0xff]  }
 0x156   :  { %1194 = vmatpush1.bf16.msra.mxu0 %v6366_v63  ;;  %1235 = vmatpush1.bf16.msra.mxu1 %v6368_v12  ;;  %v6392_v63 = vld [vmem:[#allocation4 + $0x8] ss:$16 sps:$4 sm:$0xff]  }
 0x157   :  { %1195 = vmatprep.subr.bf16.mxu0 %v6372_v9  ;;  %1236 = vmatprep.subr.bf16.mxu1 %v6374_v31 }
 0x15a   :  { %1196 = vmatpush1.bf16.msra.mxu0 %v6378_v48  ;;  %1237 = vmatpush1.bf16.msra.mxu1 %v6380_v0 }
 0x15b   :  { %1197 = vmatprep.subr.bf16.mxu0 %v6384_v3  ;;  %1238 = vmatprep.subr.bf16.mxu1 %v6386_v42 }
 0x15e   :  { %1198 = vmatpush1.bf16.msra.mxu0 %v6390_v1  ;;  %1239 = vmatpush1.bf16.msra.mxu1 %v6392_v63 }
 0x15f   :  { %1277 = vmatprep.subr.bf16.mxu0 %v5772_v11  ;;  %1318 = vmatprep.subr.bf16.mxu1 %v5777_v13  ;;  %v8926_v11 = vld [vmem:[#allocation10_spill] sm:$0xff]  ;;  %v8927_v13 = vld [vmem:[#allocation11_spill] sm:$0xff] }
 0x161   :  { %1216 = vmatmul.mubr.bf16.vlgmr.msra.gmra.mxu0 %v6306_v21  ;;  %1257 = vmatmul.mubr.bf16.vlgmr.msra.gmra.mxu1 %v6306_v21 }
 0x162   :  { %1278 = vmatpush1.bf16.msra.mxu0 %v5782_v14  ;;  %1319 = vmatpush1.bf16.msra.mxu1 %v5787_v15  ;;  %v8928_v14 = vld [vmem:[#allocation12_spill] sm:$0xff]  ;;  %v8929_v15 = vld [vmem:[#allocation13_spill] sm:$0xff] }
 0x163   :  { %1279 = vmatprep.subr.bf16.mxu0 %v5794_v16  ;;  %1320 = vmatprep.subr.bf16.mxu1 %v5799_v17  ;;  %v8930_v16 = vld [vmem:[#allocation14_spill] sm:$0xff]  ;;  %v8931_v17 = vld [vmem:[#allocation15_spill] sm:$0xff] }
 0x164   :  { %1309 = vmatprep.mubr.bf16.mxu0 %v8914_v7  ;;  %1350 = vmatprep.mubr.bf16.mxu1 %v8914_v7 }
 0x166   :  { %1280 = vmatpush1.bf16.msra.mxu0 %v5804_v18  ;;  %1321 = vmatpush1.bf16.msra.mxu1 %v5811_v19  ;;  %v8932_v18 = vld [vmem:[#allocation16_spill] sm:$0xff]  ;;  %v8933_v19 = vld [vmem:[#allocation17_spill] sm:$0xff] }
 0x167   :  { %1281 = vmatprep.subr.bf16.mxu0 %v5824_v22  ;;  %1322 = vmatprep.subr.bf16.mxu1 %v5831_v23  ;;  %v8934_v22 = vld [vmem:[#allocation18_spill] sm:$0xff]  ;;  %v8935_v23 = vld [vmem:[#allocation19_spill] sm:$0xff] }
 0x16a   :  { %1282 = vmatpush1.bf16.msra.mxu0 %v5840_v25  ;;  %1323 = vmatpush1.bf16.msra.mxu1 %v5845_v26  ;;  %v8936_v25 = vld [vmem:[#allocation20_spill] sm:$0xff]  ;;  %v8937_v26 = vld [vmem:[#allocation21_spill] sm:$0xff] }
 0x16b   :  { %1283 = vmatprep.subr.bf16.mxu0 %v5852_v27  ;;  %1324 = vmatprep.subr.bf16.mxu1 %v5857_v28  ;;  %v8938_v27 = vld [vmem:[#allocation22_spill] sm:$0xff]  ;;  %v8939_v28 = vld [vmem:[#allocation23_spill] sm:$0xff] }
 0x16e   :  { %1284 = vmatpush1.bf16.msra.mxu0 %v5862_v29  ;;  %1325 = vmatpush1.bf16.msra.mxu1 %v5867_v30  ;;  %v8940_v29 = vld [vmem:[#allocation24_spill] sm:$0xff]  ;;  %v8941_v30 = vld [vmem:[#allocation25_spill] sm:$0xff] }
 0x16f   :  { %1285 = vmatprep.subr.bf16.mxu0 %v5882_v33  ;;  %1326 = vmatprep.subr.bf16.mxu1 %v5889_v34  ;;  %v8942_v33 = vld [vmem:[#allocation26_spill] sm:$0xff]  ;;  %v8943_v34 = vld [vmem:[#allocation27_spill] sm:$0xff] }
 0x172   :  { %1286 = vmatpush1.bf16.msra.mxu0 %v5896_v36  ;;  %1327 = vmatpush1.bf16.msra.mxu1 %v5901_v37  ;;  %v8944_v36 = vld [vmem:[#allocation28_spill] sm:$0xff]  ;;  %v8945_v37 = vld [vmem:[#allocation29_spill] sm:$0xff] }
 0x173   :  { %1287 = vmatprep.subr.bf16.mxu0 %v5908_v38  ;;  %1328 = vmatprep.subr.bf16.mxu1 %v5915_v39  ;;  %v8946_v38 = vld [vmem:[#allocation30_spill] sm:$0xff]  ;;  %v8947_v39 = vld [vmem:[#allocation31_spill] sm:$0xff] }
 0x176   :  { %1288 = vmatpush1.bf16.msra.mxu0 %v5920_v40  ;;  %1329 = vmatpush1.bf16.msra.mxu1 %v5927_v41  ;;  %v8948_v40 = vld [vmem:[#allocation32_spill] sm:$0xff]  ;;  %v8949_v41 = vld [vmem:[#allocation33_spill] sm:$0xff] }
 0x177   :  { %1289 = vmatprep.subr.bf16.mxu0 %v5942_v44  ;;  %1330 = vmatprep.subr.bf16.mxu1 %v5947_v45  ;;  %v8950_v44 = vld [vmem:[#allocation34_spill] sm:$0xff]  ;;  %v8951_v45 = vld [vmem:[#allocation35_spill] sm:$0xff] }
 0x17a   :  { %1290 = vmatpush1.bf16.msra.mxu0 %v5954_v46  ;;  %1331 = vmatpush1.bf16.msra.mxu1 %v5959_v47 }
 0x17b   :  { %1291 = vmatprep.subr.bf16.mxu0 %v5964_v49  ;;  %1332 = vmatprep.subr.bf16.mxu1 %v5969_v50 }
 0x17e   :  { %1292 = vmatpush1.bf16.msra.mxu0 %v5978_v51  ;;  %1333 = vmatpush1.bf16.msra.mxu1 %v5983_v52 }
 0x17f   :  { %1392 = vmatprep.subr.bf16.mxu0 %v6002_v53  ;;  %1433 = vmatprep.subr.bf16.mxu1 %v6007_v54 }
 0x181   :  { %1310 = vmatmul.mubr.bf16.vlgmr.msra.gmra.mxu0 %v6306_v21  ;;  %1351 = vmatmul.mubr.bf16.vlgmr.msra.gmra.mxu1 %v6306_v21 }
 0x182   :  { %1393 = vmatpush1.bf16.msra.mxu0 %v6012_v55  ;;  %1434 = vmatpush1.bf16.msra.mxu1 %v6017_v56 }
 0x183   :  { %1394 = vmatprep.subr.bf16.mxu0 %v6026_v57  ;;  %1435 = vmatprep.subr.bf16.mxu1 %v6031_v58 }
 0x184   :  { %1424 = vmatprep.mubr.bf16.mxu0 %v8914_v7  ;;  %1465 = vmatprep.mubr.bf16.mxu1 %v8914_v7 }
 0x186   :  { %1395 = vmatpush1.bf16.msra.mxu0 %v6036_v59  ;;  %1436 = vmatpush1.bf16.msra.mxu1 %v6041_v60 }
 0x187   :  { %1396 = vmatprep.subr.bf16.mxu0 %v8926_v11  ;;  %1437 = vmatprep.subr.bf16.mxu1 %v8927_v13 }
 0x18a   :  { %1397 = vmatpush1.bf16.msra.mxu0 %v8928_v14  ;;  %1438 = vmatpush1.bf16.msra.mxu1 %v8929_v15 }
 0x18b   :  { %1398 = vmatprep.subr.bf16.mxu0 %v8930_v16  ;;  %1439 = vmatprep.subr.bf16.mxu1 %v8931_v17 }
 0x18e   :  { %1399 = vmatpush1.bf16.msra.mxu0 %v8932_v18  ;;  %1440 = vmatpush1.bf16.msra.mxu1 %v8933_v19 }
 0x18f   :  { %1400 = vmatprep.subr.bf16.mxu0 %v8934_v22  ;;  %1441 = vmatprep.subr.bf16.mxu1 %v8935_v23 }
 0x192   :  { %1401 = vmatpush1.bf16.msra.mxu0 %v8936_v25  ;;  %1442 = vmatpush1.bf16.msra.mxu1 %v8937_v26 }
 0x193   :  { %1402 = vmatprep.subr.bf16.mxu0 %v8938_v27  ;;  %1443 = vmatprep.subr.bf16.mxu1 %v8939_v28 }
 0x196   :  { %1403 = vmatpush1.bf16.msra.mxu0 %v8940_v29  ;;  %1444 = vmatpush1.bf16.msra.mxu1 %v8941_v30 }
 0x197   :  { %1404 = vmatprep.subr.bf16.mxu0 %v8942_v33  ;;  %1445 = vmatprep.subr.bf16.mxu1 %v8943_v34 }
 0x19a   :  { %1405 = vmatpush1.bf16.msra.mxu0 %v8944_v36  ;;  %1446 = vmatpush1.bf16.msra.mxu1 %v8945_v37 }
 0x19b   :  { %1406 = vmatprep.subr.bf16.mxu0 %v8946_v38  ;;  %1447 = vmatprep.subr.bf16.mxu1 %v8947_v39 }
 0x19e   :  { %1407 = vmatpush1.bf16.msra.mxu0 %v8948_v40  ;;  %1448 = vmatpush1.bf16.msra.mxu1 %v8949_v41 }
 0x19f   :  { %1486 = vmatprep.subr.bf16.mxu0 %v8950_v44  ;;  %1527 = vmatprep.subr.bf16.mxu1 %v8951_v45 }
 0x201   :  { %v6472_v46 = vpop.f32.mrf.mxu0  ;;  %v6474_v47 = vpop.f32.mrf.mxu1 }
 0x202   :  { %8952 = vst [vmem:[#allocation10_spill] sm:$0xff] %v6472_v46  ;;  %8953 = vst [vmem:[#allocation11_spill] sm:$0xff] %v6474_v47 }
 0x203   :  { %v6476_v49 = vpop.f32.mrf.mxu0  ;;  %v6478_v50 = vpop.f32.mrf.mxu1 }
 0x204   :  { %8954 = vst [vmem:[#allocation12_spill] sm:$0xff] %v6476_v49  ;;  %8955 = vst [vmem:[#allocation13_spill] sm:$0xff] %v6478_v50  ;;  %v8960_v50 = vld [vmem:[#allocation39_spill] sm:$0xff] }
 0x205   :  { %v967_v51 = vpop.f32.mrf.mxu0  ;;  %v1008_v52 = vpop.f32.mrf.mxu1 }
 0x206   :  { %v203_v51 = vadd.f32 %v8960_v50, %v6228_v43  ;;  %v8961_v52 = vld [vmem:[#allocation37_spill] sm:$0xff] }
 0x207   :  { %v968_v21 = vpop.f32.mrf.mxu0  ;;  %v1009_v39 = vpop.f32.mrf.mxu1 }
 0x221   :  { %v6480_v38 = vpop.f32.mrf.mxu0  ;;  %v6482_v40 = vpop.f32.mrf.mxu1 }
 0x222   :  { %8956 = vst [vmem:[#allocation14_spill] sm:$0xff] %v6480_v38  ;;  %8957 = vst [vmem:[#allocation15_spill] sm:$0xff] %v6482_v40 }
 0x223   :  { %v6484_v41 = vpop.f32.mrf.mxu0  ;;  %v6486_v44 = vpop.f32.mrf.mxu1 }
 0x224   :  { %8958 = vst [vmem:[#allocation16_spill] sm:$0xff] %v6484_v41  ;;  %8959 = vst [vmem:[#allocation17_spill] sm:$0xff] %v6486_v44 }
 0x225   :  { %v1221_v45 = vpop.f32.mrf.mxu0  ;;  %v1262_v46 = vpop.f32.mrf.mxu1 }
 0x227   :  { %v1222_v37 = vpop.f32.mrf.mxu0  ;;  %v1263_v47 = vpop.f32.mrf.mxu1 }
 0x228   :  { %v8962_v37 = vld [vmem:[#allocation38_spill] sm:$0xff]  ;;  %v8963_v47 = vld [vmem:[#allocation40_spill] sm:$0xff] }
 0x229   :  { %v276_v29 = vadd.f32 %v8963_v47, %v6232_v2  ;;  %v8969_v47 = vld [vmem:[#allocation72_spill] sm:$0xff]  ;;  %v6595_v2 = vld [vmem:[%s8594_s4 + $0xac] ss:$16 sps:$4 sm:$0xff]  }
 0x22a   :  { %8978 = vst [vmem:[#allocation21_spill] sm:$0xff] %v6595_v2 }
 0x241   :  { %v1311_v36 = vpop.f32.mrf.mxu0  ;;  %v1352_v49 = vpop.f32.mrf.mxu1 }
 0x242   :  { %v1359_v21 = vadd.f32 %v1311_v36, %v8961_v52  ;;  %v1361_v46 = vadd.f32 %v1352_v49, %v8962_v37  ;;  %v8967_v37 = vld [vmem:[#allocation70_spill] sm:$0xff] }
 0x243   :  { %v1313_v39 = vpop.f32.mrf.mxu0  ;;  %v1354_v34 = vpop.f32.mrf.mxu1 }
 0x244   :  { %v4801_v38 = vmul.f32 -1.442695, %v1359_v21  ;;  %v1360_v33 = vadd.f32 %v1313_v39, %v203_v51  ;;  %v4803_v28 = vmul.f32 -1.442695, %v1361_v46  ;;  %v1362_v50 = vadd.f32 %v1354_v34, %v276_v29  ;;  %v8965_v39 = vld [vmem:[#allocation68_spill] sm:$0xff]  ;;  %v8968_v46 = vld [vmem:[#allocation71_spill] sm:$0xff] }
 0x245   :  { %v1315_v40 = vpop.f32.mrf.mxu0  ;;  %v1356_v30 = vpop.f32.mrf.mxu1 }
 0x246   :  { %5153 = vpow2.f32 %v4801_v38  ;;  %v4802_v41 = vmul.f32 -1.442695, %v1360_v33 }
 0x247   :  { %v1316_v44 = vpop.f32.mrf.mxu0  ;;  %v1357_v45 = vpop.f32.mrf.mxu1 }
 0x248   :  { %5155 = vpow2.f32 %v4802_v41  ;;  %v8966_v45 = vld [vmem:[#allocation69_spill] sm:$0xff] }
 0x249   :  { %5157 = vpow2.f32 %v4803_v28 }
 0x24a   :  { %5159 = vtanh.f32 %v1362_v50  ;;  %v8970_v50 = vld [vmem:[#allocation73_spill] sm:$0xff] }
 0x253   :  { %v5154_v43 = vpop.eup %5153 }
 0x254   :  { %v1372_v36 = vadd.f32 1.0, %v5154_v43 }
 0x255   :  { %v5156_v52 = vpop.eup %5155 }
 0x256   :  { %5161 = vrcp.f32 %v1372_v36  ;;  %v1373_v40 = vadd.f32 1.0, %v5156_v52  ;;  %v5158_v30 = vpop.eup %5157  ;;  %v8971_v36 = vld [vmem:[#allocation74_spill] sm:$0xff]  ;;  %v8972_v52 = vld [vmem:[#allocation75_spill] sm:$0xff] }
 0x257   :  { %v5160_v33 = vpop.eup %5159  ;;  %v1374_v51 = vadd.f32 1.0, %v5158_v30  ;;  %v8974_v30 = vld [vmem:[#allocation77_spill] sm:$0xff] }
 0x258   :  { %5163 = vrcp.f32 %v1373_v40  ;;  %v8973_v40 = vld [vmem:[#allocation76_spill] sm:$0xff] }
 0x259   :  { %5165 = vrcp.f32 %v1374_v51  ;;  %v6563_v51 = vld [vmem:[%s8594_s4 + $0xc4] ss:$16 sps:$4 sm:$0xff]  }
 0x263   :  { %v5162_v38 = vpop.eup %5161 }
 0x264   :  { %v1383_v44 = vmul.f32 %v5162_v38, %v5160_v33  ;;  %v6537_v33 = vld [vmem:[%s8594_s4 + $0xe4] ss:$16 sps:$4 sm:$0xff]   ;;  %v6543_v38 = vld [vmem:[%s8594_s4 + $0xec] ss:$16 sps:$4 sm:$0xff]  }
 0x265   :  { %v5164_v41 = vpop.eup %5163 }
 0x266   :  { %v1382_v49 = vmul.f32 %v5164_v41, %v6299_v4  ;;  %v5166_v43 = vpop.eup %5165  ;;  %v8964_v4 = vld [vmem:[#allocation67_spill] sm:$0xff] }
 0x267   :  { %v6557_v41 = vld [vmem:[%s8594_s4 + $0xe8] ss:$16 sps:$4 sm:$0xff]  }
 0x268   :  { %v6495_v21 = vadd.f32 %v1383_v44, %v1382_v49  ;;  %v6551_v44 = vld [vmem:[%s8594_s4 + $0xe0] ss:$16 sps:$4 sm:$0xff]   ;;  %v6569_v49 = vld [vmem:[%s8594_s4 + $0xcc] ss:$16 sps:$4 sm:$0xff]  }
 0x26a   :  { %5167 = vtanh.f32 %v6495_v21 }
 0x277   :  { %v5168_v28 = vpop.eup %5167 }
 0x278   :  { %v1386_v29 = vmul.f32 %v5168_v28, %v5166_v43  ;;  %v6577_v43 = vld [vmem:[%s8594_s4 + $0xc0] ss:$16 sps:$4 sm:$0xff]   ;;  %v6583_v28 = vld [vmem:[%s8594_s4 + $0xc8] ss:$16 sps:$4 sm:$0xff]  }
 0x279   :  { %8975 = vst [vmem:[#allocation18_spill] sm:$0xff] %v6577_v43  ;;  %8976 = vst [vmem:[#allocation19_spill] sm:$0xff] %v6583_v28 }
 0x27a   :  { %v6498_v34 = vpack.c.bf16 %v1386_v29, %v1386_v29  ;;  %v6589_v29 = vld [vmem:[%s8594_s4 + $0xa4] ss:$16 sps:$4 sm:$0xff]  }
 0x27b   :  { %8977 = vst [vmem:[#allocation20_spill] sm:$0xff] %v6589_v29 }
 0x27c   :  { %1425 = vmatmul.mubr.bf16.vlgmr.msra.gmra.mxu0 %v6498_v34  ;;  %1466 = vmatmul.mubr.bf16.vlgmr.msra.gmra.mxu1 %v6498_v34 }
 0x27d   :  { %1487 = vmatpush1.bf16.msra.mxu0 %v6302_v5  ;;  %1528 = vmatpush1.bf16.msra.mxu1 %v6304_v32 }
 0x27e   :  { %1488 = vmatprep.subr.bf16.mxu0 %v6308_v8  ;;  %1529 = vmatprep.subr.bf16.mxu1 %v6310_v20 }
 0x27f   :  { %1518 = vmatprep.mubr.bf16.mxu0 %v8914_v7  ;;  %1559 = vmatprep.mubr.bf16.mxu1 %v8914_v7 }
 0x281   :  { %1489 = vmatpush1.bf16.msra.mxu0 %v6316_v35  ;;  %1530 = vmatpush1.bf16.msra.mxu1 %v6318_v24 }
 0x282   :  { %1490 = vmatprep.subr.bf16.mxu0 %v6322_v6  ;;  %1531 = vmatprep.subr.bf16.mxu1 %v6324_v10 }
 0x285   :  { %1491 = vmatpush1.bf16.msra.mxu0 %v6330_v61  ;;  %1532 = vmatpush1.bf16.msra.mxu1 %v6332_v62 }
 0x286   :  { %1492 = vmatprep.subr.bf16.mxu0 %v8964_v4  ;;  %1533 = vmatprep.subr.bf16.mxu1 %v8965_v39 }
 0x289   :  { %1493 = vmatpush1.bf16.msra.mxu0 %v8966_v45  ;;  %1534 = vmatpush1.bf16.msra.mxu1 %v8967_v37 }
 0x28a   :  { %1494 = vmatprep.subr.bf16.mxu0 %v8968_v46  ;;  %1535 = vmatprep.subr.bf16.mxu1 %v8969_v47 }
 0x28d   :  { %1495 = vmatpush1.bf16.msra.mxu0 %v8970_v50  ;;  %1536 = vmatpush1.bf16.msra.mxu1 %v8971_v36 }
 0x28e   :  { %1496 = vmatprep.subr.bf16.mxu0 %v8972_v52  ;;  %1537 = vmatprep.subr.bf16.mxu1 %v8973_v40 }
 0x291   :  { %1497 = vmatpush1.bf16.msra.mxu0 %v8974_v30  ;;  %1538 = vmatpush1.bf16.msra.mxu1 %v6368_v12 }
 0x292   :  { %1498 = vmatprep.subr.bf16.mxu0 %v6372_v9  ;;  %1539 = vmatprep.subr.bf16.mxu1 %v6374_v31 }
 0x295   :  { %1499 = vmatpush1.bf16.msra.mxu0 %v6378_v48  ;;  %1540 = vmatpush1.bf16.msra.mxu1 %v6380_v0 }
 0x296   :  { %1500 = vmatprep.subr.bf16.mxu0 %v6384_v3  ;;  %1541 = vmatprep.subr.bf16.mxu1 %v6386_v42 }
 0x299   :  { %1501 = vmatpush1.bf16.msra.mxu0 %v6390_v1  ;;  %1542 = vmatpush1.bf16.msra.mxu1 %v6392_v63 }
 0x29a   :  { %1580 = vmatprep.subr.bf16.mxu0 %v6537_v33  ;;  %1621 = vmatprep.subr.bf16.mxu1 %v6543_v38 }
 0x29c   :  { %1519 = vmatmul.mubr.bf16.vlgmr.msra.gmra.mxu0 %v6498_v34  ;;  %1560 = vmatmul.mubr.bf16.vlgmr.msra.gmra.mxu1 %v6498_v34 }
 0x29d   :  { %1581 = vmatpush1.bf16.msra.mxu0 %v6551_v44  ;;  %1622 = vmatpush1.bf16.msra.mxu1 %v6557_v41 }
 0x29e   :  { %1582 = vmatprep.subr.bf16.mxu0 %v6563_v51  ;;  %1623 = vmatprep.subr.bf16.mxu1 %v6569_v49 }
 0x29f   :  { %1612 = vmatprep.mubr.bf16.mxu0 %v8914_v7  ;;  %1653 = vmatprep.mubr.bf16.mxu1 %v8914_v7 }
 0x2a1   :  { %1583 = vmatpush1.bf16.msra.mxu0 %v6577_v43  ;;  %1624 = vmatpush1.bf16.msra.mxu1 %v6583_v28  ;;  %v6601_v43 = vld [vmem:[%s8594_s4 + $0xa0] ss:$16 sps:$4 sm:$0xff]   ;;  %v6607_v28 = vld [vmem:[%s8594_s4 + $0xa8] ss:$16 sps:$4 sm:$0xff]  }
 0x2a2   :  { %1584 = vmatprep.subr.bf16.mxu0 %v6589_v29  ;;  %1625 = vmatprep.subr.bf16.mxu1 %v6595_v2  ;;  %8979 = vst [vmem:[#allocation22_spill] sm:$0xff] %v6601_v43  ;;  %8980 = vst [vmem:[#allocation39_spill] sm:$0xff] %v6607_v28  ;;  %v6613_v29 = vld [vmem:[%s8594_s4 + $0x84] ss:$16 sps:$4 sm:$0xff]   ;;  %v6619_v2 = vld [vmem:[%s8594_s4 + $0x8c] ss:$16 sps:$4 sm:$0xff]  }
 0x2a3   :  { %8981 = vst [vmem:[#allocation37_spill] sm:$0xff] %v6613_v29  ;;  %8982 = vst [vmem:[#allocation38_spill] sm:$0xff] %v6619_v2 }
 0x2a5   :  { %1585 = vmatpush1.bf16.msra.mxu0 %v6601_v43  ;;  %1626 = vmatpush1.bf16.msra.mxu1 %v6607_v28  ;;  %v6625_v43 = vld [vmem:[%s8594_s4 + $0x80] ss:$16 sps:$4 sm:$0xff]   ;;  %v6631_v28 = vld [vmem:[%s8594_s4 + $0x88] ss:$16 sps:$4 sm:$0xff]  }
 0x2a6   :  { %1586 = vmatprep.subr.bf16.mxu0 %v6613_v29  ;;  %1627 = vmatprep.subr.bf16.mxu1 %v6619_v2  ;;  %8983 = vst [vmem:[#allocation40_spill] sm:$0xff] %v6625_v43  ;;  %8984 = vst [vmem:[#allocation67_spill] sm:$0xff] %v6631_v28  ;;  %v6637_v29 = vld [vmem:[%s8594_s4 + $0x64] ss:$16 sps:$4 sm:$0xff]   ;;  %v6643_v2 = vld [vmem:[%s8594_s4 + $0x6c] ss:$16 sps:$4 sm:$0xff]  }
 0x2a7   :  { %8985 = vst [vmem:[#allocation68_spill] sm:$0xff] %v6637_v29  ;;  %8986 = vst [vmem:[#allocation69_spill] sm:$0xff] %v6643_v2 }
 0x2a9   :  { %1587 = vmatpush1.bf16.msra.mxu0 %v6625_v43  ;;  %1628 = vmatpush1.bf16.msra.mxu1 %v6631_v28  ;;  %v6649_v43 = vld [vmem:[%s8594_s4 + $0x60] ss:$16 sps:$4 sm:$0xff]   ;;  %v6655_v28 = vld [vmem:[%s8594_s4 + $0x68] ss:$16 sps:$4 sm:$0xff]  }
 0x2aa   :  { %1588 = vmatprep.subr.bf16.mxu0 %v6637_v29  ;;  %1629 = vmatprep.subr.bf16.mxu1 %v6643_v2  ;;  %8987 = vst [vmem:[#allocation70_spill] sm:$0xff] %v6649_v43  ;;  %8988 = vst [vmem:[#allocation71_spill] sm:$0xff] %v6655_v28  ;;  %v6661_v29 = vld [vmem:[%s8594_s4 + $0x44] ss:$16 sps:$4 sm:$0xff]   ;;  %v6667_v2 = vld [vmem:[%s8594_s4 + $0x4c] ss:$16 sps:$4 sm:$0xff]  }
 0x2ab   :  { %8989 = vst [vmem:[#allocation72_spill] sm:$0xff] %v6661_v29  ;;  %8990 = vst [vmem:[#allocation73_spill] sm:$0xff] %v6667_v2 }
 0x2ad   :  { %1589 = vmatpush1.bf16.msra.mxu0 %v6649_v43  ;;  %1630 = vmatpush1.bf16.msra.mxu1 %v6655_v28  ;;  %v6673_v43 = vld [vmem:[%s8594_s4 + $0x40] ss:$16 sps:$4 sm:$0xff]   ;;  %v6679_v28 = vld [vmem:[%s8594_s4 + $0x48] ss:$16 sps:$4 sm:$0xff]  }
 0x2ae   :  { %1590 = vmatprep.subr.bf16.mxu0 %v6661_v29  ;;  %1631 = vmatprep.subr.bf16.mxu1 %v6667_v2  ;;  %8991 = vst [vmem:[#allocation74_spill] sm:$0xff] %v6673_v43  ;;  %8992 = vst [vmem:[#allocation75_spill] sm:$0xff] %v6679_v28  ;;  %v6685_v29 = vld [vmem:[%s8594_s4 + $0x24] ss:$16 sps:$4 sm:$0xff]   ;;  %v6691_v2 = vld [vmem:[%s8594_s4 + $0x2c] ss:$16 sps:$4 sm:$0xff]  }
 0x2af   :  { %8993 = vst [vmem:[#allocation76_spill] sm:$0xff] %v6685_v29  ;;  %8994 = vst [vmem:[#allocation77_spill] sm:$0xff] %v6691_v2 }
 0x2b1   :  { %1591 = vmatpush1.bf16.msra.mxu0 %v6673_v43  ;;  %1632 = vmatpush1.bf16.msra.mxu1 %v6679_v28  ;;  %v6697_v43 = vld [vmem:[%s8594_s4 + $0x20] ss:$16 sps:$4 sm:$0xff]   ;;  %v6703_v28 = vld [vmem:[%s8594_s4 + $0x28] ss:$16 sps:$4 sm:$0xff]  }
 0x2b2   :  { %1592 = vmatprep.subr.bf16.mxu0 %v6685_v29  ;;  %1633 = vmatprep.subr.bf16.mxu1 %v6691_v2  ;;  %8995 = vst [vmem:[#allocation78_spill] sm:$0xff] %v6697_v43  ;;  %8996 = vst [vmem:[#allocation79_spill] sm:$0xff] %v6703_v28  ;;  %v6709_v29 = vld [vmem:[%s8594_s4 + $0x4] ss:$16 sps:$4 sm:$0xff]   ;;  %v6715_v2 = vld [vmem:[%s8594_s4 + $0xc] ss:$16 sps:$4 sm:$0xff]  }
 0x2b3   :  { %8997 = vst [vmem:[#allocation80_spill] sm:$0xff] %v6709_v29  ;;  %8998 = vst [vmem:[#allocation81_spill] sm:$0xff] %v6715_v2 }
 0x2b5   :  { %1593 = vmatpush1.bf16.msra.mxu0 %v6697_v43  ;;  %1634 = vmatpush1.bf16.msra.mxu1 %v6703_v28  ;;  %v6721_v43 = vld [vmem:[%s8594_s4] ss:$16 sps:$4 sm:$0xff]   ;;  %v6727_v28 = vld [vmem:[%s8594_s4 + $0x8] ss:$16 sps:$4 sm:$0xff]  }
 0x2b6   :  { %1594 = vmatprep.subr.bf16.mxu0 %v6709_v29  ;;  %1635 = vmatprep.subr.bf16.mxu1 %v6715_v2  ;;  %8999 = vst [vmem:[#allocation82_spill] sm:$0xff] %v6721_v43  ;;  %9000 = vst [vmem:[#allocation83_spill] sm:$0xff] %v6727_v28 }
 0x2b9   :  { %1595 = vmatpush1.bf16.msra.mxu0 %v6721_v43  ;;  %1636 = vmatpush1.bf16.msra.mxu1 %v6727_v28 }
 0x2ba   :  { %1695 = vmatprep.subr.bf16.mxu0 %v6002_v53  ;;  %1736 = vmatprep.subr.bf16.mxu1 %v6007_v54  ;;  %v9001_v53 = vld [vmem:[#allocation23_spill] sm:$0xff]  ;;  %v9002_v54 = vld [vmem:[#allocation24_spill] sm:$0xff] }
 0x2bc   :  { %1613 = vmatmul.mubr.bf16.vlgmr.msra.gmra.mxu0 %v6498_v34  ;;  %1654 = vmatmul.mubr.bf16.vlgmr.msra.gmra.mxu1 %v6498_v34 }
 0x2bd   :  { %1696 = vmatpush1.bf16.msra.mxu0 %v6012_v55  ;;  %1737 = vmatpush1.bf16.msra.mxu1 %v6017_v56  ;;  %v9003_v55 = vld [vmem:[#allocation25_spill] sm:$0xff]  ;;  %v9004_v56 = vld [vmem:[#allocation26_spill] sm:$0xff] }
 0x2be   :  { %1697 = vmatprep.subr.bf16.mxu0 %v6026_v57  ;;  %1738 = vmatprep.subr.bf16.mxu1 %v6031_v58  ;;  %v9005_v57 = vld [vmem:[#allocation27_spill] sm:$0xff]  ;;  %v9006_v58 = vld [vmem:[#allocation28_spill] sm:$0xff] }
 0x2bf   :  { %1727 = vmatprep.mubr.bf16.mxu0 %v8914_v7  ;;  %1768 = vmatprep.mubr.bf16.mxu1 %v8914_v7 }
 0x2c1   :  { %1698 = vmatpush1.bf16.msra.mxu0 %v6036_v59  ;;  %1739 = vmatpush1.bf16.msra.mxu1 %v6041_v60  ;;  %v9007_v59 = vld [vmem:[#allocation29_spill] sm:$0xff]  ;;  %v9008_v60 = vld [vmem:[#allocation30_spill] sm:$0xff] }
 0x2c2   :  { %1699 = vmatprep.subr.bf16.mxu0 %v8926_v11  ;;  %1740 = vmatprep.subr.bf16.mxu1 %v8927_v13  ;;  %v9009_v11 = vld [vmem:[#allocation31_spill] sm:$0xff]  ;;  %v9010_v13 = vld [vmem:[#allocation32_spill] sm:$0xff] }
 0x2c5   :  { %1700 = vmatpush1.bf16.msra.mxu0 %v8928_v14  ;;  %1741 = vmatpush1.bf16.msra.mxu1 %v8929_v15  ;;  %v9011_v14 = vld [vmem:[#allocation33_spill] sm:$0xff]  ;;  %v9012_v15 = vld [vmem:[#allocation34_spill] sm:$0xff] }
 0x2c6   :  { %1701 = vmatprep.subr.bf16.mxu0 %v8930_v16  ;;  %1742 = vmatprep.subr.bf16.mxu1 %v8931_v17  ;;  %v9013_v16 = vld [vmem:[#allocation35_spill] sm:$0xff] }
 0x2c9   :  { %1702 = vmatpush1.bf16.msra.mxu0 %v8932_v18  ;;  %1743 = vmatpush1.bf16.msra.mxu1 %v8933_v19 }
 0x2ca   :  { %1703 = vmatprep.subr.bf16.mxu0 %v8934_v22  ;;  %1744 = vmatprep.subr.bf16.mxu1 %v8935_v23 }
 0x2cd   :  { %1704 = vmatpush1.bf16.msra.mxu0 %v8936_v25  ;;  %1745 = vmatpush1.bf16.msra.mxu1 %v8937_v26 }
 0x2ce   :  { %1705 = vmatprep.subr.bf16.mxu0 %v8938_v27  ;;  %1746 = vmatprep.subr.bf16.mxu1 %v9001_v53 }
 0x2d1   :  { %1706 = vmatpush1.bf16.msra.mxu0 %v9002_v54  ;;  %1747 = vmatpush1.bf16.msra.mxu1 %v9003_v55 }
 0x2d2   :  { %1707 = vmatprep.subr.bf16.mxu0 %v9004_v56  ;;  %1748 = vmatprep.subr.bf16.mxu1 %v9005_v57 }
 0x2d5   :  { %1708 = vmatpush1.bf16.msra.mxu0 %v9006_v58  ;;  %1749 = vmatpush1.bf16.msra.mxu1 %v9007_v59 }
 0x2d6   :  { %1709 = vmatprep.subr.bf16.mxu0 %v9008_v60  ;;  %1750 = vmatprep.subr.bf16.mxu1 %v9009_v11 }
 0x2d9   :  { %1710 = vmatpush1.bf16.msra.mxu0 %v9010_v13  ;;  %1751 = vmatpush1.bf16.msra.mxu1 %v9011_v14  ;;  %v9022_v13 = vld [vmem:[#allocation43_spill] sm:$0xff] }
 0x2da   :  { %1789 = vmatprep.subr.bf16.mxu0 %v9012_v15  ;;  %1830 = vmatprep.subr.bf16.mxu1 %v9013_v16 }
 0x33c   :  { %v6768_v17 = vpop.f32.mrf.mxu0  ;;  %v6770_v18 = vpop.f32.mrf.mxu1 }
 0x33d   :  { %9014 = vst [vmem:[#allocation23_spill] sm:$0xff] %v6768_v17  ;;  %9015 = vst [vmem:[#allocation24_spill] sm:$0xff] %v6770_v18 }
 0x33e   :  { %v6772_v19 = vpop.f32.mrf.mxu0  ;;  %v6774_v22 = vpop.f32.mrf.mxu1 }
 0x33f   :  { %9016 = vst [vmem:[#allocation25_spill] sm:$0xff] %v6772_v19  ;;  %9017 = vst [vmem:[#allocation26_spill] sm:$0xff] %v6774_v22 }
 0x340   :  { %v1430_v23 = vpop.f32.mrf.mxu0  ;;  %v1471_v25 = vpop.f32.mrf.mxu1 }
 0x341   :  { %v9023_v25 = vld [vmem:[#allocation45_spill] sm:$0xff] }
 0x342   :  { %v1431_v26 = vpop.f32.mrf.mxu0  ;;  %v1472_v27 = vpop.f32.mrf.mxu1 }
 0x35c   :  { %v6776_v34 = vpop.f32.mrf.mxu0  ;;  %v6778_v53 = vpop.f32.mrf.mxu1 }
 0x35d   :  { %9018 = vst [vmem:[#allocation27_spill] sm:$0xff] %v6776_v34  ;;  %9019 = vst [vmem:[#allocation28_spill] sm:$0xff] %v6778_v53  ;;  %v6949_v34 = vld [vmem:[%s8595_s5 + $0x8c] ss:$16 sps:$4 sm:$0xff]  }
 0x35e   :  { %v6780_v54 = vpop.f32.mrf.mxu0  ;;  %v6782_v55 = vpop.f32.mrf.mxu1 }
 0x35f   :  { %9020 = vst [vmem:[#allocation29_spill] sm:$0xff] %v6780_v54  ;;  %9021 = vst [vmem:[#allocation30_spill] sm:$0xff] %v6782_v55 }
 0x360   :  { %v1524_v56 = vpop.f32.mrf.mxu0  ;;  %v1565_v57 = vpop.f32.mrf.mxu1 }
 0x361   :  { %v9024_v56 = vld [vmem:[#allocation44_spill] sm:$0xff] }
 0x362   :  { %v1525_v58 = vpop.f32.mrf.mxu0  ;;  %v1566_v59 = vpop.f32.mrf.mxu1 }
 0x363   :  { %v9025_v59 = vld [vmem:[#allocation46_spill] sm:$0xff] }
 0x37c   :  { %v1614_v60 = vpop.f32.mrf.mxu0  ;;  %v1655_v11 = vpop.f32.mrf.mxu1 }
 0x37d   :  { %v1662_v14 = vadd.f32 %v1614_v60, %v9022_v13  ;;  %v1664_v57 = vadd.f32 %v1655_v11, %v9024_v56  ;;  %v9044_v56 = vld [vmem:[#allocation76_spill] sm:$0xff] }
 0x37e   :  { %v1616_v15 = vpop.f32.mrf.mxu0  ;;  %v1657_v16 = vpop.f32.mrf.mxu1 }
 0x37f   :  { %v4804_v23 = vmul.f32 -1.442695, %v1662_v14  ;;  %v1663_v26 = vadd.f32 %v1616_v15, %v9023_v25  ;;  %v4806_v58 = vmul.f32 -1.442695, %v1664_v57  ;;  %v1665_v55 = vadd.f32 %v1657_v16, %v9025_v59  ;;  %v9045_v57 = vld [vmem:[#allocation77_spill] sm:$0xff]  ;;  %v9047_v59 = vld [vmem:[#allocation79_spill] sm:$0xff] }
 0x380   :  { %v1618_v27 = vpop.f32.mrf.mxu0  ;;  %v1659_v22 = vpop.f32.mrf.mxu1 }
 0x381   :  { %5169 = vpow2.f32 %v4804_v23  ;;  %v4805_v19 = vmul.f32 -1.442695, %v1663_v26  ;;  %v9042_v26 = vld [vmem:[#allocation74_spill] sm:$0xff]  ;;  %v9043_v27 = vld [vmem:[#allocation75_spill] sm:$0xff] }
 0x382   :  { %v1619_v18 = vpop.f32.mrf.mxu0  ;;  %v1660_v17 = vpop.f32.mrf.mxu1 }
 0x383   :  { %5171 = vpow2.f32 %v4805_v19 }
 0x384   :  { %5173 = vpow2.f32 %v4806_v58  ;;  %v9046_v58 = vld [vmem:[#allocation78_spill] sm:$0xff] }
 0x385   :  { %5175 = vtanh.f32 %v1665_v55 }
 0x38e   :  { %v5170_v54 = vpop.eup %5169 }
 0x38f   :  { %v1675_v53 = vadd.f32 1.0, %v5170_v54 }
 0x390   :  { %v5172_v60 = vpop.eup %5171 }
 0x391   :  { %5177 = vrcp.f32 %v1675_v53  ;;  %v1676_v13 = vadd.f32 1.0, %v5172_v60  ;;  %v5174_v14 = vpop.eup %5173  ;;  %v9041_v53 = vld [vmem:[#allocation73_spill] sm:$0xff]  ;;  %v6867_v60 = vld [vmem:[%s8595_s5 + $0xe4] ss:$16 sps:$4 sm:$0xff]  }
 0x392   :  { %v5176_v22 = vpop.eup %5175  ;;  %v1677_v17 = vadd.f32 1.0, %v5174_v14  ;;  %9048 = vst [vmem:[#allocation31_spill] sm:$0xff] %v6867_v60  ;;  %v6881_v14 = vld [vmem:[%s8595_s5 + $0xe0] ss:$16 sps:$4 sm:$0xff]  }
 0x393   :  { %5179 = vrcp.f32 %v1676_v13  ;;  %v6873_v13 = vld [vmem:[%s8595_s5 + $0xec] ss:$16 sps:$4 sm:$0xff]   ;;  %9050 = vst [vmem:[#allocation33_spill] sm:$0xff] %v6881_v14 }
 0x394   :  { %5181 = vrcp.f32 %v1677_v17  ;;  %9049 = vst [vmem:[#allocation32_spill] sm:$0xff] %v6873_v13  ;;  %v6913_v17 = vld [vmem:[%s8595_s5 + $0xc8] ss:$16 sps:$4 sm:$0xff]  }
 0x395   :  { %9055 = vst [vmem:[#allocation44_spill] sm:$0xff] %v6913_v17 }
 0x39e   :  { %v5178_v15 = vpop.eup %5177 }
 0x39f   :  { %v1686_v23 = vmul.f32 %v5178_v15, %v5176_v22  ;;  %v6887_v22 = vld [vmem:[%s8595_s5 + $0xe8] ss:$16 sps:$4 sm:$0xff]   ;;  %v6893_v15 = vld [vmem:[%s8595_s5 + $0xc4] ss:$16 sps:$4 sm:$0xff]  }
 0x3a0   :  { %v5180_v18 = vpop.eup %5179  ;;  %9051 = vst [vmem:[#allocation34_spill] sm:$0xff] %v6887_v22  ;;  %9052 = vst [vmem:[#allocation35_spill] sm:$0xff] %v6893_v15 }
 0x3a1   :  { %v1685_v19 = vmul.f32 %v5180_v18, %v6495_v21  ;;  %v5182_v54 = vpop.eup %5181  ;;  %v9036_v21 = vld [vmem:[#allocation68_spill] sm:$0xff] }
 0x3a2   :  { %v6907_v18 = vld [vmem:[%s8595_s5 + $0xc0] ss:$16 sps:$4 sm:$0xff]  }
 0x3a3   :  { %v6789_v11 = vadd.f32 %v1686_v23, %v1685_v19  ;;  %v6899_v23 = vld [vmem:[%s8595_s5 + $0xcc] ss:$16 sps:$4 sm:$0xff]   ;;  %9054 = vst [vmem:[#allocation45_spill] sm:$0xff] %v6907_v18  ;;  %v6919_v19 = vld [vmem:[%s8595_s5 + $0xa4] ss:$16 sps:$4 sm:$0xff]  }
 0x3a4   :  { %9053 = vst [vmem:[#allocation43_spill] sm:$0xff] %v6899_v23  ;;  %9056 = vst [vmem:[#allocation46_spill] sm:$0xff] %v6919_v19 }
 0x3a5   :  { %5183 = vtanh.f32 %v6789_v11 }
 0x3b2   :  { %v5184_v16 = vpop.eup %5183 }
 0x3b3   :  { %v1689_v25 = vmul.f32 %v5184_v16, %v5182_v54  ;;  %v6925_v54 = vld [vmem:[%s8595_s5 + $0xac] ss:$16 sps:$4 sm:$0xff]   ;;  %v6931_v16 = vld [vmem:[%s8595_s5 + $0xa0] ss:$16 sps:$4 sm:$0xff]  }
 0x3b5   :  { %v6792_v55 = vpack.c.bf16 %v1689_v25, %v1689_v25  ;;  %v6937_v25 = vld [vmem:[%s8595_s5 + $0xa8] ss:$16 sps:$4 sm:$0xff]  }
 0x3b7   :  { %1728 = vmatmul.mubr.bf16.vlgmr.msra.gmra.mxu0 %v6792_v55  ;;  %1769 = vmatmul.mubr.bf16.vlgmr.msra.gmra.mxu1 %v6792_v55 }
 0x3b8   :  { %1790 = vmatpush1.bf16.msra.mxu0 %v6302_v5  ;;  %1831 = vmatpush1.bf16.msra.mxu1 %v6304_v32  ;;  %v9026_v5 = vld [vmem:[#allocation18_spill] sm:$0xff]  ;;  %v9027_v32 = vld [vmem:[#allocation19_spill] sm:$0xff] }
 0x3b9   :  { %1791 = vmatprep.subr.bf16.mxu0 %v6308_v8  ;;  %1832 = vmatprep.subr.bf16.mxu1 %v6310_v20  ;;  %v9028_v8 = vld [vmem:[#allocation20_spill] sm:$0xff]  ;;  %v9029_v20 = vld [vmem:[#allocation21_spill] sm:$0xff]  ;;  %9057 = vst [vmem:[#allocation18_spill] sm:$0xff] %v6925_v54  ;;  %9058 = vst [vmem:[#allocation19_spill] sm:$0xff] %v6931_v16 }
 0x3ba   :  { %1821 = vmatprep.mubr.bf16.mxu0 %v8914_v7  ;;  %1862 = vmatprep.mubr.bf16.mxu1 %v8914_v7  ;;  %9059 = vst [vmem:[#allocation20_spill] sm:$0xff] %v6937_v25 }
 0x3bc   :  { %1792 = vmatpush1.bf16.msra.mxu0 %v6316_v35  ;;  %1833 = vmatpush1.bf16.msra.mxu1 %v6318_v24  ;;  %v9030_v35 = vld [vmem:[#allocation22_spill] sm:$0xff]  ;;  %v9031_v24 = vld [vmem:[#allocation39_spill] sm:$0xff] }
 0x3bd   :  { %1793 = vmatprep.subr.bf16.mxu0 %v6322_v6  ;;  %1834 = vmatprep.subr.bf16.mxu1 %v6324_v10  ;;  %v9032_v6 = vld [vmem:[#allocation37_spill] sm:$0xff]  ;;  %v9033_v10 = vld [vmem:[#allocation38_spill] sm:$0xff]  ;;  %9061 = vst [vmem:[#allocation22_spill] sm:$0xff] %v6949_v34 }
 0x3c0   :  { %1794 = vmatpush1.bf16.msra.mxu0 %v6330_v61  ;;  %1835 = vmatpush1.bf16.msra.mxu1 %v6332_v62  ;;  %v9034_v61 = vld [vmem:[#allocation40_spill] sm:$0xff]  ;;  %v9035_v62 = vld [vmem:[#allocation67_spill] sm:$0xff] }
 0x3c1   :  { %1795 = vmatprep.subr.bf16.mxu0 %v8964_v4  ;;  %1836 = vmatprep.subr.bf16.mxu1 %v8965_v39  ;;  %v9037_v4 = vld [vmem:[#allocation69_spill] sm:$0xff]  ;;  %v9038_v39 = vld [vmem:[#allocation70_spill] sm:$0xff] }
 0x3c4   :  { %1796 = vmatpush1.bf16.msra.mxu0 %v8966_v45  ;;  %1837 = vmatpush1.bf16.msra.mxu1 %v8967_v37  ;;  %v9039_v45 = vld [vmem:[#allocation71_spill] sm:$0xff]  ;;  %v9040_v37 = vld [vmem:[#allocation72_spill] sm:$0xff] }
 0x3c5   :  { %1797 = vmatprep.subr.bf16.mxu0 %v8968_v46  ;;  %1838 = vmatprep.subr.bf16.mxu1 %v8969_v47 }
 0x3c8   :  { %1798 = vmatpush1.bf16.msra.mxu0 %v8970_v50  ;;  %1839 = vmatpush1.bf16.msra.mxu1 %v8971_v36 }
 0x3c9   :  { %1799 = vmatprep.subr.bf16.mxu0 %v8972_v52  ;;  %1840 = vmatprep.subr.bf16.mxu1 %v8973_v40 }
 0x3cc   :  { %1800 = vmatpush1.bf16.msra.mxu0 %v8974_v30  ;;  %1841 = vmatpush1.bf16.msra.mxu1 %v6368_v12 }
 0x3cd   :  { %1801 = vmatprep.subr.bf16.mxu0 %v6372_v9  ;;  %1842 = vmatprep.subr.bf16.mxu1 %v6374_v31 }
 0x3d0   :  { %1802 = vmatpush1.bf16.msra.mxu0 %v6378_v48  ;;  %1843 = vmatpush1.bf16.msra.mxu1 %v6380_v0 }
 0x3d1   :  { %1803 = vmatprep.subr.bf16.mxu0 %v6384_v3  ;;  %1844 = vmatprep.subr.bf16.mxu1 %v6386_v42 }
 0x3d4   :  { %1804 = vmatpush1.bf16.msra.mxu0 %v6390_v1  ;;  %1845 = vmatpush1.bf16.msra.mxu1 %v6392_v63 }
 0x3d5   :  { %1883 = vmatprep.subr.bf16.mxu0 %v6537_v33  ;;  %1924 = vmatprep.subr.bf16.mxu1 %v6543_v38 }
 0x3d7   :  { %1822 = vmatmul.mubr.bf16.vlgmr.msra.gmra.mxu0 %v6792_v55  ;;  %1863 = vmatmul.mubr.bf16.vlgmr.msra.gmra.mxu1 %v6792_v55 }
 0x3d8   :  { %1884 = vmatpush1.bf16.msra.mxu0 %v6551_v44  ;;  %1925 = vmatpush1.bf16.msra.mxu1 %v6557_v41 }
 0x3d9   :  { %1885 = vmatprep.subr.bf16.mxu0 %v6563_v51  ;;  %1926 = vmatprep.subr.bf16.mxu1 %v6569_v49 }
 0x3da   :  { %1915 = vmatprep.mubr.bf16.mxu0 %v8914_v7  ;;  %1956 = vmatprep.mubr.bf16.mxu1 %v8914_v7 }
 0x3dc   :  { %1886 = vmatpush1.bf16.msra.mxu0 %v9026_v5  ;;  %1927 = vmatpush1.bf16.msra.mxu1 %v9027_v32 }
 0x3dd   :  { %1887 = vmatprep.subr.bf16.mxu0 %v9028_v8  ;;  %1928 = vmatprep.subr.bf16.mxu1 %v9029_v20 }
 0x3e0   :  { %1888 = vmatpush1.bf16.msra.mxu0 %v9030_v35  ;;  %1929 = vmatpush1.bf16.msra.mxu1 %v9031_v24 }
 0x3e1   :  { %1889 = vmatprep.subr.bf16.mxu0 %v9032_v6  ;;  %1930 = vmatprep.subr.bf16.mxu1 %v9033_v10 }
 0x3e4   :  { %1890 = vmatpush1.bf16.msra.mxu0 %v9034_v61  ;;  %1931 = vmatpush1.bf16.msra.mxu1 %v9035_v62 }
 0x3e5   :  { %1891 = vmatprep.subr.bf16.mxu0 %v9036_v21  ;;  %1932 = vmatprep.subr.bf16.mxu1 %v9037_v4 }
 0x3e8   :  { %1892 = vmatpush1.bf16.msra.mxu0 %v9038_v39  ;;  %1933 = vmatpush1.bf16.msra.mxu1 %v9039_v45 }
 0x3e9   :  { %1893 = vmatprep.subr.bf16.mxu0 %v9040_v37  ;;  %1934 = vmatprep.subr.bf16.mxu1 %v9041_v53 }
 0x3ec   :  { %1894 = vmatpush1.bf16.msra.mxu0 %v9042_v26  ;;  %1935 = vmatpush1.bf16.msra.mxu1 %v9043_v27 }
 0x3ed   :  { %1895 = vmatprep.subr.bf16.mxu0 %v9044_v56  ;;  %1936 = vmatprep.subr.bf16.mxu1 %v9045_v57 }
 0x3f0   :  { %1896 = vmatpush1.bf16.msra.mxu0 %v9046_v58  ;;  %1937 = vmatpush1.bf16.msra.mxu1 %v9047_v59  ;;  %v9095_v58 = vld [vmem:[#allocation50_spill] sm:$0xff] }
 0x3f1   :  { %1897 = vmatprep.subr.bf16.mxu0 %v6709_v29  ;;  %1938 = vmatprep.subr.bf16.mxu1 %v6715_v2 }
 0x3f4   :  { %1898 = vmatpush1.bf16.msra.mxu0 %v6721_v43  ;;  %1939 = vmatpush1.bf16.msra.mxu1 %v6727_v28  ;;  %v9090_v43 = vld [vmem:[#allocation41_spill] sm:$0xff] }
 0x3f5   :  { %1998 = vmatprep.subr.bf16.mxu0 %v6867_v60  ;;  %2039 = vmatprep.subr.bf16.mxu1 %v6873_v13 }
 0x3f7   :  { %1916 = vmatmul.mubr.bf16.vlgmr.msra.gmra.mxu0 %v6792_v55  ;;  %1957 = vmatmul.mubr.bf16.vlgmr.msra.gmra.mxu1 %v6792_v55  ;;  %v6943_v55 = vld [vmem:[%s8595_s5 + $0x84] ss:$16 sps:$4 sm:$0xff]  }
 0x3f8   :  { %1999 = vmatpush1.bf16.msra.mxu0 %v6881_v14  ;;  %2040 = vmatpush1.bf16.msra.mxu1 %v6887_v22  ;;  %9060 = vst [vmem:[#allocation21_spill] sm:$0xff] %v6943_v55 }
 0x3f9   :  { %2000 = vmatprep.subr.bf16.mxu0 %v6893_v15  ;;  %2041 = vmatprep.subr.bf16.mxu1 %v6899_v23 }
 0x3fa   :  { %2030 = vmatprep.mubr.bf16.mxu0 %v8914_v7  ;;  %2071 = vmatprep.mubr.bf16.mxu1 %v8914_v7 }
 0x3fc   :  { %2001 = vmatpush1.bf16.msra.mxu0 %v6907_v18  ;;  %2042 = vmatpush1.bf16.msra.mxu1 %v6913_v17 }
 0x3fd   :  { %2002 = vmatprep.subr.bf16.mxu0 %v6919_v19  ;;  %2043 = vmatprep.subr.bf16.mxu1 %v6925_v54  ;;  %v7063_v54 = vld [vmem:[#allocation4 + $0xec] ss:$16 sps:$4 sm:$0xff]  }
 0x3fe   :  { %9081 = vst [vmem:[#allocation90_spill] sm:$0xff] %v7063_v54 }
 0x400   :  { %2003 = vmatpush1.bf16.msra.mxu0 %v6931_v16  ;;  %2044 = vmatpush1.bf16.msra.mxu1 %v6937_v25  ;;  %v6955_v16 = vld [vmem:[%s8595_s5 + $0x80] ss:$16 sps:$4 sm:$0xff]   ;;  %v6961_v25 = vld [vmem:[%s8595_s5 + $0x88] ss:$16 sps:$4 sm:$0xff]  }
 0x401   :  { %2004 = vmatprep.subr.bf16.mxu0 %v6943_v55  ;;  %2045 = vmatprep.subr.bf16.mxu1 %v6949_v34  ;;  %9062 = vst [vmem:[#allocation39_spill] sm:$0xff] %v6955_v16  ;;  %9063 = vst [vmem:[#allocation37_spill] sm:$0xff] %v6961_v25  ;;  %v6967_v55 = vld [vmem:[%s8595_s5 + $0x64] ss:$16 sps:$4 sm:$0xff]   ;;  %v6973_v34 = vld [vmem:[%s8595_s5 + $0x6c] ss:$16 sps:$4 sm:$0xff]  }
 0x402   :  { %9064 = vst [vmem:[#allocation38_spill] sm:$0xff] %v6967_v55  ;;  %9065 = vst [vmem:[#allocation40_spill] sm:$0xff] %v6973_v34 }
 0x404   :  { %2005 = vmatpush1.bf16.msra.mxu0 %v6955_v16  ;;  %2046 = vmatpush1.bf16.msra.mxu1 %v6961_v25  ;;  %v6979_v16 = vld [vmem:[%s8595_s5 + $0x60] ss:$16 sps:$4 sm:$0xff]   ;;  %v6985_v25 = vld [vmem:[%s8595_s5 + $0x68] ss:$16 sps:$4 sm:$0xff]  }
 0x405   :  { %2006 = vmatprep.subr.bf16.mxu0 %v6967_v55  ;;  %2047 = vmatprep.subr.bf16.mxu1 %v6973_v34  ;;  %9066 = vst [vmem:[#allocation67_spill] sm:$0xff] %v6979_v16  ;;  %9067 = vst [vmem:[#allocation68_spill] sm:$0xff] %v6985_v25  ;;  %v6991_v55 = vld [vmem:[%s8595_s5 + $0x44] ss:$16 sps:$4 sm:$0xff]   ;;  %v6997_v34 = vld [vmem:[%s8595_s5 + $0x4c] ss:$16 sps:$4 sm:$0xff]  }
 0x406   :  { %9068 = vst [vmem:[#allocation69_spill] sm:$0xff] %v6991_v55  ;;  %9069 = vst [vmem:[#allocation70_spill] sm:$0xff] %v6997_v34 }
 0x408   :  { %2007 = vmatpush1.bf16.msra.mxu0 %v6979_v16  ;;  %2048 = vmatpush1.bf16.msra.mxu1 %v6985_v25  ;;  %v7003_v16 = vld [vmem:[%s8595_s5 + $0x40] ss:$16 sps:$4 sm:$0xff]   ;;  %v7009_v25 = vld [vmem:[%s8595_s5 + $0x48] ss:$16 sps:$4 sm:$0xff]  }
 0x409   :  { %2008 = vmatprep.subr.bf16.mxu0 %v6991_v55  ;;  %2049 = vmatprep.subr.bf16.mxu1 %v6997_v34  ;;  %9070 = vst [vmem:[#allocation71_spill] sm:$0xff] %v7003_v16  ;;  %9071 = vst [vmem:[#allocation72_spill] sm:$0xff] %v7009_v25  ;;  %v7015_v55 = vld [vmem:[%s8595_s5 + $0x24] ss:$16 sps:$4 sm:$0xff]   ;;  %v7021_v34 = vld [vmem:[%s8595_s5 + $0x2c] ss:$16 sps:$4 sm:$0xff]  }
 0x40a   :  { %9072 = vst [vmem:[#allocation73_spill] sm:$0xff] %v7015_v55  ;;  %9073 = vst [vmem:[#allocation74_spill] sm:$0xff] %v7021_v34 }
 0x40c   :  { %2009 = vmatpush1.bf16.msra.mxu0 %v7003_v16  ;;  %2050 = vmatpush1.bf16.msra.mxu1 %v7009_v25  ;;  %v7027_v16 = vld [vmem:[%s8595_s5 + $0x20] ss:$16 sps:$4 sm:$0xff]   ;;  %v7033_v25 = vld [vmem:[%s8595_s5 + $0x28] ss:$16 sps:$4 sm:$0xff]  }
 0x40d   :  { %2010 = vmatprep.subr.bf16.mxu0 %v7015_v55  ;;  %2051 = vmatprep.subr.bf16.mxu1 %v7021_v34  ;;  %9074 = vst [vmem:[#allocation75_spill] sm:$0xff] %v7027_v16  ;;  %9075 = vst [vmem:[#allocation84_spill] sm:$0xff] %v7033_v25  ;;  %v7039_v55 = vld [vmem:[%s8595_s5 + $0x4] ss:$16 sps:$4 sm:$0xff]   ;;  %v7045_v34 = vld [vmem:[%s8595_s5 + $0xc] ss:$16 sps:$4 sm:$0xff]  }
 0x40e   :  { %9076 = vst [vmem:[#allocation85_spill] sm:$0xff] %v7039_v55  ;;  %9077 = vst [vmem:[#allocation86_spill] sm:$0xff] %v7045_v34 }
 0x410   :  { %2011 = vmatpush1.bf16.msra.mxu0 %v7027_v16  ;;  %2052 = vmatpush1.bf16.msra.mxu1 %v7033_v25  ;;  %v7051_v16 = vld [vmem:[%s8595_s5] ss:$16 sps:$4 sm:$0xff]   ;;  %v7057_v25 = vld [vmem:[%s8595_s5 + $0x8] ss:$16 sps:$4 sm:$0xff]  }
 0x411   :  { %2012 = vmatprep.subr.bf16.mxu0 %v7039_v55  ;;  %2053 = vmatprep.subr.bf16.mxu1 %v7045_v34  ;;  %9078 = vst [vmem:[#allocation87_spill] sm:$0xff] %v7051_v16  ;;  %9079 = vst [vmem:[#allocation88_spill] sm:$0xff] %v7057_v25  ;;  %v7060_v55 = vld [vmem:[#allocation4 + $0xe4] ss:$16 sps:$4 sm:$0xff]  }
 0x412   :  { %9080 = vst [vmem:[#allocation89_spill] sm:$0xff] %v7060_v55 }
 0x414   :  { %2013 = vmatpush1.bf16.msra.mxu0 %v7051_v16  ;;  %2054 = vmatpush1.bf16.msra.mxu1 %v7057_v25 }
 0x415   :  { %2092 = vmatprep.subr.bf16.mxu0 %v7060_v55  ;;  %2133 = vmatprep.subr.bf16.mxu1 %v7063_v54 }
 0x477   :  { %v7066_v34 = vpop.f32.mrf.mxu0  ;;  %v7068_v19 = vpop.f32.mrf.mxu1 }
 0x478   :  { %9082 = vst [vmem:[#allocation91_spill] sm:$0xff] %v7066_v34  ;;  %9083 = vst [vmem:[#allocation92_spill] sm:$0xff] %v7068_v19 }
 0x479   :  { %v7070_v16 = vpop.f32.mrf.mxu0  ;;  %v7072_v17 = vpop.f32.mrf.mxu1 }
 0x47a   :  { %9084 = vst [vmem:[#allocation93_spill] sm:$0xff] %v7070_v16  ;;  %9085 = vst [vmem:[#allocation94_spill] sm:$0xff] %v7072_v17  ;;  %v9091_v17 = vld [vmem:[#allocation49_spill] sm:$0xff] }
 0x47b   :  { %v1733_v18 = vpop.f32.mrf.mxu0  ;;  %v1774_v23 = vpop.f32.mrf.mxu1 }
 0x47c   :  { %v213_v18 = vadd.f32 %v9091_v17, %v9090_v43  ;;  %v9092_v23 = vld [vmem:[#allocation47_spill] sm:$0xff] }
 0x47d   :  { %v1734_v15 = vpop.f32.mrf.mxu0  ;;  %v1775_v25 = vpop.f32.mrf.mxu1 }
 0x497   :  { %v7074_v22 = vpop.f32.mrf.mxu0  ;;  %v7076_v14 = vpop.f32.mrf.mxu1 }
 0x498   :  { %9086 = vst [vmem:[#allocation95_spill] sm:$0xff] %v7074_v22  ;;  %9087 = vst [vmem:[#allocation96_spill] sm:$0xff] %v7076_v14 }
 0x499   :  { %v7078_v55 = vpop.f32.mrf.mxu0  ;;  %v7080_v13 = vpop.f32.mrf.mxu1 }
 0x49a   :  { %9088 = vst [vmem:[#allocation97_spill] sm:$0xff] %v7078_v55  ;;  %9089 = vst [vmem:[#allocation98_spill] sm:$0xff] %v7080_v13 }
 0x49b   :  { %v1827_v54 = vpop.f32.mrf.mxu0  ;;  %v1868_v34 = vpop.f32.mrf.mxu1 }
 0x49c   :  { %v9093_v34 = vld [vmem:[#allocation48_spill] sm:$0xff] }
 0x49d   :  { %v1828_v60 = vpop.f32.mrf.mxu0  ;;  %v1869_v19 = vpop.f32.mrf.mxu1 }
 0x49e   :  { %v9094_v19 = vld [vmem:[#allocation42_spill] sm:$0xff] }
 0x49f   :  { %v286_v57 = vadd.f32 %v9095_v58, %v9094_v19  ;;  %v7096_v58 = vld [vmem:[#allocation4 + $0xe0] ss:$16 sps:$4 sm:$0xff]   ;;  %v9119_v19 = vld [vmem:[#allocation37_spill] sm:$0xff] }
 0x4b7   :  { %v1917_v28 = vpop.f32.mrf.mxu0  ;;  %v1958_v16 = vpop.f32.mrf.mxu1 }
 0x4b8   :  { %v1965_v15 = vadd.f32 %v1917_v28, %v9092_v23  ;;  %v1967_v60 = vadd.f32 %v1958_v16, %v9093_v34  ;;  %v7110_v34 = vld [vmem:[#allocation4 + $0xc0] ss:$16 sps:$4 sm:$0xff]  }
 0x4b9   :  { %v1919_v25 = vpop.f32.mrf.mxu0  ;;  %v1960_v2 = vpop.f32.mrf.mxu1 }
 0x4ba   :  { %v4807_v22 = vmul.f32 -1.442695, %v1965_v15  ;;  %v1966_v29 = vadd.f32 %v1919_v25, %v213_v18  ;;  %v4809_v56 = vmul.f32 -1.442695, %v1967_v60  ;;  %v1968_v17 = vadd.f32 %v1960_v2, %v286_v57  ;;  %v7099_v25 = vld [vmem:[#allocation4 + $0xe8] ss:$16 sps:$4 sm:$0xff]  }
 0x4bb   :  { %v1921_v14 = vpop.f32.mrf.mxu0  ;;  %v1962_v59 = vpop.f32.mrf.mxu1  ;;  %v7113_v60 = vld [vmem:[#allocation4 + $0xc8] ss:$16 sps:$4 sm:$0xff]  }
 0x4bc   :  { %5185 = vpow2.f32 %v4807_v22  ;;  %v4808_v55 = vmul.f32 -1.442695, %v1966_v29 }
 0x4bd   :  { %v1922_v13 = vpop.f32.mrf.mxu0  ;;  %v1963_v54 = vpop.f32.mrf.mxu1 }
 0x4be   :  { %5187 = vpow2.f32 %v4808_v55  ;;  %v7105_v54 = vld [vmem:[#allocation4 + $0xcc] ss:$16 sps:$4 sm:$0xff]  }
 0x4bf   :  { %5189 = vpow2.f32 %v4809_v56 }
 0x4c0   :  { %5191 = vtanh.f32 %v1968_v17  ;;  %v7116_v17 = vld [vmem:[#allocation4 + $0xa4] ss:$16 sps:$4 sm:$0xff]  }
 0x4c9   :  { %v5186_v43 = vpop.eup %5185 }
 0x4ca   :  { %v1978_v28 = vadd.f32 1.0, %v5186_v43 }
 0x4cb   :  { %v5188_v23 = vpop.eup %5187 }
 0x4cc   :  { %5193 = vrcp.f32 %v1978_v28  ;;  %v1979_v14 = vadd.f32 1.0, %v5188_v23  ;;  %v5190_v59 = vpop.eup %5189  ;;  %v7119_v28 = vld [vmem:[#allocation4 + $0xac] ss:$16 sps:$4 sm:$0xff]   ;;  %v7122_v23 = vld [vmem:[#allocation4 + $0xa0] ss:$16 sps:$4 sm:$0xff]  }
 0x4cd   :  { %v5192_v29 = vpop.eup %5191  ;;  %v1980_v18 = vadd.f32 1.0, %v5190_v59  ;;  %v7128_v59 = vld [vmem:[#allocation4 + $0x84] ss:$16 sps:$4 sm:$0xff]  }
 0x4ce   :  { %5195 = vrcp.f32 %v1979_v14  ;;  %v7125_v14 = vld [vmem:[#allocation4 + $0xa8] ss:$16 sps:$4 sm:$0xff]  }
 0x4cf   :  { %5197 = vrcp.f32 %v1980_v18  ;;  %v9113_v18 = vld [vmem:[#allocation18_spill] sm:$0xff] }
 0x4d9   :  { %v5194_v13 = vpop.eup %5193 }
 0x4da   :  { %v1989_v22 = vmul.f32 %v5194_v13, %v5192_v29  ;;  %v7131_v29 = vld [vmem:[#allocation4 + $0x8c] ss:$16 sps:$4 sm:$0xff]   ;;  %v7134_v13 = vld [vmem:[#allocation4 + $0x80] ss:$16 sps:$4 sm:$0xff]  }
 0x4db   :  { %v5196_v55 = vpop.eup %5195 }
 0x4dc   :  { %v1988_v16 = vmul.f32 %v5196_v55, %v6789_v11  ;;  %v5198_v2 = vpop.eup %5197  ;;  %v7102_v11 = vld [vmem:[#allocation4 + $0xc4] ss:$16 sps:$4 sm:$0xff]  }
 0x4dd   :  { %v9112_v55 = vld [vmem:[#allocation46_spill] sm:$0xff] }
 0x4de   :  { %v7089_v15 = vadd.f32 %v1989_v22, %v1988_v16  ;;  %v7137_v22 = vld [vmem:[#allocation4 + $0x88] ss:$16 sps:$4 sm:$0xff]  }
 0x4df   :  { %v9114_v16 = vld [vmem:[#allocation19_spill] sm:$0xff] }
 0x4e0   :  { %5199 = vtanh.f32 %v7089_v15 }
 0x4ed   :  { %v5200_v43 = vpop.eup %5199 }
 0x4ee   :  { %v1992_v56 = vmul.f32 %v5200_v43, %v5198_v2  ;;  %v9115_v2 = vld [vmem:[#allocation20_spill] sm:$0xff]  ;;  %v9116_v43 = vld [vmem:[#allocation21_spill] sm:$0xff] }
 0x4f0   :  { %v7092_v57 = vpack.c.bf16 %v1992_v56, %v1992_v56  ;;  %v9117_v56 = vld [vmem:[#allocation22_spill] sm:$0xff] }
 0x4f2   :  { %2031 = vmatmul.mubr.bf16.vlgmr.msra.gmra.mxu0 %v7092_v57  ;;  %2072 = vmatmul.mubr.bf16.vlgmr.msra.gmra.mxu1 %v7092_v57 }
 0x4f3   :  { %2093 = vmatpush1.bf16.msra.mxu0 %v7096_v58  ;;  %2134 = vmatpush1.bf16.msra.mxu1 %v7099_v25 }
 0x4f4   :  { %2094 = vmatprep.subr.bf16.mxu0 %v7102_v11  ;;  %2135 = vmatprep.subr.bf16.mxu1 %v7105_v54 }
 0x4f5   :  { %2124 = vmatprep.mubr.bf16.mxu0 %v8914_v7  ;;  %2165 = vmatprep.mubr.bf16.mxu1 %v8914_v7 }
 0x4f7   :  { %2095 = vmatpush1.bf16.msra.mxu0 %v7110_v34  ;;  %2136 = vmatpush1.bf16.msra.mxu1 %v7113_v60 }
 0x4f8   :  { %2096 = vmatprep.subr.bf16.mxu0 %v7116_v17  ;;  %2137 = vmatprep.subr.bf16.mxu1 %v7119_v28 }
 0x4fb   :  { %2097 = vmatpush1.bf16.msra.mxu0 %v7122_v23  ;;  %2138 = vmatpush1.bf16.msra.mxu1 %v7125_v14 }
 0x4fc   :  { %2098 = vmatprep.subr.bf16.mxu0 %v7128_v59  ;;  %2139 = vmatprep.subr.bf16.mxu1 %v7131_v29 }
 0x4ff   :  { %2099 = vmatpush1.bf16.msra.mxu0 %v7134_v13  ;;  %2140 = vmatpush1.bf16.msra.mxu1 %v7137_v22 }
 0x500   :  { %2100 = vmatprep.subr.bf16.mxu0 %v8968_v46  ;;  %2141 = vmatprep.subr.bf16.mxu1 %v8969_v47  ;;  %v9105_v46 = vld [vmem:[#allocation32_spill] sm:$0xff]  ;;  %v9106_v47 = vld [vmem:[#allocation33_spill] sm:$0xff] }
 0x503   :  { %2101 = vmatpush1.bf16.msra.mxu0 %v8970_v50  ;;  %2142 = vmatpush1.bf16.msra.mxu1 %v8971_v36  ;;  %v9107_v50 = vld [vmem:[#allocation34_spill] sm:$0xff]  ;;  %v9108_v36 = vld [vmem:[#allocation35_spill] sm:$0xff] }
 0x504   :  { %2102 = vmatprep.subr.bf16.mxu0 %v8972_v52  ;;  %2143 = vmatprep.subr.bf16.mxu1 %v8973_v40  ;;  %v9109_v52 = vld [vmem:[#allocation43_spill] sm:$0xff]  ;;  %v9110_v40 = vld [vmem:[#allocation45_spill] sm:$0xff] }
 0x507   :  { %2103 = vmatpush1.bf16.msra.mxu0 %v8974_v30  ;;  %2144 = vmatpush1.bf16.msra.mxu1 %v6368_v12  ;;  %v9098_v12 = vld [vmem:[#allocation78_spill] sm:$0xff]  ;;  %v9111_v30 = vld [vmem:[#allocation44_spill] sm:$0xff] }
 0x508   :  { %2104 = vmatprep.subr.bf16.mxu0 %v6372_v9  ;;  %2145 = vmatprep.subr.bf16.mxu1 %v6374_v31  ;;  %v9099_v9 = vld [vmem:[#allocation79_spill] sm:$0xff]  ;;  %v9100_v31 = vld [vmem:[#allocation80_spill] sm:$0xff] }
 0x50b   :  { %2105 = vmatpush1.bf16.msra.mxu0 %v6378_v48  ;;  %2146 = vmatpush1.bf16.msra.mxu1 %v6380_v0  ;;  %v9101_v48 = vld [vmem:[#allocation81_spill] sm:$0xff]  ;;  %v9102_v0 = vld [vmem:[#allocation82_spill] sm:$0xff] }
 0x50c   :  { %2106 = vmatprep.subr.bf16.mxu0 %v6384_v3  ;;  %2147 = vmatprep.subr.bf16.mxu1 %v6386_v42  ;;  %v9103_v3 = vld [vmem:[#allocation83_spill] sm:$0xff] }
 0x50d   :  { %v9104_v42 = vld [vmem:[#allocation31_spill] sm:$0xff] }
 0x50f   :  { %2107 = vmatpush1.bf16.msra.mxu0 %v6390_v1  ;;  %2148 = vmatpush1.bf16.msra.mxu1 %v6392_v63  ;;  %v9096_v1 = vld [vmem:[#allocation76_spill] sm:$0xff]  ;;  %v9097_v63 = vld [vmem:[#allocation77_spill] sm:$0xff] }
 0x510   :  { %2186 = vmatprep.subr.bf16.mxu0 %v6537_v33  ;;  %2227 = vmatprep.subr.bf16.mxu1 %v6543_v38 }
 0x512   :  { %2125 = vmatmul.mubr.bf16.vlgmr.msra.gmra.mxu0 %v7092_v57  ;;  %2166 = vmatmul.mubr.bf16.vlgmr.msra.gmra.mxu1 %v7092_v57 }
 0x513   :  { %2187 = vmatpush1.bf16.msra.mxu0 %v6551_v44  ;;  %2228 = vmatpush1.bf16.msra.mxu1 %v6557_v41 }
 0x514   :  { %2188 = vmatprep.subr.bf16.mxu0 %v6563_v51  ;;  %2229 = vmatprep.subr.bf16.mxu1 %v6569_v49 }
 0x515   :  { %2218 = vmatprep.mubr.bf16.mxu0 %v8914_v7  ;;  %2259 = vmatprep.mubr.bf16.mxu1 %v8914_v7 }
 0x517   :  { %2189 = vmatpush1.bf16.msra.mxu0 %v9026_v5  ;;  %2230 = vmatpush1.bf16.msra.mxu1 %v9027_v32 }
 0x518   :  { %2190 = vmatprep.subr.bf16.mxu0 %v9028_v8  ;;  %2231 = vmatprep.subr.bf16.mxu1 %v9029_v20 }
 0x51b   :  { %2191 = vmatpush1.bf16.msra.mxu0 %v9030_v35  ;;  %2232 = vmatpush1.bf16.msra.mxu1 %v9031_v24 }
 0x51c   :  { %2192 = vmatprep.subr.bf16.mxu0 %v9032_v6  ;;  %2233 = vmatprep.subr.bf16.mxu1 %v9033_v10 }
 0x51f   :  { %2193 = vmatpush1.bf16.msra.mxu0 %v9034_v61  ;;  %2234 = vmatpush1.bf16.msra.mxu1 %v9035_v62 }
 0x520   :  { %2194 = vmatprep.subr.bf16.mxu0 %v9036_v21  ;;  %2235 = vmatprep.subr.bf16.mxu1 %v9037_v4 }
 0x523   :  { %2195 = vmatpush1.bf16.msra.mxu0 %v9038_v39  ;;  %2236 = vmatpush1.bf16.msra.mxu1 %v9039_v45 }
 0x524   :  { %2196 = vmatprep.subr.bf16.mxu0 %v9040_v37  ;;  %2237 = vmatprep.subr.bf16.mxu1 %v9041_v53 }
 0x527   :  { %2197 = vmatpush1.bf16.msra.mxu0 %v9042_v26  ;;  %2238 = vmatpush1.bf16.msra.mxu1 %v9043_v27 }
 0x528   :  { %2198 = vmatprep.subr.bf16.mxu0 %v9096_v1  ;;  %2239 = vmatprep.subr.bf16.mxu1 %v9097_v63 }
 0x52b   :  { %2199 = vmatpush1.bf16.msra.mxu0 %v9098_v12  ;;  %2240 = vmatpush1.bf16.msra.mxu1 %v9099_v9 }
 0x52c   :  { %2200 = vmatprep.subr.bf16.mxu0 %v9100_v31  ;;  %2241 = vmatprep.subr.bf16.mxu1 %v9101_v48 }
 0x52f   :  { %2201 = vmatpush1.bf16.msra.mxu0 %v9102_v0  ;;  %2242 = vmatpush1.bf16.msra.mxu1 %v9103_v3 }
 0x530   :  { %2301 = vmatprep.subr.bf16.mxu0 %v9104_v42  ;;  %2342 = vmatprep.subr.bf16.mxu1 %v9105_v46  ;;  %v9146_v42 = vld [vmem:[#allocation51_spill] sm:$0xff] }
 0x532   :  { %2219 = vmatmul.mubr.bf16.vlgmr.msra.gmra.mxu0 %v7092_v57  ;;  %2260 = vmatmul.mubr.bf16.vlgmr.msra.gmra.mxu1 %v7092_v57  ;;  %v9118_v57 = vld [vmem:[#allocation39_spill] sm:$0xff] }
 0x533   :  { %2302 = vmatpush1.bf16.msra.mxu0 %v9106_v47  ;;  %2343 = vmatpush1.bf16.msra.mxu1 %v9107_v50 }
 0x534   :  { %2303 = vmatprep.subr.bf16.mxu0 %v9108_v36  ;;  %2344 = vmatprep.subr.bf16.mxu1 %v9109_v52  ;;  %v9120_v52 = vld [vmem:[#allocation38_spill] sm:$0xff] }
 0x535   :  { %2333 = vmatprep.mubr.bf16.mxu0 %v8914_v7  ;;  %2374 = vmatprep.mubr.bf16.mxu1 %v8914_v7 }
 0x537   :  { %2304 = vmatpush1.bf16.msra.mxu0 %v9110_v40  ;;  %2345 = vmatpush1.bf16.msra.mxu1 %v9111_v30  ;;  %v9121_v40 = vld [vmem:[#allocation40_spill] sm:$0xff]  ;;  %v9122_v30 = vld [vmem:[#allocation67_spill] sm:$0xff] }
 0x538   :  { %2305 = vmatprep.subr.bf16.mxu0 %v9112_v55  ;;  %2346 = vmatprep.subr.bf16.mxu1 %v9113_v18  ;;  %v9123_v55 = vld [vmem:[#allocation68_spill] sm:$0xff]  ;;  %v9124_v18 = vld [vmem:[#allocation69_spill] sm:$0xff] }
 0x53b   :  { %2306 = vmatpush1.bf16.msra.mxu0 %v9114_v16  ;;  %2347 = vmatpush1.bf16.msra.mxu1 %v9115_v2  ;;  %v9125_v16 = vld [vmem:[#allocation70_spill] sm:$0xff]  ;;  %v9126_v2 = vld [vmem:[#allocation71_spill] sm:$0xff] }
 0x53c   :  { %2307 = vmatprep.subr.bf16.mxu0 %v9116_v43  ;;  %2348 = vmatprep.subr.bf16.mxu1 %v9117_v56  ;;  %v9127_v43 = vld [vmem:[#allocation72_spill] sm:$0xff]  ;;  %v9128_v56 = vld [vmem:[#allocation73_spill] sm:$0xff] }
 0x53f   :  { %2308 = vmatpush1.bf16.msra.mxu0 %v9118_v57  ;;  %2349 = vmatpush1.bf16.msra.mxu1 %v9119_v19  ;;  %v9129_v57 = vld [vmem:[#allocation74_spill] sm:$0xff]  ;;  %v9130_v19 = vld [vmem:[#allocation75_spill] sm:$0xff] }
 0x540   :  { %2309 = vmatprep.subr.bf16.mxu0 %v9120_v52  ;;  %2350 = vmatprep.subr.bf16.mxu1 %v9121_v40  ;;  %v9131_v52 = vld [vmem:[#allocation84_spill] sm:$0xff]  ;;  %v9132_v40 = vld [vmem:[#allocation85_spill] sm:$0xff] }
 0x543   :  { %2310 = vmatpush1.bf16.msra.mxu0 %v9122_v30  ;;  %2351 = vmatpush1.bf16.msra.mxu1 %v9123_v55  ;;  %v9133_v30 = vld [vmem:[#allocation86_spill] sm:$0xff]  ;;  %v9134_v55 = vld [vmem:[#allocation87_spill] sm:$0xff] }
 0x544   :  { %2311 = vmatprep.subr.bf16.mxu0 %v9124_v18  ;;  %2352 = vmatprep.subr.bf16.mxu1 %v9125_v16  ;;  %v9135_v18 = vld [vmem:[#allocation88_spill] sm:$0xff]  ;;  %v9136_v16 = vld [vmem:[#allocation89_spill] sm:$0xff] }
 0x547   :  { %2312 = vmatpush1.bf16.msra.mxu0 %v9126_v2  ;;  %2353 = vmatpush1.bf16.msra.mxu1 %v9127_v43  ;;  %v9137_v2 = vld [vmem:[#allocation90_spill] sm:$0xff] }
 0x548   :  { %2313 = vmatprep.subr.bf16.mxu0 %v9128_v56  ;;  %2354 = vmatprep.subr.bf16.mxu1 %v9129_v57 }
 0x54b   :  { %2314 = vmatpush1.bf16.msra.mxu0 %v9130_v19  ;;  %2355 = vmatpush1.bf16.msra.mxu1 %v9131_v52 }
 0x54c   :  { %2315 = vmatprep.subr.bf16.mxu0 %v9132_v40  ;;  %2356 = vmatprep.subr.bf16.mxu1 %v9133_v30 }
 0x54f   :  { %2316 = vmatpush1.bf16.msra.mxu0 %v9134_v55  ;;  %2357 = vmatpush1.bf16.msra.mxu1 %v9135_v18 }
 0x550   :  { %2395 = vmatprep.subr.bf16.mxu0 %v9136_v16  ;;  %2436 = vmatprep.subr.bf16.mxu1 %v9137_v2 }
 0x5b2   :  { %v7230_v43 = vpop.f32.mrf.mxu0  ;;  %v7232_v56 = vpop.f32.mrf.mxu1 }
 0x5b3   :  { %9138 = vst [vmem:[#allocation49_spill] sm:$0xff] %v7230_v43  ;;  %9139 = vst [vmem:[#allocation47_spill] sm:$0xff] %v7232_v56 }
 0x5b4   :  { %v7234_v57 = vpop.f32.mrf.mxu0  ;;  %v7236_v19 = vpop.f32.mrf.mxu1 }
 0x5b5   :  { %9140 = vst [vmem:[#allocation48_spill] sm:$0xff] %v7234_v57  ;;  %9141 = vst [vmem:[#allocation50_spill] sm:$0xff] %v7236_v19 }
 0x5b6   :  { %v2036_v52 = vpop.f32.mrf.mxu0  ;;  %v2077_v40 = vpop.f32.mrf.mxu1 }
 0x5b8   :  { %v2037_v36 = vpop.f32.mrf.mxu0  ;;  %v2078_v30 = vpop.f32.mrf.mxu1 }
 0x5b9   :  { %v9147_v30 = vld [vmem:[#allocation53_spill] sm:$0xff] }
 0x5d2   :  { %v7238_v50 = vpop.f32.mrf.mxu0  ;;  %v7240_v55 = vpop.f32.mrf.mxu1 }
 0x5d3   :  { %9142 = vst [vmem:[#allocation76_spill] sm:$0xff] %v7238_v50  ;;  %9143 = vst [vmem:[#allocation77_spill] sm:$0xff] %v7240_v55 }
 0x5d4   :  { %v7242_v18 = vpop.f32.mrf.mxu0  ;;  %v7244_v16 = vpop.f32.mrf.mxu1 }
 0x5d5   :  { %9144 = vst [vmem:[#allocation78_spill] sm:$0xff] %v7242_v18  ;;  %9145 = vst [vmem:[#allocation99_spill] sm:$0xff] %v7244_v16 }
 0x5d6   :  { %v2130_v2 = vpop.f32.mrf.mxu0  ;;  %v2171_v43 = vpop.f32.mrf.mxu1 }
 0x5d7   :  { %v9148_v2 = vld [vmem:[#allocation52_spill] sm:$0xff] }
 0x5d8   :  { %v2131_v47 = vpop.f32.mrf.mxu0  ;;  %v2172_v56 = vpop.f32.mrf.mxu1 }
 0x5d9   :  { %v9149_v56 = vld [vmem:[#allocation54_spill] sm:$0xff] }
 0x5f2   :  { %v2220_v46 = vpop.f32.mrf.mxu0  ;;  %v2261_v57 = vpop.f32.mrf.mxu1 }
 0x5f3   :  { %v2268_v19 = vadd.f32 %v2220_v46, %v9146_v42  ;;  %v2270_v43 = vadd.f32 %v2261_v57, %v9148_v2  ;;  %v7286_v2 = vld [vmem:[#allocation4 + $0x44] ss:$16 sps:$4 sm:$0xff]  }
 0x5f4   :  { %v2222_v52 = vpop.f32.mrf.mxu0  ;;  %v2263_v40 = vpop.f32.mrf.mxu1 }
 0x5f5   :  { %v4810_v36 = vmul.f32 -1.442695, %v2268_v19  ;;  %v2269_v3 = vadd.f32 %v2222_v52, %v9147_v30  ;;  %v4812_v47 = vmul.f32 -1.442695, %v2270_v43  ;;  %v2271_v16 = vadd.f32 %v2263_v40, %v9149_v56  ;;  %v7283_v30 = vld [vmem:[#allocation4 + $0x68] ss:$16 sps:$4 sm:$0xff]  }
 0x5f6   :  { %v2224_v50 = vpop.f32.mrf.mxu0  ;;  %v2265_v0 = vpop.f32.mrf.mxu1  ;;  %v7289_v43 = vld [vmem:[#allocation4 + $0x4c] ss:$16 sps:$4 sm:$0xff]   ;;  %v7295_v56 = vld [vmem:[#allocation4 + $0x48] ss:$16 sps:$4 sm:$0xff]  }
 0x5f7   :  { %5201 = vpow2.f32 %v4810_v36  ;;  %v4811_v55 = vmul.f32 -1.442695, %v2269_v3  ;;  %v7280_v36 = vld [vmem:[#allocation4 + $0x60] ss:$16 sps:$4 sm:$0xff]  }
 0x5f8   :  { %v2225_v18 = vpop.f32.mrf.mxu0  ;;  %v2266_v48 = vpop.f32.mrf.mxu1 }
 0x5f9   :  { %5203 = vpow2.f32 %v4811_v55 }
 0x5fa   :  { %5205 = vpow2.f32 %v4812_v47  ;;  %v7292_v47 = vld [vmem:[#allocation4 + $0x40] ss:$16 sps:$4 sm:$0xff]  }
 0x5fb   :  { %5207 = vtanh.f32 %v2271_v16 }
 0x604   :  { %v5202_v31 = vpop.eup %5201 }
 0x605   :  { %v2281_v9 = vadd.f32 1.0, %v5202_v31 }
 0x606   :  { %v5204_v42 = vpop.eup %5203 }
 0x607   :  { %5209 = vrcp.f32 %v2281_v9  ;;  %v2282_v19 = vadd.f32 1.0, %v5204_v42  ;;  %v5206_v46 = vpop.eup %5205  ;;  %v7277_v9 = vld [vmem:[#allocation4 + $0x6c] ss:$16 sps:$4 sm:$0xff]   ;;  %v7298_v42 = vld [vmem:[#allocation4 + $0x24] ss:$16 sps:$4 sm:$0xff]  }
 0x608   :  { %v5208_v0 = vpop.eup %5207  ;;  %v2283_v48 = vadd.f32 1.0, %v5206_v46  ;;  %v7304_v46 = vld [vmem:[#allocation4 + $0x20] ss:$16 sps:$4 sm:$0xff]  }
 0x609   :  { %5211 = vrcp.f32 %v2282_v19  ;;  %v7301_v19 = vld [vmem:[#allocation4 + $0x2c] ss:$16 sps:$4 sm:$0xff]  }
 0x60a   :  { %5213 = vrcp.f32 %v2283_v48  ;;  %v7319_v48 = vld [vmem:[#allocation4 + $0x8] ss:$16 sps:$4 sm:$0xff]  }
 0x614   :  { %v5210_v50 = vpop.eup %5209 }
 0x615   :  { %v2292_v3 = vmul.f32 %v5210_v50, %v5208_v0  ;;  %v7307_v0 = vld [vmem:[#allocation4 + $0x28] ss:$16 sps:$4 sm:$0xff]   ;;  %v7310_v50 = vld [vmem:[#allocation4 + $0x4] ss:$16 sps:$4 sm:$0xff]  }
 0x616   :  { %v5212_v18 = vpop.eup %5211 }
 0x617   :  { %v2291_v55 = vmul.f32 %v5212_v18, %v7089_v15  ;;  %v5214_v31 = vpop.eup %5213  ;;  %v7274_v15 = vld [vmem:[#allocation4 + $0x64] ss:$16 sps:$4 sm:$0xff]   ;;  %v7316_v18 = vld [vmem:[#allocation4] ss:$16 sps:$4 sm:$0xff]  }
 0x619   :  { %v7251_v57 = vadd.f32 %v2292_v3, %v2291_v55  ;;  %v7313_v3 = vld [vmem:[#allocation4 + $0xc] ss:$16 sps:$4 sm:$0xff]  }
 0x61a   :  { %v9177_v55 = vld [vmem:[#allocation71_spill] sm:$0xff] }
 0x61b   :  { %5215 = vtanh.f32 %v7251_v57 }
 0x628   :  { %v5216_v52 = vpop.eup %5215 }
 0x629   :  { %v2295_v40 = vmul.f32 %v5216_v52, %v5214_v31  ;;  %v9178_v31 = vld [vmem:[#allocation72_spill] sm:$0xff]  ;;  %v9179_v52 = vld [vmem:[#allocation73_spill] sm:$0xff] }
 0x62b   :  { %v7254_v16 = vpack.c.bf16 %v2295_v40, %v2295_v40  ;;  %v9180_v40 = vld [vmem:[#allocation74_spill] sm:$0xff] }
 0x62d   :  { %2334 = vmatmul.mubr.bf16.vlgmr.msra.gmra.mxu0 %v7254_v16  ;;  %2375 = vmatmul.mubr.bf16.vlgmr.msra.gmra.mxu1 %v7254_v16 }
 0x62e   :  { %2396 = vmatpush1.bf16.msra.mxu0 %v7096_v58  ;;  %2437 = vmatpush1.bf16.msra.mxu1 %v7099_v25 }
 0x62f   :  { %2397 = vmatprep.subr.bf16.mxu0 %v7102_v11  ;;  %2438 = vmatprep.subr.bf16.mxu1 %v7105_v54 }
 0x630   :  { %2427 = vmatprep.mubr.bf16.mxu0 %v8914_v7  ;;  %2468 = vmatprep.mubr.bf16.mxu1 %v8914_v7 }
 0x632   :  { %2398 = vmatpush1.bf16.msra.mxu0 %v7110_v34  ;;  %2439 = vmatpush1.bf16.msra.mxu1 %v7113_v60 }
 0x633   :  { %2399 = vmatprep.subr.bf16.mxu0 %v7116_v17  ;;  %2440 = vmatprep.subr.bf16.mxu1 %v7119_v28 }
 0x636   :  { %2400 = vmatpush1.bf16.msra.mxu0 %v7122_v23  ;;  %2441 = vmatpush1.bf16.msra.mxu1 %v7125_v14 }
 0x637   :  { %2401 = vmatprep.subr.bf16.mxu0 %v7128_v59  ;;  %2442 = vmatprep.subr.bf16.mxu1 %v7131_v29 }
 0x63a   :  { %2402 = vmatpush1.bf16.msra.mxu0 %v7134_v13  ;;  %2443 = vmatpush1.bf16.msra.mxu1 %v7137_v22 }
 0x63b   :  { %2403 = vmatprep.subr.bf16.mxu0 %v7274_v15  ;;  %2444 = vmatprep.subr.bf16.mxu1 %v7277_v9 }
 0x63e   :  { %2404 = vmatpush1.bf16.msra.mxu0 %v7280_v36  ;;  %2445 = vmatpush1.bf16.msra.mxu1 %v7283_v30 }
 0x63f   :  { %2405 = vmatprep.subr.bf16.mxu0 %v7286_v2  ;;  %2446 = vmatprep.subr.bf16.mxu1 %v7289_v43 }
 0x642   :  { %2406 = vmatpush1.bf16.msra.mxu0 %v7292_v47  ;;  %2447 = vmatpush1.bf16.msra.mxu1 %v7295_v56 }
 0x643   :  { %2407 = vmatprep.subr.bf16.mxu0 %v7298_v42  ;;  %2448 = vmatprep.subr.bf16.mxu1 %v7301_v19 }
 0x646   :  { %2408 = vmatpush1.bf16.msra.mxu0 %v7304_v46  ;;  %2449 = vmatpush1.bf16.msra.mxu1 %v7307_v0 }
 0x647   :  { %2409 = vmatprep.subr.bf16.mxu0 %v7310_v50  ;;  %2450 = vmatprep.subr.bf16.mxu1 %v7313_v3 }
 0x64a   :  { %2410 = vmatpush1.bf16.msra.mxu0 %v7316_v18  ;;  %2451 = vmatpush1.bf16.msra.mxu1 %v7319_v48 }
 0x64b   :  { %2489 = vmatprep.subr.bf16.mxu0 %v6537_v33  ;;  %2530 = vmatprep.subr.bf16.mxu1 %v6543_v38  ;;  %v9150_v33 = vld [vmem:[#allocation79_spill] sm:$0xff]  ;;  %v9151_v38 = vld [vmem:[#allocation80_spill] sm:$0xff] }
 0x64d   :  { %2428 = vmatmul.mubr.bf16.vlgmr.msra.gmra.mxu0 %v7254_v16  ;;  %2469 = vmatmul.mubr.bf16.vlgmr.msra.gmra.mxu1 %v7254_v16 }
 0x64e   :  { %2490 = vmatpush1.bf16.msra.mxu0 %v6551_v44  ;;  %2531 = vmatpush1.bf16.msra.mxu1 %v6557_v41  ;;  %v9152_v44 = vld [vmem:[#allocation81_spill] sm:$0xff]  ;;  %v9153_v41 = vld [vmem:[#allocation82_spill] sm:$0xff] }
 0x64f   :  { %2491 = vmatprep.subr.bf16.mxu0 %v6563_v51  ;;  %2532 = vmatprep.subr.bf16.mxu1 %v6569_v49  ;;  %v9154_v51 = vld [vmem:[#allocation83_spill] sm:$0xff] }
 0x650   :  { %2521 = vmatprep.mubr.bf16.mxu0 %v8914_v7  ;;  %2562 = vmatprep.mubr.bf16.mxu1 %v8914_v7  ;;  %v9155_v49 = vld [vmem:[#allocation31_spill] sm:$0xff] }
 0x652   :  { %2492 = vmatpush1.bf16.msra.mxu0 %v9026_v5  ;;  %2533 = vmatpush1.bf16.msra.mxu1 %v9027_v32  ;;  %v9156_v5 = vld [vmem:[#allocation32_spill] sm:$0xff]  ;;  %v9157_v32 = vld [vmem:[#allocation33_spill] sm:$0xff] }
 0x653   :  { %2493 = vmatprep.subr.bf16.mxu0 %v9028_v8  ;;  %2534 = vmatprep.subr.bf16.mxu1 %v9029_v20  ;;  %v9158_v8 = vld [vmem:[#allocation34_spill] sm:$0xff]  ;;  %v9159_v20 = vld [vmem:[#allocation35_spill] sm:$0xff] }
 0x656   :  { %2494 = vmatpush1.bf16.msra.mxu0 %v9030_v35  ;;  %2535 = vmatpush1.bf16.msra.mxu1 %v9031_v24  ;;  %v9160_v35 = vld [vmem:[#allocation43_spill] sm:$0xff]  ;;  %v9161_v24 = vld [vmem:[#allocation45_spill] sm:$0xff] }
 0x657   :  { %2495 = vmatprep.subr.bf16.mxu0 %v9032_v6  ;;  %2536 = vmatprep.subr.bf16.mxu1 %v9033_v10  ;;  %v9162_v6 = vld [vmem:[#allocation44_spill] sm:$0xff]  ;;  %v9163_v10 = vld [vmem:[#allocation46_spill] sm:$0xff] }
 0x65a   :  { %2496 = vmatpush1.bf16.msra.mxu0 %v9034_v61  ;;  %2537 = vmatpush1.bf16.msra.mxu1 %v9035_v62  ;;  %v9164_v61 = vld [vmem:[#allocation18_spill] sm:$0xff]  ;;  %v9165_v62 = vld [vmem:[#allocation19_spill] sm:$0xff] }
 0x65b   :  { %2497 = vmatprep.subr.bf16.mxu0 %v9036_v21  ;;  %2538 = vmatprep.subr.bf16.mxu1 %v9037_v4  ;;  %v9166_v21 = vld [vmem:[#allocation20_spill] sm:$0xff]  ;;  %v9167_v4 = vld [vmem:[#allocation21_spill] sm:$0xff] }
 0x65e   :  { %2498 = vmatpush1.bf16.msra.mxu0 %v9038_v39  ;;  %2539 = vmatpush1.bf16.msra.mxu1 %v9039_v45  ;;  %v9168_v39 = vld [vmem:[#allocation22_spill] sm:$0xff]  ;;  %v9169_v45 = vld [vmem:[#allocation39_spill] sm:$0xff] }
 0x65f   :  { %2499 = vmatprep.subr.bf16.mxu0 %v9040_v37  ;;  %2540 = vmatprep.subr.bf16.mxu1 %v9041_v53  ;;  %v9170_v37 = vld [vmem:[#allocation37_spill] sm:$0xff]  ;;  %v9171_v53 = vld [vmem:[#allocation38_spill] sm:$0xff] }
 0x662   :  { %2500 = vmatpush1.bf16.msra.mxu0 %v9042_v26  ;;  %2541 = vmatpush1.bf16.msra.mxu1 %v9043_v27  ;;  %v9172_v26 = vld [vmem:[#allocation40_spill] sm:$0xff]  ;;  %v9173_v27 = vld [vmem:[#allocation67_spill] sm:$0xff] }
 0x663   :  { %2501 = vmatprep.subr.bf16.mxu0 %v9096_v1  ;;  %2542 = vmatprep.subr.bf16.mxu1 %v9097_v63  ;;  %v9174_v1 = vld [vmem:[#allocation68_spill] sm:$0xff]  ;;  %v9175_v63 = vld [vmem:[#allocation69_spill] sm:$0xff] }
 0x666   :  { %2502 = vmatpush1.bf16.msra.mxu0 %v9098_v12  ;;  %2543 = vmatpush1.bf16.msra.mxu1 %v9150_v33  ;;  %v9176_v12 = vld [vmem:[#allocation70_spill] sm:$0xff]  ;;  %v9182_v33 = vld [vmem:[#allocation84_spill] sm:$0xff] }
 0x667   :  { %2503 = vmatprep.subr.bf16.mxu0 %v9151_v38  ;;  %2544 = vmatprep.subr.bf16.mxu1 %v9152_v44  ;;  %v9183_v38 = vld [vmem:[#allocation85_spill] sm:$0xff]  ;;  %v9184_v44 = vld [vmem:[#allocation86_spill] sm:$0xff] }
 0x66a   :  { %2504 = vmatpush1.bf16.msra.mxu0 %v9153_v41  ;;  %2545 = vmatpush1.bf16.msra.mxu1 %v9154_v51  ;;  %v9185_v41 = vld [vmem:[#allocation87_spill] sm:$0xff]  ;;  %v9186_v51 = vld [vmem:[#allocation88_spill] sm:$0xff] }
 0x66b   :  { %2604 = vmatprep.subr.bf16.mxu0 %v9155_v49  ;;  %2645 = vmatprep.subr.bf16.mxu1 %v9156_v5  ;;  %v9187_v49 = vld [vmem:[#allocation89_spill] sm:$0xff]  ;;  %v9188_v5 = vld [vmem:[#allocation90_spill] sm:$0xff] }
 0x66d   :  { %2522 = vmatmul.mubr.bf16.vlgmr.msra.gmra.mxu0 %v7254_v16  ;;  %2563 = vmatmul.mubr.bf16.vlgmr.msra.gmra.mxu1 %v7254_v16  ;;  %v9181_v16 = vld [vmem:[#allocation75_spill] sm:$0xff] }
 0x66e   :  { %2605 = vmatpush1.bf16.msra.mxu0 %v9157_v32  ;;  %2646 = vmatpush1.bf16.msra.mxu1 %v9158_v8  ;;  %v340_v32 = vld [vmem:[%s8597_s7] sm:$0xf]  ;;  %v9189_v8 = vld [vmem:[#allocation36_spill] sm:$0xff] }
 0x66f   :  { %2606 = vmatprep.subr.bf16.mxu0 %v9159_v20  ;;  %2647 = vmatprep.subr.bf16.mxu1 %v9160_v35  ;;  %v9190_v20 = vsub.s32 0, %v9189_v8 }
 0x670   :  { %2636 = vmatprep.mubr.bf16.mxu0 %v8914_v7  ;;  %2677 = vmatprep.mubr.bf16.mxu1 %v8914_v7 }
 0x671   :  { %v7401_v35 = vrot.slane %v340_v32, %v9190_v20 }
 0x672   :  { %2607 = vmatpush1.bf16.msra.mxu0 %v9161_v24  ;;  %2648 = vmatpush1.bf16.msra.mxu1 %v9162_v6  ;;  %v9191_v24 = vsub.s32 2, %v9189_v8 }
 0x673   :  { %2608 = vmatprep.subr.bf16.mxu0 %v9163_v10  ;;  %2649 = vmatprep.subr.bf16.mxu1 %v9164_v61  ;;  %v9193_v10 = vsub.s32 1, %v9189_v8 }
 0x674   :  { %v7405_v6 = vrot.slane %v340_v32, %v9191_v24 }
 0x675   :  { %v7409_v61 = vrot.slane %v340_v32, %v9193_v10  ;;  %v9206_v10 = vld [vmem:[#allocation48_spill] sm:$0xff] }
 0x676   :  { %2609 = vmatpush1.bf16.msra.mxu0 %v9165_v62  ;;  %2650 = vmatpush1.bf16.msra.mxu1 %v9166_v21  ;;  %9192 = vst [vmem:[#allocation51_spill] sm:$0xff] %v7405_v6  ;;  %v9195_v62 = vsub.s32 3, %v9189_v8 }
 0x677   :  { %2610 = vmatprep.subr.bf16.mxu0 %v9167_v4  ;;  %2651 = vmatprep.subr.bf16.mxu1 %v9168_v39  ;;  %9194 = vst [vmem:[#allocation53_spill] sm:$0xff] %v7409_v61  ;;  %v9196_v4 = vld [vmem:[#allocation76_spill] sm:$0xff] }
 0x678   :  { %v7413_v21 = vrot.slane %v340_v32, %v9195_v62  ;;  %v2174_v39 = vadd.f32 %v9196_v4, %v7401_v35  ;;  %v9205_v32 = vld [vmem:[#allocation47_spill] sm:$0xff]  ;;  %v2081_v62 = vadd.f32 %v9206_v10, %v7409_v61  ;;  %v9207_v4 = vld [vmem:[#allocation50_spill] sm:$0xff] }
 0x679   :  { %v2082_v8 = vadd.f32 %v9205_v32, %v7405_v6  ;;  %v9214_v32 = vld [vmem:[#allocation55_spill] sm:$0xff] }
 0x67a   :  { %2611 = vmatpush1.bf16.msra.mxu0 %v9169_v45  ;;  %2652 = vmatpush1.bf16.msra.mxu1 %v9170_v37  ;;  %v9197_v45 = vld [vmem:[#allocation77_spill] sm:$0xff] }
 0x67b   :  { %2612 = vmatprep.subr.bf16.mxu0 %v9171_v53  ;;  %2653 = vmatprep.subr.bf16.mxu1 %v9172_v26  ;;  %v2176_v37 = vadd.f32 %v9197_v45, %v7405_v6 }
 0x67e   :  { %2613 = vmatpush1.bf16.msra.mxu0 %v9173_v27  ;;  %2654 = vmatpush1.bf16.msra.mxu1 %v9174_v1  ;;  %v9198_v27 = vld [vmem:[#allocation78_spill] sm:$0xff] }
 0x67f   :  { %2614 = vmatprep.subr.bf16.mxu0 %v9175_v63  ;;  %2655 = vmatprep.subr.bf16.mxu1 %v9176_v12  ;;  %v2175_v1 = vadd.f32 %v9198_v27, %v7409_v61  ;;  %v9199_v63 = vld [vmem:[#allocation99_spill] sm:$0xff] }
 0x680   :  { %v2177_v12 = vadd.f32 %v9199_v63, %v7413_v21 }
 0x682   :  { %2615 = vmatpush1.bf16.msra.mxu0 %v9177_v55  ;;  %2656 = vmatpush1.bf16.msra.mxu1 %v9178_v31 }
 0x683   :  { %2616 = vmatprep.subr.bf16.mxu0 %v9179_v52  ;;  %2657 = vmatprep.subr.bf16.mxu1 %v9180_v40 }
 0x686   :  { %2617 = vmatpush1.bf16.msra.mxu0 %v9181_v16  ;;  %2658 = vmatpush1.bf16.msra.mxu1 %v9182_v33 }
 0x687   :  { %2618 = vmatprep.subr.bf16.mxu0 %v9183_v38  ;;  %2659 = vmatprep.subr.bf16.mxu1 %v9184_v44 }
 0x68a   :  { %2619 = vmatpush1.bf16.msra.mxu0 %v9185_v41  ;;  %2660 = vmatpush1.bf16.msra.mxu1 %v9186_v51 }
 0x68b   :  { %2698 = vmatprep.subr.bf16.mxu0 %v9187_v49  ;;  %2739 = vmatprep.subr.bf16.mxu1 %v9188_v5  ;;  %v9204_v49 = vld [vmem:[#allocation49_spill] sm:$0xff] }
 0x68c   :  { %v2080_v5 = vadd.f32 %v9204_v49, %v7401_v35 }
 0x6ed   :  { %v2335_v53 = vpop.f32.mrf.mxu0  ;;  %v2376_v26 = vpop.f32.mrf.mxu1 }
 0x6ee   :  { %v7423_v55 = vadd.f32 %v2335_v53, %v2174_v39  ;;  %v7425_v31 = vadd.f32 %v2376_v26, %v2176_v37  ;;  %v2083_v39 = vadd.f32 %v9207_v4, %v7413_v21 }
 0x6ef   :  { %v2337_v52 = vpop.f32.mrf.mxu0  ;;  %v2378_v40 = vpop.f32.mrf.mxu1 }
 0x6f0   :  { %9200 = vst [vmem:[#allocation52_spill] sm:$0xff] %v7423_v55  ;;  %9201 = vst [vmem:[#allocation54_spill] sm:$0xff] %v7425_v31  ;;  %v7427_v16 = vadd.f32 %v2337_v52, %v2175_v1  ;;  %v7429_v33 = vadd.f32 %v2378_v40, %v2177_v12  ;;  %v7706_v55 = vld [vmem:[%s8595_s5 + $0xe0] ss:$16 sps:$4 sm:$0xff]  }
 0x6f1   :  { %v2339_v38 = vpop.f32.mrf.mxu0  ;;  %v2380_v44 = vpop.f32.mrf.mxu1  ;;  %9230 = vst [vmem:[#allocation22_spill] sm:$0xff] %v7706_v55 }
 0x6f2   :  { %9202 = vst [vmem:[#allocation79_spill] sm:$0xff] %v7427_v16  ;;  %9203 = vst [vmem:[#allocation80_spill] sm:$0xff] %v7429_v33 }
 0x6f3   :  { %v2340_v41 = vpop.f32.mrf.mxu0  ;;  %v2381_v51 = vpop.f32.mrf.mxu1 }
 0x6f4   :  { %v9212_v41 = vld [vmem:[#allocation41_spill] sm:$0xff] }
 0x6f5   :  { %v9213_v51 = vld [vmem:[#allocation57_spill] sm:$0xff] }
 0x6f6   :  { %v223_v49 = vadd.f32 %v9213_v51, %v9212_v41  ;;  %v7750_v41 = vld [vmem:[%s8595_s5 + $0xac] ss:$16 sps:$4 sm:$0xff]  }
 0x6f7   :  { %9237 = vst [vmem:[#allocation69_spill] sm:$0xff] %v7750_v41 }
 0x70d   :  { %v2429_v20 = vpop.f32.mrf.mxu0  ;;  %v2470_v24 = vpop.f32.mrf.mxu1 }
 0x70e   :  { %v7439_v45 = vadd.f32 %v2429_v20, %v2080_v5  ;;  %v7441_v37 = vadd.f32 %v2470_v24, %v2082_v8 }
 0x70f   :  { %v2431_v53 = vpop.f32.mrf.mxu0  ;;  %v2472_v26 = vpop.f32.mrf.mxu1 }
 0x710   :  { %9208 = vst [vmem:[#allocation81_spill] sm:$0xff] %v7439_v45  ;;  %9209 = vst [vmem:[#allocation82_spill] sm:$0xff] %v7441_v37  ;;  %v7443_v27 = vadd.f32 %v2431_v53, %v2081_v62  ;;  %v7445_v1 = vadd.f32 %v2472_v26, %v2083_v39  ;;  %v7718_v37 = vld [vmem:[%s8595_s5 + $0xc4] ss:$16 sps:$4 sm:$0xff]   ;;  %v7738_v45 = vld [vmem:[%s8595_s5 + $0xc8] ss:$16 sps:$4 sm:$0xff]  }
 0x711   :  { %v2433_v63 = vpop.f32.mrf.mxu0  ;;  %v2474_v12 = vpop.f32.mrf.mxu1  ;;  %9232 = vst [vmem:[#allocation37_spill] sm:$0xff] %v7718_v37  ;;  %9235 = vst [vmem:[#allocation67_spill] sm:$0xff] %v7738_v45 }
 0x712   :  { %9210 = vst [vmem:[#allocation83_spill] sm:$0xff] %v7443_v27  ;;  %9211 = vst [vmem:[#allocation31_spill] sm:$0xff] %v7445_v1  ;;  %v9215_v63 = vld [vmem:[#allocation56_spill] sm:$0xff]  ;;  %v7712_v1 = vld [vmem:[%s8595_s5 + $0xe8] ss:$16 sps:$4 sm:$0xff]  }
 0x713   :  { %v2434_v52 = vpop.f32.mrf.mxu0  ;;  %v2475_v40 = vpop.f32.mrf.mxu1  ;;  %9231 = vst [vmem:[#allocation39_spill] sm:$0xff] %v7712_v1  ;;  %v7732_v27 = vld [vmem:[%s8595_s5 + $0xc0] ss:$16 sps:$4 sm:$0xff]  }
 0x714   :  { %v9216_v52 = vld [vmem:[#allocation42_spill] sm:$0xff]  ;;  %9234 = vst [vmem:[#allocation40_spill] sm:$0xff] %v7732_v27 }
 0x715   :  { %v9217_v40 = vld [vmem:[#allocation58_spill] sm:$0xff] }
 0x716   :  { %v296_v33 = vadd.f32 %v9217_v40, %v9216_v52  ;;  %v7614_v40 = vld [vmem:[%s8594_s4 + $0x68] ss:$16 sps:$4 sm:$0xff]   ;;  %v7744_v52 = vld [vmem:[%s8595_s5 + $0xa4] ss:$16 sps:$4 sm:$0xff]  }
 0x717   :  { %9236 = vst [vmem:[#allocation68_spill] sm:$0xff] %v7744_v52 }
 0x72d   :  { %v2523_v38 = vpop.f32.mrf.mxu0  ;;  %v2564_v44 = vpop.f32.mrf.mxu1 }
 0x72e   :  { %v2571_v5 = vadd.f32 %v2523_v38, %v9214_v32  ;;  %v2573_v12 = vadd.f32 %v2564_v44, %v9215_v63  ;;  %v7602_v63 = vld [vmem:[%s8594_s4 + $0x6c] ss:$16 sps:$4 sm:$0xff]  }
 0x72f   :  { %v2525_v20 = vpop.f32.mrf.mxu0  ;;  %v2566_v8 = vpop.f32.mrf.mxu1 }
 0x730   :  { %v4813_v24 = vmul.f32 -1.442695, %v2571_v5  ;;  %v2572_v10 = vadd.f32 %v2525_v20, %v223_v49  ;;  %v4815_v31 = vmul.f32 -1.442695, %v2573_v12  ;;  %v2574_v51 = vadd.f32 %v2566_v8, %v296_v33  ;;  %v7608_v12 = vld [vmem:[%s8594_s4 + $0x60] ss:$16 sps:$4 sm:$0xff]  }
 0x731   :  { %v2527_v4 = vpop.f32.mrf.mxu0  ;;  %v2568_v62 = vpop.f32.mrf.mxu1 }
 0x732   :  { %5217 = vpow2.f32 %v4813_v24  ;;  %v4814_v39 = vmul.f32 -1.442695, %v2572_v10 }
 0x733   :  { %v2528_v53 = vpop.f32.mrf.mxu0  ;;  %v2569_v26 = vpop.f32.mrf.mxu1 }
 0x734   :  { %5219 = vpow2.f32 %v4814_v39  ;;  %v7590_v53 = vld [vmem:[%s8594_s4 + $0x88] ss:$16 sps:$4 sm:$0xff]   ;;  %v7596_v26 = vld [vmem:[%s8594_s4 + $0x64] ss:$16 sps:$4 sm:$0xff]  }
 0x735   :  { %5221 = vpow2.f32 %v4815_v31 }
 0x736   :  { %5223 = vtanh.f32 %v2574_v51  ;;  %v7620_v51 = vld [vmem:[%s8594_s4 + $0x44] ss:$16 sps:$4 sm:$0xff]  }
 0x73f   :  { %v5218_v16 = vpop.eup %5217 }
 0x740   :  { %v2584_v38 = vadd.f32 1.0, %v5218_v16 }
 0x741   :  { %v5220_v32 = vpop.eup %5219 }
 0x742   :  { %5225 = vrcp.f32 %v2584_v38  ;;  %v2585_v49 = vadd.f32 1.0, %v5220_v32  ;;  %v5222_v5 = vpop.eup %5221  ;;  %v7626_v38 = vld [vmem:[%s8594_s4 + $0x4c] ss:$16 sps:$4 sm:$0xff]   ;;  %v7632_v32 = vld [vmem:[%s8594_s4 + $0x40] ss:$16 sps:$4 sm:$0xff]  }
 0x743   :  { %v5224_v20 = vpop.eup %5223  ;;  %v2586_v62 = vadd.f32 1.0, %v5222_v5  ;;  %9218 = vst [vmem:[#allocation32_spill] sm:$0xff] %v7632_v32  ;;  %v7644_v5 = vld [vmem:[%s8594_s4 + $0x24] ss:$16 sps:$4 sm:$0xff]  }
 0x744   :  { %5227 = vrcp.f32 %v2585_v49  ;;  %v7638_v49 = vld [vmem:[%s8594_s4 + $0x48] ss:$16 sps:$4 sm:$0xff]   ;;  %9220 = vst [vmem:[#allocation34_spill] sm:$0xff] %v7644_v5 }
 0x745   :  { %5229 = vrcp.f32 %v2586_v62  ;;  %9219 = vst [vmem:[#allocation33_spill] sm:$0xff] %v7638_v49  ;;  %v7674_v62 = vld [vmem:[%s8594_s4 + $0xc] ss:$16 sps:$4 sm:$0xff]  }
 0x746   :  { %9225 = vst [vmem:[#allocation46_spill] sm:$0xff] %v7674_v62 }
 0x74f   :  { %v5226_v24 = vpop.eup %5225 }
 0x750   :  { %v2595_v10 = vmul.f32 %v5226_v24, %v5224_v20  ;;  %v7650_v20 = vld [vmem:[%s8594_s4 + $0x2c] ss:$16 sps:$4 sm:$0xff]   ;;  %v7656_v24 = vld [vmem:[%s8594_s4 + $0x20] ss:$16 sps:$4 sm:$0xff]  }
 0x751   :  { %v5228_v4 = vpop.eup %5227  ;;  %9221 = vst [vmem:[#allocation35_spill] sm:$0xff] %v7650_v20  ;;  %9222 = vst [vmem:[#allocation43_spill] sm:$0xff] %v7656_v24 }
 0x752   :  { %v2594_v44 = vmul.f32 %v5228_v4, %v7251_v57  ;;  %v5230_v16 = vpop.eup %5229  ;;  %v7584_v57 = vld [vmem:[%s8594_s4 + $0x80] ss:$16 sps:$4 sm:$0xff]   ;;  %v7668_v4 = vld [vmem:[%s8594_s4 + $0x4] ss:$16 sps:$4 sm:$0xff]  }
 0x753   :  { %9224 = vst [vmem:[#allocation44_spill] sm:$0xff] %v7668_v4 }
 0x754   :  { %v7454_v39 = vadd.f32 %v2595_v10, %v2594_v44  ;;  %v7662_v10 = vld [vmem:[%s8594_s4 + $0x28] ss:$16 sps:$4 sm:$0xff]   ;;  %v7680_v44 = vld [vmem:[%s8594_s4] ss:$16 sps:$4 sm:$0xff]  }
 0x755   :  { %9223 = vst [vmem:[#allocation45_spill] sm:$0xff] %v7662_v10  ;;  %9226 = vst [vmem:[#allocation18_spill] sm:$0xff] %v7680_v44 }
 0x756   :  { %5231 = vtanh.f32 %v7454_v39 }
 0x763   :  { %v5232_v31 = vpop.eup %5231 }
 0x764   :  { %v2598_v33 = vmul.f32 %v5232_v31, %v5230_v16  ;;  %v7686_v16 = vld [vmem:[%s8594_s4 + $0x8] ss:$16 sps:$4 sm:$0xff]   ;;  %v7692_v31 = vld [vmem:[%s8595_s5 + $0xe4] ss:$16 sps:$4 sm:$0xff]  }
 0x765   :  { %9227 = vst [vmem:[#allocation19_spill] sm:$0xff] %v7686_v16  ;;  %9228 = vst [vmem:[#allocation20_spill] sm:$0xff] %v7692_v31 }
 0x766   :  { %v7457_v8 = vpack.c.bf16 %v2598_v33, %v2598_v33  ;;  %v7698_v33 = vld [vmem:[%s8595_s5 + $0xec] ss:$16 sps:$4 sm:$0xff]  }
 0x767   :  { %9229 = vst [vmem:[#allocation21_spill] sm:$0xff] %v7698_v33 }
 0x768   :  { %2637 = vmatmul.mubr.bf16.vlgmr.msra.gmra.mxu0 %v7457_v8  ;;  %2678 = vmatmul.mubr.bf16.vlgmr.msra.gmra.mxu1 %v7457_v8 }
 0x769   :  { %2699 = vmatpush1.bf16.msra.mxu0 %v7096_v58  ;;  %2740 = vmatpush1.bf16.msra.mxu1 %v7099_v25  ;;  %v7496_v58 = vld [vmem:[%s8594_s4 + $0xe4] ss:$16 sps:$4 sm:$0xff]   ;;  %v7502_v25 = vld [vmem:[%s8594_s4 + $0xec] ss:$16 sps:$4 sm:$0xff]  }
 0x76a   :  { %2700 = vmatprep.subr.bf16.mxu0 %v7102_v11  ;;  %2741 = vmatprep.subr.bf16.mxu1 %v7105_v54  ;;  %v7510_v11 = vld [vmem:[%s8594_s4 + $0xe0] ss:$16 sps:$4 sm:$0xff]   ;;  %v7516_v54 = vld [vmem:[%s8594_s4 + $0xe8] ss:$16 sps:$4 sm:$0xff]  }
 0x76b   :  { %2730 = vmatprep.mubr.bf16.mxu0 %v8914_v7  ;;  %2771 = vmatprep.mubr.bf16.mxu1 %v8914_v7 }
 0x76d   :  { %2701 = vmatpush1.bf16.msra.mxu0 %v7110_v34  ;;  %2742 = vmatpush1.bf16.msra.mxu1 %v7113_v60  ;;  %v7522_v34 = vld [vmem:[%s8594_s4 + $0xc4] ss:$16 sps:$4 sm:$0xff]   ;;  %v7528_v60 = vld [vmem:[%s8594_s4 + $0xcc] ss:$16 sps:$4 sm:$0xff]  }
 0x76e   :  { %2702 = vmatprep.subr.bf16.mxu0 %v7116_v17  ;;  %2743 = vmatprep.subr.bf16.mxu1 %v7119_v28  ;;  %v7536_v17 = vld [vmem:[%s8594_s4 + $0xc0] ss:$16 sps:$4 sm:$0xff]   ;;  %v7542_v28 = vld [vmem:[%s8594_s4 + $0xc8] ss:$16 sps:$4 sm:$0xff]  }
 0x771   :  { %2703 = vmatpush1.bf16.msra.mxu0 %v7122_v23  ;;  %2744 = vmatpush1.bf16.msra.mxu1 %v7125_v14  ;;  %v7548_v23 = vld [vmem:[%s8594_s4 + $0xa4] ss:$16 sps:$4 sm:$0xff]   ;;  %v7554_v14 = vld [vmem:[%s8594_s4 + $0xac] ss:$16 sps:$4 sm:$0xff]  }
 0x772   :  { %2704 = vmatprep.subr.bf16.mxu0 %v7128_v59  ;;  %2745 = vmatprep.subr.bf16.mxu1 %v7131_v29  ;;  %v7560_v59 = vld [vmem:[%s8594_s4 + $0xa0] ss:$16 sps:$4 sm:$0xff]   ;;  %v7566_v29 = vld [vmem:[%s8594_s4 + $0xa8] ss:$16 sps:$4 sm:$0xff]  }
 0x775   :  { %2705 = vmatpush1.bf16.msra.mxu0 %v7134_v13  ;;  %2746 = vmatpush1.bf16.msra.mxu1 %v7137_v22  ;;  %v7572_v13 = vld [vmem:[%s8594_s4 + $0x84] ss:$16 sps:$4 sm:$0xff]   ;;  %v7578_v22 = vld [vmem:[%s8594_s4 + $0x8c] ss:$16 sps:$4 sm:$0xff]  }
 0x776   :  { %2706 = vmatprep.subr.bf16.mxu0 %v7274_v15  ;;  %2747 = vmatprep.subr.bf16.mxu1 %v7277_v9 }
 0x779   :  { %2707 = vmatpush1.bf16.msra.mxu0 %v7280_v36  ;;  %2748 = vmatpush1.bf16.msra.mxu1 %v7283_v30 }
 0x77a   :  { %2708 = vmatprep.subr.bf16.mxu0 %v7286_v2  ;;  %2749 = vmatprep.subr.bf16.mxu1 %v7289_v43 }
 0x77d   :  { %2709 = vmatpush1.bf16.msra.mxu0 %v7292_v47  ;;  %2750 = vmatpush1.bf16.msra.mxu1 %v7295_v56 }
 0x77e   :  { %2710 = vmatprep.subr.bf16.mxu0 %v7298_v42  ;;  %2751 = vmatprep.subr.bf16.mxu1 %v7301_v19 }
 0x781   :  { %2711 = vmatpush1.bf16.msra.mxu0 %v7304_v46  ;;  %2752 = vmatpush1.bf16.msra.mxu1 %v7307_v0 }
 0x782   :  { %2712 = vmatprep.subr.bf16.mxu0 %v7310_v50  ;;  %2753 = vmatprep.subr.bf16.mxu1 %v7313_v3 }
 0x785   :  { %2713 = vmatpush1.bf16.msra.mxu0 %v7316_v18  ;;  %2754 = vmatpush1.bf16.msra.mxu1 %v7319_v48 }
 0x786   :  { %2792 = vmatprep.subr.bf16.mxu0 %v7496_v58  ;;  %2833 = vmatprep.subr.bf16.mxu1 %v7502_v25 }
 0x788   :  { %2731 = vmatmul.mubr.bf16.vlgmr.msra.gmra.mxu0 %v7457_v8  ;;  %2772 = vmatmul.mubr.bf16.vlgmr.msra.gmra.mxu1 %v7457_v8 }
 0x789   :  { %2793 = vmatpush1.bf16.msra.mxu0 %v7510_v11  ;;  %2834 = vmatpush1.bf16.msra.mxu1 %v7516_v54 }
 0x78a   :  { %2794 = vmatprep.subr.bf16.mxu0 %v7522_v34  ;;  %2835 = vmatprep.subr.bf16.mxu1 %v7528_v60 }
 0x78b   :  { %2824 = vmatprep.mubr.bf16.mxu0 %v8914_v7  ;;  %2865 = vmatprep.mubr.bf16.mxu1 %v8914_v7 }
 0x78d   :  { %2795 = vmatpush1.bf16.msra.mxu0 %v7536_v17  ;;  %2836 = vmatpush1.bf16.msra.mxu1 %v7542_v28 }
 0x78e   :  { %2796 = vmatprep.subr.bf16.mxu0 %v7548_v23  ;;  %2837 = vmatprep.subr.bf16.mxu1 %v7554_v14 }
 0x791   :  { %2797 = vmatpush1.bf16.msra.mxu0 %v7560_v59  ;;  %2838 = vmatpush1.bf16.msra.mxu1 %v7566_v29 }
 0x792   :  { %2798 = vmatprep.subr.bf16.mxu0 %v7572_v13  ;;  %2839 = vmatprep.subr.bf16.mxu1 %v7578_v22 }
 0x795   :  { %2799 = vmatpush1.bf16.msra.mxu0 %v7584_v57  ;;  %2840 = vmatpush1.bf16.msra.mxu1 %v7590_v53 }
 0x796   :  { %2800 = vmatprep.subr.bf16.mxu0 %v7596_v26  ;;  %2841 = vmatprep.subr.bf16.mxu1 %v7602_v63 }
 0x799   :  { %2801 = vmatpush1.bf16.msra.mxu0 %v7608_v12  ;;  %2842 = vmatpush1.bf16.msra.mxu1 %v7614_v40 }
 0x79a   :  { %2802 = vmatprep.subr.bf16.mxu0 %v7620_v51  ;;  %2843 = vmatprep.subr.bf16.mxu1 %v7626_v38 }
 0x79d   :  { %2803 = vmatpush1.bf16.msra.mxu0 %v7632_v32  ;;  %2844 = vmatpush1.bf16.msra.mxu1 %v7638_v49  ;;  %v9270_v49 = vld [vmem:[#allocation91_spill] sm:$0xff]  ;;  %v9271_v32 = vld [vmem:[#allocation92_spill] sm:$0xff] }
 0x79e   :  { %2804 = vmatprep.subr.bf16.mxu0 %v7644_v5  ;;  %2845 = vmatprep.subr.bf16.mxu1 %v7650_v20 }
 0x7a1   :  { %2805 = vmatpush1.bf16.msra.mxu0 %v7656_v24  ;;  %2846 = vmatpush1.bf16.msra.mxu1 %v7662_v10 }
 0x7a2   :  { %2806 = vmatprep.subr.bf16.mxu0 %v7668_v4  ;;  %2847 = vmatprep.subr.bf16.mxu1 %v7674_v62 }
 0x7a5   :  { %2807 = vmatpush1.bf16.msra.mxu0 %v7680_v44  ;;  %2848 = vmatpush1.bf16.msra.mxu1 %v7686_v16 }
 0x7a6   :  { %2907 = vmatprep.subr.bf16.mxu0 %v7692_v31  ;;  %2948 = vmatprep.subr.bf16.mxu1 %v7698_v33  ;;  %v9264_v31 = vld [vmem:[#allocation97_spill] sm:$0xff] }
 0x7a7   :  { %v1872_v16 = vadd.f32 %v9264_v31, %v7409_v61  ;;  %v1777_v31 = vadd.f32 %v9270_v49, %v7401_v35 }
 0x7a8   :  { %2825 = vmatmul.mubr.bf16.vlgmr.msra.gmra.mxu0 %v7457_v8  ;;  %2866 = vmatmul.mubr.bf16.vlgmr.msra.gmra.mxu1 %v7457_v8  ;;  %v7724_v8 = vld [vmem:[%s8595_s5 + $0xcc] ss:$16 sps:$4 sm:$0xff]  }
 0x7a9   :  { %2908 = vmatpush1.bf16.msra.mxu0 %v7706_v55  ;;  %2949 = vmatpush1.bf16.msra.mxu1 %v7712_v1  ;;  %9233 = vst [vmem:[#allocation38_spill] sm:$0xff] %v7724_v8 }
 0x7aa   :  { %2909 = vmatprep.subr.bf16.mxu0 %v7718_v37  ;;  %2950 = vmatprep.subr.bf16.mxu1 %v7724_v8  ;;  %v7888_v8 = vld [vmem:[#allocation4 + $0xec] ss:$16 sps:$4 sm:$0xff]  }
 0x7ab   :  { %2939 = vmatprep.mubr.bf16.mxu0 %v8914_v7  ;;  %2980 = vmatprep.mubr.bf16.mxu1 %v8914_v7  ;;  %9261 = vst [vmem:[#allocation55_spill] sm:$0xff] %v7888_v8 }
 0x7ad   :  { %2910 = vmatpush1.bf16.msra.mxu0 %v7732_v27  ;;  %2951 = vmatpush1.bf16.msra.mxu1 %v7738_v45  ;;  %v7756_v27 = vld [vmem:[%s8595_s5 + $0xa0] ss:$16 sps:$4 sm:$0xff]   ;;  %v7762_v45 = vld [vmem:[%s8595_s5 + $0xa8] ss:$16 sps:$4 sm:$0xff]  }
 0x7ae   :  { %2911 = vmatprep.subr.bf16.mxu0 %v7744_v52  ;;  %2952 = vmatprep.subr.bf16.mxu1 %v7750_v41  ;;  %9238 = vst [vmem:[#allocation70_spill] sm:$0xff] %v7756_v27  ;;  %9239 = vst [vmem:[#allocation71_spill] sm:$0xff] %v7762_v45  ;;  %v7768_v52 = vld [vmem:[%s8595_s5 + $0x84] ss:$16 sps:$4 sm:$0xff]   ;;  %v7774_v41 = vld [vmem:[%s8595_s5 + $0x8c] ss:$16 sps:$4 sm:$0xff]  }
 0x7af   :  { %9240 = vst [vmem:[#allocation72_spill] sm:$0xff] %v7768_v52  ;;  %9241 = vst [vmem:[#allocation73_spill] sm:$0xff] %v7774_v41 }
 0x7b1   :  { %2912 = vmatpush1.bf16.msra.mxu0 %v7756_v27  ;;  %2953 = vmatpush1.bf16.msra.mxu1 %v7762_v45  ;;  %v7780_v27 = vld [vmem:[%s8595_s5 + $0x80] ss:$16 sps:$4 sm:$0xff]   ;;  %v7786_v45 = vld [vmem:[%s8595_s5 + $0x88] ss:$16 sps:$4 sm:$0xff]  }
 0x7b2   :  { %2913 = vmatprep.subr.bf16.mxu0 %v7768_v52  ;;  %2954 = vmatprep.subr.bf16.mxu1 %v7774_v41  ;;  %9242 = vst [vmem:[#allocation74_spill] sm:$0xff] %v7780_v27  ;;  %9243 = vst [vmem:[#allocation75_spill] sm:$0xff] %v7786_v45  ;;  %v7792_v52 = vld [vmem:[%s8595_s5 + $0x64] ss:$16 sps:$4 sm:$0xff]   ;;  %v7798_v41 = vld [vmem:[%s8595_s5 + $0x6c] ss:$16 sps:$4 sm:$0xff]  }
 0x7b3   :  { %9244 = vst [vmem:[#allocation84_spill] sm:$0xff] %v7792_v52  ;;  %9245 = vst [vmem:[#allocation85_spill] sm:$0xff] %v7798_v41 }
 0x7b5   :  { %2914 = vmatpush1.bf16.msra.mxu0 %v7780_v27  ;;  %2955 = vmatpush1.bf16.msra.mxu1 %v7786_v45  ;;  %v7804_v27 = vld [vmem:[%s8595_s5 + $0x60] ss:$16 sps:$4 sm:$0xff]   ;;  %v7810_v45 = vld [vmem:[%s8595_s5 + $0x68] ss:$16 sps:$4 sm:$0xff]  }
 0x7b6   :  { %2915 = vmatprep.subr.bf16.mxu0 %v7792_v52  ;;  %2956 = vmatprep.subr.bf16.mxu1 %v7798_v41  ;;  %9246 = vst [vmem:[#allocation86_spill] sm:$0xff] %v7804_v27  ;;  %9247 = vst [vmem:[#allocation87_spill] sm:$0xff] %v7810_v45  ;;  %v7816_v52 = vld [vmem:[%s8595_s5 + $0x44] ss:$16 sps:$4 sm:$0xff]   ;;  %v7822_v41 = vld [vmem:[%s8595_s5 + $0x4c] ss:$16 sps:$4 sm:$0xff]  }
 0x7b7   :  { %9248 = vst [vmem:[#allocation88_spill] sm:$0xff] %v7816_v52  ;;  %9249 = vst [vmem:[#allocation89_spill] sm:$0xff] %v7822_v41 }
 0x7b9   :  { %2916 = vmatpush1.bf16.msra.mxu0 %v7804_v27  ;;  %2957 = vmatpush1.bf16.msra.mxu1 %v7810_v45  ;;  %v7828_v27 = vld [vmem:[%s8595_s5 + $0x40] ss:$16 sps:$4 sm:$0xff]   ;;  %v7834_v45 = vld [vmem:[%s8595_s5 + $0x48] ss:$16 sps:$4 sm:$0xff]  }
 0x7ba   :  { %2917 = vmatprep.subr.bf16.mxu0 %v7816_v52  ;;  %2958 = vmatprep.subr.bf16.mxu1 %v7822_v41  ;;  %9250 = vst [vmem:[#allocation90_spill] sm:$0xff] %v7828_v27  ;;  %9251 = vst [vmem:[#allocation36_spill] sm:$0xff] %v7834_v45  ;;  %v7840_v52 = vld [vmem:[%s8595_s5 + $0x24] ss:$16 sps:$4 sm:$0xff]   ;;  %v7846_v41 = vld [vmem:[%s8595_s5 + $0x2c] ss:$16 sps:$4 sm:$0xff]  }
 0x7bb   :  { %9252 = vst [vmem:[#allocation76_spill] sm:$0xff] %v7840_v52  ;;  %9253 = vst [vmem:[#allocation77_spill] sm:$0xff] %v7846_v41 }
 0x7bd   :  { %2918 = vmatpush1.bf16.msra.mxu0 %v7828_v27  ;;  %2959 = vmatpush1.bf16.msra.mxu1 %v7834_v45  ;;  %v7852_v27 = vld [vmem:[%s8595_s5 + $0x20] ss:$16 sps:$4 sm:$0xff]   ;;  %v7858_v45 = vld [vmem:[%s8595_s5 + $0x28] ss:$16 sps:$4 sm:$0xff]  }
 0x7be   :  { %2919 = vmatprep.subr.bf16.mxu0 %v7840_v52  ;;  %2960 = vmatprep.subr.bf16.mxu1 %v7846_v41  ;;  %9254 = vst [vmem:[#allocation78_spill] sm:$0xff] %v7852_v27  ;;  %9255 = vst [vmem:[#allocation99_spill] sm:$0xff] %v7858_v45  ;;  %v7864_v52 = vld [vmem:[%s8595_s5 + $0x4] ss:$16 sps:$4 sm:$0xff]   ;;  %v7870_v41 = vld [vmem:[%s8595_s5 + $0xc] ss:$16 sps:$4 sm:$0xff]  }
 0x7bf   :  { %9256 = vst [vmem:[#allocation49_spill] sm:$0xff] %v7864_v52  ;;  %9257 = vst [vmem:[#allocation47_spill] sm:$0xff] %v7870_v41 }
 0x7c1   :  { %2920 = vmatpush1.bf16.msra.mxu0 %v7852_v27  ;;  %2961 = vmatpush1.bf16.msra.mxu1 %v7858_v45  ;;  %v7876_v27 = vld [vmem:[%s8595_s5] ss:$16 sps:$4 sm:$0xff]   ;;  %v7882_v45 = vld [vmem:[%s8595_s5 + $0x8] ss:$16 sps:$4 sm:$0xff]  }
 0x7c2   :  { %2921 = vmatprep.subr.bf16.mxu0 %v7864_v52  ;;  %2962 = vmatprep.subr.bf16.mxu1 %v7870_v41  ;;  %9258 = vst [vmem:[#allocation48_spill] sm:$0xff] %v7876_v27  ;;  %9259 = vst [vmem:[#allocation50_spill] sm:$0xff] %v7882_v45  ;;  %v7885_v52 = vld [vmem:[#allocation4 + $0xe4] ss:$16 sps:$4 sm:$0xff]   ;;  %v9262_v41 = vld [vmem:[#allocation95_spill] sm:$0xff] }
 0x7c3   :  { %9260 = vst [vmem:[#allocation57_spill] sm:$0xff] %v7885_v52  ;;  %v1871_v37 = vadd.f32 %v9262_v41, %v7401_v35 }
 0x7c5   :  { %2922 = vmatpush1.bf16.msra.mxu0 %v7876_v27  ;;  %2963 = vmatpush1.bf16.msra.mxu1 %v7882_v45  ;;  %v9263_v27 = vld [vmem:[#allocation96_spill] sm:$0xff]  ;;  %v9265_v45 = vld [vmem:[#allocation98_spill] sm:$0xff] }
 0x7c6   :  { %3001 = vmatprep.subr.bf16.mxu0 %v7885_v52  ;;  %3042 = vmatprep.subr.bf16.mxu1 %v7888_v8  ;;  %v1873_v1 = vadd.f32 %v9263_v27, %v7405_v6  ;;  %v1874_v44 = vadd.f32 %v9265_v45, %v7413_v21  ;;  %v1779_v45 = vadd.f32 %v9271_v32, %v7405_v6 }
 0x828   :  { %v2638_v55 = vpop.f32.mrf.mxu0  ;;  %v2679_v33 = vpop.f32.mrf.mxu1 }
 0x829   :  { %v7899_v62 = vadd.f32 %v2638_v55, %v1871_v37  ;;  %v7901_v52 = vadd.f32 %v2679_v33, %v1873_v1  ;;  %v9272_v1 = vld [vmem:[#allocation93_spill] sm:$0xff] }
 0x82a   :  { %v2640_v4 = vpop.f32.mrf.mxu0  ;;  %v2681_v8 = vpop.f32.mrf.mxu1  ;;  %v1778_v33 = vadd.f32 %v9272_v1, %v7409_v61  ;;  %v9278_v1 = vld [vmem:[#allocation59_spill] sm:$0xff] }
 0x82b   :  { %9266 = vst [vmem:[#allocation56_spill] sm:$0xff] %v7899_v62  ;;  %9267 = vst [vmem:[#allocation58_spill] sm:$0xff] %v7901_v52  ;;  %v7903_v10 = vadd.f32 %v2640_v4, %v1872_v16  ;;  %v7905_v41 = vadd.f32 %v2681_v8, %v1874_v44  ;;  %v9273_v4 = vld [vmem:[#allocation94_spill] sm:$0xff] }
 0x82c   :  { %v2642_v24 = vpop.f32.mrf.mxu0  ;;  %v2683_v27 = vpop.f32.mrf.mxu1  ;;  %v1780_v16 = vadd.f32 %v9273_v4, %v7413_v21 }
 0x82d   :  { %9268 = vst [vmem:[#allocation95_spill] sm:$0xff] %v7903_v10  ;;  %9269 = vst [vmem:[#allocation96_spill] sm:$0xff] %v7905_v41 }
 0x82e   :  { %v2643_v20 = vpop.f32.mrf.mxu0  ;;  %v2684_v5 = vpop.f32.mrf.mxu1 }
 0x848   :  { %v2732_v55 = vpop.f32.mrf.mxu0  ;;  %v2773_v37 = vpop.f32.mrf.mxu1 }
 0x849   :  { %v7915_v44 = vadd.f32 %v2732_v55, %v1777_v31  ;;  %v7917_v24 = vadd.f32 %v2773_v37, %v1779_v45  ;;  %v9279_v55 = vld [vmem:[#allocation61_spill] sm:$0xff] }
 0x84a   :  { %v2734_v20 = vpop.f32.mrf.mxu0  ;;  %v2775_v5 = vpop.f32.mrf.mxu1 }
 0x84b   :  { %9274 = vst [vmem:[#allocation97_spill] sm:$0xff] %v7915_v44  ;;  %9275 = vst [vmem:[#allocation98_spill] sm:$0xff] %v7917_v24  ;;  %v7919_v8 = vadd.f32 %v2734_v20, %v1778_v33  ;;  %v7921_v49 = vadd.f32 %v2775_v5, %v1780_v16  ;;  %v9280_v5 = vld [vmem:[#allocation60_spill] sm:$0xff] }
 0x84c   :  { %v2736_v27 = vpop.f32.mrf.mxu0  ;;  %v2777_v32 = vpop.f32.mrf.mxu1 }
 0x84d   :  { %9276 = vst [vmem:[#allocation91_spill] sm:$0xff] %v7919_v8  ;;  %9277 = vst [vmem:[#allocation92_spill] sm:$0xff] %v7921_v49 }
 0x84e   :  { %v2737_v41 = vpop.f32.mrf.mxu0  ;;  %v2778_v52 = vpop.f32.mrf.mxu1 }
 0x84f   :  { %v9281_v52 = vld [vmem:[#allocation62_spill] sm:$0xff] }
 0x868   :  { %v2826_v10 = vpop.f32.mrf.mxu0  ;;  %v2867_v62 = vpop.f32.mrf.mxu1 }
 0x869   :  { %v2874_v61 = vadd.f32 %v2826_v10, %v9278_v1  ;;  %v2876_v27 = vadd.f32 %v2867_v62, %v9280_v5  ;;  %v7944_v5 = vld [vmem:[#allocation4 + $0xcc] ss:$16 sps:$4 sm:$0xff]  }
 0x86a   :  { %v2828_v6 = vpop.f32.mrf.mxu0  ;;  %v2869_v4 = vpop.f32.mrf.mxu1 }
 0x86b   :  { %v4816_v31 = vmul.f32 -1.442695, %v2874_v61  ;;  %v2875_v45 = vadd.f32 %v2828_v6, %v9279_v55  ;;  %v4818_v41 = vmul.f32 -1.442695, %v2876_v27  ;;  %v2877_v32 = vadd.f32 %v2869_v4, %v9281_v52  ;;  %v7949_v27 = vld [vmem:[#allocation4 + $0xc0] ss:$16 sps:$4 sm:$0xff]  }
 0x86c   :  { %v2830_v37 = vpop.f32.mrf.mxu0  ;;  %v2871_v24 = vpop.f32.mrf.mxu1  ;;  %v7955_v52 = vld [vmem:[#allocation4 + $0xa4] ss:$16 sps:$4 sm:$0xff]  }
 0x86d   :  { %5233 = vpow2.f32 %v4816_v31  ;;  %v4817_v33 = vmul.f32 -1.442695, %v2875_v45 }
 0x86e   :  { %v2831_v20 = vpop.f32.mrf.mxu0  ;;  %v2872_v16 = vpop.f32.mrf.mxu1 }
 0x86f   :  { %5235 = vpow2.f32 %v4817_v33  ;;  %v7938_v16 = vld [vmem:[#allocation4 + $0xe8] ss:$16 sps:$4 sm:$0xff]  }
 0x870   :  { %5237 = vpow2.f32 %v4818_v41  ;;  %v7952_v41 = vld [vmem:[#allocation4 + $0xc8] ss:$16 sps:$4 sm:$0xff]  }
 0x871   :  { %5239 = vtanh.f32 %v2877_v32  ;;  %v7958_v32 = vld [vmem:[#allocation4 + $0xac] ss:$16 sps:$4 sm:$0xff]  }
 0x87a   :  { %v5234_v49 = vpop.eup %5233 }
 0x87b   :  { %v2887_v8 = vadd.f32 1.0, %v5234_v49 }
 0x87c   :  { %v5236_v10 = vpop.eup %5235 }
 0x87d   :  { %5241 = vrcp.f32 %v2887_v8  ;;  %v2888_v61 = vadd.f32 1.0, %v5236_v10  ;;  %v5238_v6 = vpop.eup %5237  ;;  %v7935_v8 = vld [vmem:[#allocation4 + $0xe0] ss:$16 sps:$4 sm:$0xff]  }
 0x87e   :  { %v5240_v24 = vpop.eup %5239  ;;  %v2889_v45 = vadd.f32 1.0, %v5238_v6  ;;  %v7961_v10 = vld [vmem:[#allocation4 + $0xa0] ss:$16 sps:$4 sm:$0xff]   ;;  %v7967_v6 = vld [vmem:[#allocation4 + $0x84] ss:$16 sps:$4 sm:$0xff]  }
 0x87f   :  { %5243 = vrcp.f32 %v2888_v61  ;;  %v7964_v61 = vld [vmem:[#allocation4 + $0xa8] ss:$16 sps:$4 sm:$0xff]  }
 0x880   :  { %5245 = vrcp.f32 %v2889_v45  ;;  %v9321_v45 = vld [vmem:[#allocation47_spill] sm:$0xff] }
 0x88a   :  { %v5242_v1 = vpop.eup %5241 }
 0x88b   :  { %v2898_v31 = vmul.f32 %v5242_v1, %v5240_v24  ;;  %v7970_v24 = vld [vmem:[#allocation4 + $0x8c] ss:$16 sps:$4 sm:$0xff]   ;;  %v7973_v1 = vld [vmem:[#allocation4 + $0x80] ss:$16 sps:$4 sm:$0xff]  }
 0x88c   :  { %v5244_v55 = vpop.eup %5243 }
 0x88d   :  { %v2897_v37 = vmul.f32 %v5244_v55, %v7454_v39  ;;  %v5246_v49 = vpop.eup %5245  ;;  %v7941_v39 = vld [vmem:[#allocation4 + $0xc4] ss:$16 sps:$4 sm:$0xff]   ;;  %v9320_v55 = vld [vmem:[#allocation49_spill] sm:$0xff] }
 0x88f   :  { %v7928_v62 = vadd.f32 %v2898_v31, %v2897_v37  ;;  %v7976_v31 = vld [vmem:[#allocation4 + $0x88] ss:$16 sps:$4 sm:$0xff]   ;;  %v9322_v37 = vld [vmem:[#allocation48_spill] sm:$0xff] }
 0x891   :  { %5247 = vtanh.f32 %v7928_v62 }
 0x89e   :  { %v5248_v4 = vpop.eup %5247 }
 0x89f   :  { %v2901_v33 = vmul.f32 %v5248_v4, %v5246_v49  ;;  %v9323_v49 = vld [vmem:[#allocation50_spill] sm:$0xff]  ;;  %v9324_v4 = vld [vmem:[#allocation57_spill] sm:$0xff] }
 0x8a1   :  { %v7931_v20 = vpack.c.bf16 %v2901_v33, %v2901_v33  ;;  %v9325_v33 = vld [vmem:[#allocation55_spill] sm:$0xff] }
 0x8a3   :  { %2940 = vmatmul.mubr.bf16.vlgmr.msra.gmra.mxu0 %v7931_v20  ;;  %2981 = vmatmul.mubr.bf16.vlgmr.msra.gmra.mxu1 %v7931_v20 }
 0x8a4   :  { %3002 = vmatpush1.bf16.msra.mxu0 %v7935_v8  ;;  %3043 = vmatpush1.bf16.msra.mxu1 %v7938_v16 }
 0x8a5   :  { %3003 = vmatprep.subr.bf16.mxu0 %v7941_v39  ;;  %3044 = vmatprep.subr.bf16.mxu1 %v7944_v5 }
 0x8a6   :  { %3033 = vmatprep.mubr.bf16.mxu0 %v8914_v7  ;;  %3074 = vmatprep.mubr.bf16.mxu1 %v8914_v7 }
 0x8a8   :  { %3004 = vmatpush1.bf16.msra.mxu0 %v7949_v27  ;;  %3045 = vmatpush1.bf16.msra.mxu1 %v7952_v41 }
 0x8a9   :  { %3005 = vmatprep.subr.bf16.mxu0 %v7955_v52  ;;  %3046 = vmatprep.subr.bf16.mxu1 %v7958_v32 }
 0x8ac   :  { %3006 = vmatpush1.bf16.msra.mxu0 %v7961_v10  ;;  %3047 = vmatpush1.bf16.msra.mxu1 %v7964_v61 }
 0x8ad   :  { %3007 = vmatprep.subr.bf16.mxu0 %v7967_v6  ;;  %3048 = vmatprep.subr.bf16.mxu1 %v7970_v24 }
 0x8b0   :  { %3008 = vmatpush1.bf16.msra.mxu0 %v7973_v1  ;;  %3049 = vmatpush1.bf16.msra.mxu1 %v7976_v31 }
 0x8b1   :  { %3009 = vmatprep.subr.bf16.mxu0 %v7274_v15  ;;  %3050 = vmatprep.subr.bf16.mxu1 %v7277_v9  ;;  %v9282_v15 = vld [vmem:[#allocation32_spill] sm:$0xff]  ;;  %v9283_v9 = vld [vmem:[#allocation33_spill] sm:$0xff] }
 0x8b4   :  { %3010 = vmatpush1.bf16.msra.mxu0 %v7280_v36  ;;  %3051 = vmatpush1.bf16.msra.mxu1 %v7283_v30  ;;  %v9284_v36 = vld [vmem:[#allocation34_spill] sm:$0xff]  ;;  %v9285_v30 = vld [vmem:[#allocation35_spill] sm:$0xff] }
 0x8b5   :  { %3011 = vmatprep.subr.bf16.mxu0 %v7286_v2  ;;  %3052 = vmatprep.subr.bf16.mxu1 %v7289_v43  ;;  %v9286_v2 = vld [vmem:[#allocation43_spill] sm:$0xff]  ;;  %v9287_v43 = vld [vmem:[#allocation45_spill] sm:$0xff] }
 0x8b8   :  { %3012 = vmatpush1.bf16.msra.mxu0 %v7292_v47  ;;  %3053 = vmatpush1.bf16.msra.mxu1 %v7295_v56  ;;  %v9288_v47 = vld [vmem:[#allocation44_spill] sm:$0xff]  ;;  %v9289_v56 = vld [vmem:[#allocation46_spill] sm:$0xff] }
 0x8b9   :  { %3013 = vmatprep.subr.bf16.mxu0 %v7298_v42  ;;  %3054 = vmatprep.subr.bf16.mxu1 %v7301_v19  ;;  %v9290_v42 = vld [vmem:[#allocation18_spill] sm:$0xff]  ;;  %v9291_v19 = vld [vmem:[#allocation19_spill] sm:$0xff] }
 0x8bc   :  { %3014 = vmatpush1.bf16.msra.mxu0 %v7304_v46  ;;  %3055 = vmatpush1.bf16.msra.mxu1 %v7307_v0  ;;  %v9292_v46 = vld [vmem:[#allocation20_spill] sm:$0xff]  ;;  %v9293_v0 = vld [vmem:[#allocation21_spill] sm:$0xff] }
 0x8bd   :  { %3015 = vmatprep.subr.bf16.mxu0 %v7310_v50  ;;  %3056 = vmatprep.subr.bf16.mxu1 %v7313_v3  ;;  %v9294_v50 = vld [vmem:[#allocation22_spill] sm:$0xff]  ;;  %v9295_v3 = vld [vmem:[#allocation39_spill] sm:$0xff] }
 0x8c0   :  { %3016 = vmatpush1.bf16.msra.mxu0 %v7316_v18  ;;  %3057 = vmatpush1.bf16.msra.mxu1 %v7319_v48  ;;  %v9296_v18 = vld [vmem:[#allocation37_spill] sm:$0xff]  ;;  %v9297_v48 = vld [vmem:[#allocation38_spill] sm:$0xff] }
 0x8c1   :  { %3095 = vmatprep.subr.bf16.mxu0 %v7496_v58  ;;  %3136 = vmatprep.subr.bf16.mxu1 %v7502_v25  ;;  %v9298_v58 = vld [vmem:[#allocation40_spill] sm:$0xff]  ;;  %v9299_v25 = vld [vmem:[#allocation67_spill] sm:$0xff] }
 0x8c3   :  { %3034 = vmatmul.mubr.bf16.vlgmr.msra.gmra.mxu0 %v7931_v20  ;;  %3075 = vmatmul.mubr.bf16.vlgmr.msra.gmra.mxu1 %v7931_v20 }
 0x8c4   :  { %3096 = vmatpush1.bf16.msra.mxu0 %v7510_v11  ;;  %3137 = vmatpush1.bf16.msra.mxu1 %v7516_v54  ;;  %v9300_v11 = vld [vmem:[#allocation68_spill] sm:$0xff]  ;;  %v9301_v54 = vld [vmem:[#allocation69_spill] sm:$0xff] }
 0x8c5   :  { %3097 = vmatprep.subr.bf16.mxu0 %v7522_v34  ;;  %3138 = vmatprep.subr.bf16.mxu1 %v7528_v60  ;;  %v9302_v34 = vld [vmem:[#allocation70_spill] sm:$0xff]  ;;  %v9303_v60 = vld [vmem:[#allocation71_spill] sm:$0xff] }
 0x8c6   :  { %3127 = vmatprep.mubr.bf16.mxu0 %v8914_v7  ;;  %3168 = vmatprep.mubr.bf16.mxu1 %v8914_v7 }
 0x8c8   :  { %3098 = vmatpush1.bf16.msra.mxu0 %v7536_v17  ;;  %3139 = vmatpush1.bf16.msra.mxu1 %v7542_v28  ;;  %v9304_v17 = vld [vmem:[#allocation72_spill] sm:$0xff]  ;;  %v9305_v28 = vld [vmem:[#allocation73_spill] sm:$0xff] }
 0x8c9   :  { %3099 = vmatprep.subr.bf16.mxu0 %v7548_v23  ;;  %3140 = vmatprep.subr.bf16.mxu1 %v7554_v14  ;;  %v9306_v23 = vld [vmem:[#allocation74_spill] sm:$0xff]  ;;  %v9307_v14 = vld [vmem:[#allocation75_spill] sm:$0xff] }
 0x8cc   :  { %3100 = vmatpush1.bf16.msra.mxu0 %v7560_v59  ;;  %3141 = vmatpush1.bf16.msra.mxu1 %v7566_v29  ;;  %v9308_v59 = vld [vmem:[#allocation84_spill] sm:$0xff]  ;;  %v9309_v29 = vld [vmem:[#allocation85_spill] sm:$0xff] }
 0x8cd   :  { %3101 = vmatprep.subr.bf16.mxu0 %v7572_v13  ;;  %3142 = vmatprep.subr.bf16.mxu1 %v7578_v22  ;;  %v9310_v13 = vld [vmem:[#allocation86_spill] sm:$0xff]  ;;  %v9311_v22 = vld [vmem:[#allocation87_spill] sm:$0xff] }
 0x8d0   :  { %3102 = vmatpush1.bf16.msra.mxu0 %v7584_v57  ;;  %3143 = vmatpush1.bf16.msra.mxu1 %v7590_v53  ;;  %v9312_v57 = vld [vmem:[#allocation88_spill] sm:$0xff]  ;;  %v9313_v53 = vld [vmem:[#allocation89_spill] sm:$0xff] }
 0x8d1   :  { %3103 = vmatprep.subr.bf16.mxu0 %v7596_v26  ;;  %3144 = vmatprep.subr.bf16.mxu1 %v7602_v63  ;;  %v9314_v26 = vld [vmem:[#allocation90_spill] sm:$0xff]  ;;  %v9315_v63 = vld [vmem:[#allocation36_spill] sm:$0xff] }
 0x8d4   :  { %3104 = vmatpush1.bf16.msra.mxu0 %v7608_v12  ;;  %3145 = vmatpush1.bf16.msra.mxu1 %v7614_v40  ;;  %v9316_v12 = vld [vmem:[#allocation76_spill] sm:$0xff]  ;;  %v9317_v40 = vld [vmem:[#allocation77_spill] sm:$0xff] }
 0x8d5   :  { %3105 = vmatprep.subr.bf16.mxu0 %v7620_v51  ;;  %3146 = vmatprep.subr.bf16.mxu1 %v7626_v38  ;;  %v9318_v51 = vld [vmem:[#allocation78_spill] sm:$0xff]  ;;  %v9319_v38 = vld [vmem:[#allocation99_spill] sm:$0xff] }
 0x8d8   :  { %3106 = vmatpush1.bf16.msra.mxu0 %v9282_v15  ;;  %3147 = vmatpush1.bf16.msra.mxu1 %v9283_v9  ;;  %v9327_v9 = vld [vmem:[#allocation51_spill] sm:$0xff] }
 0x8d9   :  { %3107 = vmatprep.subr.bf16.mxu0 %v9284_v36  ;;  %3148 = vmatprep.subr.bf16.mxu1 %v9285_v30  ;;  %v9328_v36 = vld [vmem:[#allocation28_spill] sm:$0xff] }
 0x8da   :  { %v1570_v30 = vadd.f32 %v9328_v36, %v9327_v9  ;;  %v9341_v36 = vld [vmem:[#allocation65_spill] sm:$0xff] }
 0x8dc   :  { %3108 = vmatpush1.bf16.msra.mxu0 %v9286_v2  ;;  %3149 = vmatpush1.bf16.msra.mxu1 %v9287_v43 }
 0x8dd   :  { %3109 = vmatprep.subr.bf16.mxu0 %v9288_v47  ;;  %3150 = vmatprep.subr.bf16.mxu1 %v9289_v56  ;;  %v9329_v47 = vld [vmem:[#allocation53_spill] sm:$0xff] }
 0x8de   :  { %v9330_v56 = vld [vmem:[#allocation29_spill] sm:$0xff] }
 0x8e0   :  { %3110 = vmatpush1.bf16.msra.mxu0 %v9290_v42  ;;  %3151 = vmatpush1.bf16.msra.mxu1 %v9291_v19  ;;  %v1569_v42 = vadd.f32 %v9330_v56, %v9329_v47  ;;  %v9331_v19 = vld [vmem:[#allocation30_spill] sm:$0xff] }
 0x8e1   :  { %3210 = vmatprep.subr.bf16.mxu0 %v9292_v46  ;;  %3251 = vmatprep.subr.bf16.mxu1 %v9293_v0  ;;  %v1571_v46 = vadd.f32 %v9331_v19, %v7413_v21 }
 0x8e3   :  { %3128 = vmatmul.mubr.bf16.vlgmr.msra.gmra.mxu0 %v7931_v20  ;;  %3169 = vmatmul.mubr.bf16.vlgmr.msra.gmra.mxu1 %v7931_v20  ;;  %v9326_v20 = vld [vmem:[#allocation27_spill] sm:$0xff] }
 0x8e4   :  { %3211 = vmatpush1.bf16.msra.mxu0 %v9294_v50  ;;  %3252 = vmatpush1.bf16.msra.mxu1 %v9295_v3  ;;  %v1568_v15 = vadd.f32 %v9326_v20, %v7401_v35 }
 0x8e5   :  { %3212 = vmatprep.subr.bf16.mxu0 %v9296_v18  ;;  %3253 = vmatprep.subr.bf16.mxu1 %v9297_v48 }
 0x8e6   :  { %3242 = vmatprep.mubr.bf16.mxu0 %v8914_v7  ;;  %3283 = vmatprep.mubr.bf16.mxu1 %v8914_v7 }
 0x8e8   :  { %3213 = vmatpush1.bf16.msra.mxu0 %v9298_v58  ;;  %3254 = vmatpush1.bf16.msra.mxu1 %v9299_v25 }
 0x8e9   :  { %3214 = vmatprep.subr.bf16.mxu0 %v9300_v11  ;;  %3255 = vmatprep.subr.bf16.mxu1 %v9301_v54 }
 0x8ec   :  { %3215 = vmatpush1.bf16.msra.mxu0 %v9302_v34  ;;  %3256 = vmatpush1.bf16.msra.mxu1 %v9303_v60  ;;  %v9336_v60 = vld [vmem:[#allocation23_spill] sm:$0xff] }
 0x8ed   :  { %3216 = vmatprep.subr.bf16.mxu0 %v9304_v17  ;;  %3257 = vmatprep.subr.bf16.mxu1 %v9305_v28  ;;  %v1474_v17 = vadd.f32 %v9336_v60, %v7401_v35  ;;  %v9337_v28 = vld [vmem:[#allocation24_spill] sm:$0xff] }
 0x8f0   :  { %3217 = vmatpush1.bf16.msra.mxu0 %v9306_v23  ;;  %3258 = vmatpush1.bf16.msra.mxu1 %v9307_v14  ;;  %v1476_v23 = vadd.f32 %v9337_v28, %v9327_v9  ;;  %v9345_v28 = vld [vmem:[#allocation66_spill] sm:$0xff] }
 0x8f1   :  { %3218 = vmatprep.subr.bf16.mxu0 %v9308_v59  ;;  %3259 = vmatprep.subr.bf16.mxu1 %v9309_v29  ;;  %v9338_v29 = vld [vmem:[#allocation25_spill] sm:$0xff] }
 0x8f4   :  { %3219 = vmatpush1.bf16.msra.mxu0 %v9310_v13  ;;  %3260 = vmatpush1.bf16.msra.mxu1 %v9311_v22  ;;  %v1475_v13 = vadd.f32 %v9338_v29, %v9329_v47  ;;  %v9339_v22 = vld [vmem:[#allocation26_spill] sm:$0xff] }
 0x8f5   :  { %3220 = vmatprep.subr.bf16.mxu0 %v9312_v57  ;;  %3261 = vmatprep.subr.bf16.mxu1 %v9313_v53  ;;  %v1477_v57 = vadd.f32 %v9339_v22, %v7413_v21 }
 0x8f8   :  { %3221 = vmatpush1.bf16.msra.mxu0 %v9314_v26  ;;  %3262 = vmatpush1.bf16.msra.mxu1 %v9315_v63 }
 0x8f9   :  { %3222 = vmatprep.subr.bf16.mxu0 %v9316_v12  ;;  %3263 = vmatprep.subr.bf16.mxu1 %v9317_v40 }
 0x8fc   :  { %3223 = vmatpush1.bf16.msra.mxu0 %v9318_v51  ;;  %3264 = vmatpush1.bf16.msra.mxu1 %v9319_v38 }
 0x8fd   :  { %3224 = vmatprep.subr.bf16.mxu0 %v9320_v55  ;;  %3265 = vmatprep.subr.bf16.mxu1 %v9321_v45 }
 0x900   :  { %3225 = vmatpush1.bf16.msra.mxu0 %v9322_v37  ;;  %3266 = vmatpush1.bf16.msra.mxu1 %v9323_v49  ;;  %v8104_v49 = vld [vmem:[%s8591_s1] sm:$0xff] }
 0x901   :  { %3304 = vmatprep.subr.bf16.mxu0 %v9324_v4  ;;  %3345 = vmatprep.subr.bf16.mxu1 %v9325_v33  ;;  %vm3702_vm1 = vcmp.eq.s32.totalorder %v8104_v49, 0  ;;  %vm3824_vm2 = vcmp.eq.s32.totalorder %v8104_v49, 1  ;;  %vm3946_vm3 = vcmp.eq.s32.totalorder %v8104_v49, 2  ;;  %vm4068_vm6 = vcmp.eq.s32.totalorder %v8104_v49, 3 }
 0x902   :  { %v3703_v4 = vsel %vm3702_vm1, 1, %v8914_v7  ;;  %vm4190_vm8 = vcmp.eq.s32.totalorder %v8104_v49, 4  ;;  %v9364_v49 = vld [vmem:[#allocation82_spill] sm:$0xff] }
 0x903   :  { %3705 = vperm.xlu0 %4923, %v3703_v4  }
 0x963   :  { %v2941_v2 = vpop.f32.mrf.mxu0  ;;  %v2982_v43 = vpop.f32.mrf.mxu1 }
 0x964   :  { %v8077_v0 = vadd.f32 %v2941_v2, %v1568_v15  ;;  %v8079_v50 = vadd.f32 %v2982_v43, %v1570_v30  ;;  %v9340_v15 = vld [vmem:[#allocation41_spill] sm:$0xff]  ;;  %v9342_v2 = vld [vmem:[#allocation63_spill] sm:$0xff] }
 0x965   :  { %v2943_v3 = vpop.f32.mrf.mxu0  ;;  %v2984_v18 = vpop.f32.mrf.mxu1  ;;  %v233_v30 = vadd.f32 %v9341_v36, %v9340_v15 }
 0x966   :  { %9332 = vst [vmem:[#allocation93_spill] sm:$0xff] %v8077_v0  ;;  %9333 = vst [vmem:[#allocation94_spill] sm:$0xff] %v8079_v50  ;;  %v8081_v48 = vadd.f32 %v2943_v3, %v1569_v42  ;;  %v8083_v58 = vadd.f32 %v2984_v18, %v1571_v46 }
 0x967   :  { %v2945_v25 = vpop.f32.mrf.mxu0  ;;  %v2986_v11 = vpop.f32.mrf.mxu1 }
 0x968   :  { %9334 = vst [vmem:[#allocation59_spill] sm:$0xff] %v8081_v48  ;;  %9335 = vst [vmem:[#allocation61_spill] sm:$0xff] %v8083_v58 }
 0x969   :  { %v2946_v54 = vpop.f32.mrf.mxu0  ;;  %v2987_v34 = vpop.f32.mrf.mxu1 }
 0x96a   :  { %v9343_v34 = vld [vmem:[#allocation64_spill] sm:$0xff] }
 0x983   :  { %v3035_v14 = vpop.f32.mrf.mxu0  ;;  %v3076_v59 = vpop.f32.mrf.mxu1 }
 0x984   :  { %v8093_v53 = vadd.f32 %v3035_v14, %v1474_v17  ;;  %v8095_v26 = vadd.f32 %v3076_v59, %v1476_v23  ;;  %v9344_v17 = vld [vmem:[#allocation42_spill] sm:$0xff] }
 0x985   :  { %v3037_v63 = vpop.f32.mrf.mxu0  ;;  %v3078_v12 = vpop.f32.mrf.mxu1  ;;  %v306_v23 = vadd.f32 %v9345_v28, %v9344_v17  ;;  %v8167_v17 = vld [vmem:[#allocation6 + $0x84] ss:$16 sps:$4 sm:$0xff]   ;;  %v8169_v28 = vld [vmem:[#allocation6 + $0x8c] ss:$16 sps:$4 sm:$0xff]  }
 0x986   :  { %v8097_v40 = vadd.f32 %v3037_v63, %v1475_v13  ;;  %v8099_v51 = vadd.f32 %v3078_v12, %v1477_v57 }
 0x987   :  { %v3039_v38 = vpop.f32.mrf.mxu0  ;;  %v3080_v55 = vpop.f32.mrf.mxu1 }
 0x989   :  { %v3040_v45 = vpop.f32.mrf.mxu0  ;;  %v3081_v37 = vpop.f32.mrf.mxu1 }
 0x9a3   :  { %v3129_v33 = vpop.f32.mrf.mxu0  ;;  %v3170_v20 = vpop.f32.mrf.mxu1 }
 0x9a4   :  { %v3177_v43 = vadd.f32 %v3129_v33, %v9342_v2  ;;  %v3179_v60 = vadd.f32 %v3170_v20, %v9343_v34  ;;  %v8133_v2 = vld [vmem:[#allocation6 + $0xec] ss:$16 sps:$4 sm:$0xff]   ;;  %v8161_v34 = vld [vmem:[#allocation6 + $0xa0] ss:$16 sps:$4 sm:$0xff]  }
 0x9a5   :  { %v3131_v56 = vpop.f32.mrf.mxu0  ;;  %v3172_v42 = vpop.f32.mrf.mxu1 }
 0x9a6   :  { %v4819_v19 = vmul.f32 -1.442695, %v3177_v43  ;;  %v3178_v46 = vadd.f32 %v3131_v56, %v233_v30  ;;  %v4821_v14 = vmul.f32 -1.442695, %v3179_v60  ;;  %v3180_v59 = vadd.f32 %v3172_v42, %v306_v23  ;;  %v5583_v43 = vld [vmem:[#allocation4] ss:$16 sps:$4 sm:$0xff]  }
 0x9a7   :  { %v3133_v3 = vpop.f32.mrf.mxu0  ;;  %v3174_v18 = vpop.f32.mrf.mxu1  ;;  %v5584_v56 = vld [vmem:[#allocation4 + $0x8] ss:$16 sps:$4 sm:$0xff]   ;;  %v8135_v42 = vld [vmem:[#allocation6 + $0xe0] ss:$16 sps:$4 sm:$0xff]  }
 0x9a8   :  { %5249 = vpow2.f32 %v4819_v19  ;;  %v4820_v25 = vmul.f32 -1.442695, %v3178_v46  ;;  %v8137_v19 = vld [vmem:[#allocation6 + $0xe8] ss:$16 sps:$4 sm:$0xff]   ;;  %v8141_v46 = vld [vmem:[#allocation6 + $0xc4] ss:$16 sps:$4 sm:$0xff]  }
 0x9a9   :  { %v3134_v11 = vpop.f32.mrf.mxu0  ;;  %v3175_v54 = vpop.f32.mrf.mxu1  ;;  %v8143_v3 = vld [vmem:[#allocation6 + $0xcc] ss:$16 sps:$4 sm:$0xff]   ;;  %v8147_v18 = vld [vmem:[#allocation6 + $0xc0] ss:$16 sps:$4 sm:$0xff]   ;;  %v8163_v60 = vld [vmem:[#allocation6 + $0xa8] ss:$16 sps:$4 sm:$0xff]  }
 0x9aa   :  { %5251 = vpow2.f32 %v4820_v25  ;;  %v8149_v25 = vld [vmem:[#allocation6 + $0xc8] ss:$16 sps:$4 sm:$0xff]   ;;  %v8153_v11 = vld [vmem:[#allocation6 + $0xa4] ss:$16 sps:$4 sm:$0xff]   ;;  %v8155_v54 = vld [vmem:[#allocation6 + $0xac] ss:$16 sps:$4 sm:$0xff]  }
 0x9ab   :  { %5253 = vpow2.f32 %v4821_v14  ;;  %v8173_v23 = vld [vmem:[#allocation6 + $0x80] ss:$16 sps:$4 sm:$0xff]   ;;  %v8175_v14 = vld [vmem:[#allocation6 + $0x88] ss:$16 sps:$4 sm:$0xff]  }
 0x9ac   :  { %5255 = vtanh.f32 %v3180_v59  ;;  %v8179_v59 = vld [vmem:[#allocation6 + $0x64] ss:$16 sps:$4 sm:$0xff]  }
 0x9b5   :  { %v5250_v29 = vpop.eup %5249 }
 0x9b6   :  { %v3190_v13 = vadd.f32 1.0, %v5250_v29  ;;  %v8181_v29 = vld [vmem:[#allocation6 + $0x6c] ss:$16 sps:$4 sm:$0xff]  }
 0x9b7   :  { %v5252_v22 = vpop.eup %5251 }
 0x9b8   :  { %5257 = vrcp.f32 %v3190_v13  ;;  %v3191_v57 = vadd.f32 1.0, %v5252_v22  ;;  %v5254_v63 = vpop.eup %5253  ;;  %v8185_v13 = vld [vmem:[#allocation6 + $0x60] ss:$16 sps:$4 sm:$0xff]   ;;  %v8187_v22 = vld [vmem:[#allocation6 + $0x68] ss:$16 sps:$4 sm:$0xff]  }
 0x9b9   :  { %v5256_v12 = vpop.eup %5255  ;;  %v3192_v37 = vadd.f32 1.0, %v5254_v63  ;;  %v8193_v63 = vld [vmem:[#allocation6 + $0x4c] ss:$16 sps:$4 sm:$0xff]  }
 0x9ba   :  { %5259 = vrcp.f32 %v3191_v57  ;;  %v8191_v57 = vld [vmem:[#allocation6 + $0x44] ss:$16 sps:$4 sm:$0xff]  }
 0x9bb   :  { %5261 = vrcp.f32 %v3192_v37  ;;  %v8209_v37 = vld [vmem:[#allocation6 + $0x20] ss:$16 sps:$4 sm:$0xff]  }
 0x9c5   :  { %v5258_v38 = vpop.eup %5257 }
 0x9c6   :  { %v3201_v55 = vmul.f32 %v5258_v38, %v5256_v12  ;;  %v8197_v12 = vld [vmem:[#allocation6 + $0x40] ss:$16 sps:$4 sm:$0xff]   ;;  %v8199_v38 = vld [vmem:[#allocation6 + $0x48] ss:$16 sps:$4 sm:$0xff]  }
 0x9c7   :  { %v5260_v45 = vpop.eup %5259 }
 0x9c8   :  { %v3200_v4 = vmul.f32 %v5260_v45, %v7928_v62  ;;  %v5262_v20 = vpop.eup %5261  ;;  %v5569_v62 = vld [vmem:[#allocation4 + $0x64] ss:$16 sps:$4 sm:$0xff]   ;;  %v8205_v45 = vld [vmem:[#allocation6 + $0x2c] ss:$16 sps:$4 sm:$0xff]  }
 0x9ca   :  { %v3202_v33 = vadd.f32 %v3201_v55, %v3200_v4  ;;  %v8203_v55 = vld [vmem:[#allocation6 + $0x24] ss:$16 sps:$4 sm:$0xff]   ;;  %v8211_v4 = vld [vmem:[#allocation6 + $0x28] ss:$16 sps:$4 sm:$0xff]  }
 0x9cc   :  { %5263 = vtanh.f32 %v3202_v33  ;;  %v8215_v33 = vld [vmem:[#allocation6 + $0x4] ss:$16 sps:$4 sm:$0xff]  }
 0x9d9   :  { %v5264_v15 = vpop.eup %5263 }
 0x9da   :  { %v3204_v36 = vmul.f32 %v5264_v15, %v5262_v20  ;;  %v8217_v20 = vld [vmem:[#allocation6 + $0xc] ss:$16 sps:$4 sm:$0xff]   ;;  %v8221_v15 = vld [vmem:[#allocation6] ss:$16 sps:$4 sm:$0xff]  }
 0x9dc   :  { %v3205_v30 = vpack.c.bf16 %v3204_v36, %v3204_v36  ;;  %v8223_v36 = vld [vmem:[#allocation6 + $0x8] ss:$16 sps:$4 sm:$0xff]  }
 0x9de   :  { %3243 = vmatmul.mubr.bf16.vlgmr.msra.gmra.mxu0 %v3205_v30  ;;  %3284 = vmatmul.mubr.bf16.vlgmr.msra.gmra.mxu1 %v3205_v30 }
 0x9df   :  { %3305 = vmatpush1.bf16.msra.mxu0 %v7935_v8  ;;  %3346 = vmatpush1.bf16.msra.mxu1 %v7938_v16  ;;  %v5570_v8 = vld [vmem:[#allocation4 + $0x6c] ss:$16 sps:$4 sm:$0xff]   ;;  %v5571_v16 = vld [vmem:[#allocation4 + $0x60] ss:$16 sps:$4 sm:$0xff]  }
 0x9e0   :  { %3306 = vmatprep.subr.bf16.mxu0 %v7941_v39  ;;  %3347 = vmatprep.subr.bf16.mxu1 %v7944_v5  ;;  %v5572_v39 = vld [vmem:[#allocation4 + $0x68] ss:$16 sps:$4 sm:$0xff]   ;;  %v5573_v5 = vld [vmem:[#allocation4 + $0x44] ss:$16 sps:$4 sm:$0xff]  }
 0x9e1   :  { %3336 = vmatprep.mubr.bf16.mxu0 %v8914_v7  ;;  %3377 = vmatprep.mubr.bf16.mxu1 %v8914_v7 }
 0x9e3   :  { %3307 = vmatpush1.bf16.msra.mxu0 %v7949_v27  ;;  %3348 = vmatpush1.bf16.msra.mxu1 %v7952_v41  ;;  %v5574_v27 = vld [vmem:[#allocation4 + $0x4c] ss:$16 sps:$4 sm:$0xff]   ;;  %v5575_v41 = vld [vmem:[#allocation4 + $0x40] ss:$16 sps:$4 sm:$0xff]  }
 0x9e4   :  { %3308 = vmatprep.subr.bf16.mxu0 %v7955_v52  ;;  %3349 = vmatprep.subr.bf16.mxu1 %v7958_v32  ;;  %v5576_v52 = vld [vmem:[#allocation4 + $0x48] ss:$16 sps:$4 sm:$0xff]   ;;  %v5577_v32 = vld [vmem:[#allocation4 + $0x24] ss:$16 sps:$4 sm:$0xff]  }
 0x9e7   :  { %3309 = vmatpush1.bf16.msra.mxu0 %v7961_v10  ;;  %3350 = vmatpush1.bf16.msra.mxu1 %v7964_v61  ;;  %v5578_v10 = vld [vmem:[#allocation4 + $0x2c] ss:$16 sps:$4 sm:$0xff]   ;;  %v5579_v61 = vld [vmem:[#allocation4 + $0x20] ss:$16 sps:$4 sm:$0xff]  }
 0x9e8   :  { %3310 = vmatprep.subr.bf16.mxu0 %v7967_v6  ;;  %3351 = vmatprep.subr.bf16.mxu1 %v7970_v24  ;;  %v5580_v6 = vld [vmem:[#allocation4 + $0x28] ss:$16 sps:$4 sm:$0xff]   ;;  %v5581_v24 = vld [vmem:[#allocation4 + $0x4] ss:$16 sps:$4 sm:$0xff]  }
 0x9eb   :  { %3311 = vmatpush1.bf16.msra.mxu0 %v7973_v1  ;;  %3352 = vmatpush1.bf16.msra.mxu1 %v7976_v31  ;;  %v5582_v1 = vld [vmem:[#allocation4 + $0xc] ss:$16 sps:$4 sm:$0xff]   ;;  %v8131_v31 = vld [vmem:[#allocation6 + $0xe4] ss:$16 sps:$4 sm:$0xff]  }
 0x9ec   :  { %3312 = vmatprep.subr.bf16.mxu0 %v5569_v62  ;;  %3353 = vmatprep.subr.bf16.mxu1 %v5570_v8  ;;  %v9346_v62 = vld [vmem:[#allocation14_spill] sm:$0xff] }
 0x9ed   :  { %v1265_v8 = vadd.f32 %v9346_v62, %v7401_v35 }
 0x9ef   :  { %3313 = vmatpush1.bf16.msra.mxu0 %v5571_v16  ;;  %3354 = vmatpush1.bf16.msra.mxu1 %v5572_v39  ;;  %v9347_v16 = vld [vmem:[#allocation15_spill] sm:$0xff] }
 0x9f0   :  { %3314 = vmatprep.subr.bf16.mxu0 %v5573_v5  ;;  %3355 = vmatprep.subr.bf16.mxu1 %v5574_v27  ;;  %v1267_v39 = vadd.f32 %v9347_v16, %v9327_v9 }
 0x9f3   :  { %3315 = vmatpush1.bf16.msra.mxu0 %v5575_v41  ;;  %3356 = vmatpush1.bf16.msra.mxu1 %v5576_v52  ;;  %v9348_v41 = vld [vmem:[#allocation16_spill] sm:$0xff] }
 0x9f4   :  { %3316 = vmatprep.subr.bf16.mxu0 %v5577_v32  ;;  %3357 = vmatprep.subr.bf16.mxu1 %v5578_v10  ;;  %v1266_v52 = vadd.f32 %v9348_v41, %v9329_v47  ;;  %v9349_v32 = vld [vmem:[#allocation17_spill] sm:$0xff] }
 0x9f5   :  { %v1268_v10 = vadd.f32 %v9349_v32, %v7413_v21 }
 0x9f7   :  { %3317 = vmatpush1.bf16.msra.mxu0 %v5579_v61  ;;  %3358 = vmatpush1.bf16.msra.mxu1 %v5580_v6 }
 0x9f8   :  { %3318 = vmatprep.subr.bf16.mxu0 %v5581_v24  ;;  %3359 = vmatprep.subr.bf16.mxu1 %v5582_v1 }
 0x9fb   :  { %3319 = vmatpush1.bf16.msra.mxu0 %v5583_v43  ;;  %3360 = vmatpush1.bf16.msra.mxu1 %v5584_v56 }
 0x9fc   :  { %3591 = vmatprep.subr.bf16.mxu0 %v8131_v31  ;;  %3632 = vmatprep.subr.bf16.mxu1 %v8133_v2 }
 0x9fe   :  { %3337 = vmatmul.mubr.bf16.vlgmr.msra.gmra.mxu0 %v3205_v30  ;;  %3378 = vmatmul.mubr.bf16.vlgmr.msra.gmra.mxu1 %v3205_v30  ;;  %v3825_v30 = vsel %vm3824_vm2, 1, %v8914_v7 }
 0x9ff   :  { %3592 = vmatpush1.bf16.msra.mxu0 %v8135_v42  ;;  %3633 = vmatpush1.bf16.msra.mxu1 %v8137_v19 }
 0xa00   :  { %3593 = vmatprep.subr.bf16.mxu0 %v8141_v46  ;;  %3634 = vmatprep.subr.bf16.mxu1 %v8143_v3 }
 0xa01   :  { %3623 = vmatprep.mubr.bf16.mxu0 %v8914_v7  ;;  %3664 = vmatprep.mubr.bf16.mxu1 %v8914_v7 }
 0xa02   :  { %3827 = vperm.xlu0 %4923, %v3825_v30  }
 0xa03   :  { %3594 = vmatpush1.bf16.msra.mxu0 %v8147_v18  ;;  %3635 = vmatpush1.bf16.msra.mxu1 %v8149_v25 }
 0xa04   :  { %3595 = vmatprep.subr.bf16.mxu0 %v8153_v11  ;;  %3636 = vmatprep.subr.bf16.mxu1 %v8155_v54 }
 0xa07   :  { %3596 = vmatpush1.bf16.msra.mxu0 %v8161_v34  ;;  %3637 = vmatpush1.bf16.msra.mxu1 %v8163_v60 }
 0xa08   :  { %3597 = vmatprep.subr.bf16.mxu0 %v8167_v17  ;;  %3638 = vmatprep.subr.bf16.mxu1 %v8169_v28 }
 0xa0b   :  { %3598 = vmatpush1.bf16.msra.mxu0 %v8173_v23  ;;  %3639 = vmatpush1.bf16.msra.mxu1 %v8175_v14 }
 0xa0c   :  { %3599 = vmatprep.subr.bf16.mxu0 %v8179_v59  ;;  %3640 = vmatprep.subr.bf16.mxu1 %v8181_v29 }
 0xa0f   :  { %3600 = vmatpush1.bf16.msra.mxu0 %v8185_v13  ;;  %3641 = vmatpush1.bf16.msra.mxu1 %v8187_v22 }
 0xa10   :  { %3601 = vmatprep.subr.bf16.mxu0 %v8191_v57  ;;  %3642 = vmatprep.subr.bf16.mxu1 %v8193_v63 }
 0xa13   :  { %3602 = vmatpush1.bf16.msra.mxu0 %v8197_v12  ;;  %3643 = vmatpush1.bf16.msra.mxu1 %v8199_v38 }
 0xa14   :  { %3603 = vmatprep.subr.bf16.mxu0 %v8203_v55  ;;  %3644 = vmatprep.subr.bf16.mxu1 %v8205_v45 }
 0xa17   :  { %3604 = vmatpush1.bf16.msra.mxu0 %v8209_v37  ;;  %3645 = vmatpush1.bf16.msra.mxu1 %v8211_v4 }
 0xa18   :  { %3605 = vmatprep.subr.bf16.mxu0 %v8215_v33  ;;  %3646 = vmatprep.subr.bf16.mxu1 %v8217_v20 }
 0xa1b   :  { %3606 = vmatpush1.bf16.msra.mxu0 %v8221_v15  ;;  %3647 = vmatpush1.bf16.msra.mxu1 %v8223_v36 }
 0xa1c   :  { %3713 = vmatprep.subr.bf16.mxu0 %v8131_v31  ;;  %3754 = vmatprep.subr.bf16.mxu1 %v8133_v2 }
 0xa1e   :  { %3624 = vmatmul.mubr.bf16.vlgmr.msra.gmra.mxu0 %v8914_v7  ;;  %3665 = vmatmul.mubr.bf16.vlgmr.msra.gmra.mxu1 %v8914_v7 }
 0xa1f   :  { %3714 = vmatpush1.bf16.msra.mxu0 %v8135_v42  ;;  %3755 = vmatpush1.bf16.msra.mxu1 %v8137_v19 }
 0xa20   :  { %3715 = vmatprep.subr.bf16.mxu0 %v8141_v46  ;;  %3756 = vmatprep.subr.bf16.mxu1 %v8143_v3 }
 0xa21   :  { %3745 = vmatprep.mubr.bf16.mxu0 %v8914_v7  ;;  %3786 = vmatprep.mubr.bf16.mxu1 %v8914_v7 }
 0xa23   :  { %3716 = vmatpush1.bf16.msra.mxu0 %v8147_v18  ;;  %3757 = vmatpush1.bf16.msra.mxu1 %v8149_v25 }
 0xa24   :  { %3717 = vmatprep.subr.bf16.mxu0 %v8153_v11  ;;  %3758 = vmatprep.subr.bf16.mxu1 %v8155_v54 }
 0xa27   :  { %3718 = vmatpush1.bf16.msra.mxu0 %v8161_v34  ;;  %3759 = vmatpush1.bf16.msra.mxu1 %v8163_v60 }
 0xa28   :  { %3719 = vmatprep.subr.bf16.mxu0 %v8167_v17  ;;  %3760 = vmatprep.subr.bf16.mxu1 %v8169_v28 }
 0xa2b   :  { %3720 = vmatpush1.bf16.msra.mxu0 %v8173_v23  ;;  %3761 = vmatpush1.bf16.msra.mxu1 %v8175_v14 }
 0xa2c   :  { %3721 = vmatprep.subr.bf16.mxu0 %v8179_v59  ;;  %3762 = vmatprep.subr.bf16.mxu1 %v8181_v29 }
 0xa2f   :  { %3722 = vmatpush1.bf16.msra.mxu0 %v8185_v13  ;;  %3763 = vmatpush1.bf16.msra.mxu1 %v8187_v22 }
 0xa30   :  { %3723 = vmatprep.subr.bf16.mxu0 %v8191_v57  ;;  %3764 = vmatprep.subr.bf16.mxu1 %v8193_v63 }
 0xa33   :  { %3724 = vmatpush1.bf16.msra.mxu0 %v8197_v12  ;;  %3765 = vmatpush1.bf16.msra.mxu1 %v8199_v38 }
 0xa34   :  { %3725 = vmatprep.subr.bf16.mxu0 %v8203_v55  ;;  %3766 = vmatprep.subr.bf16.mxu1 %v8205_v45 }
 0xa37   :  { %3726 = vmatpush1.bf16.msra.mxu0 %v8209_v37  ;;  %3767 = vmatpush1.bf16.msra.mxu1 %v8211_v4 }
 0xa38   :  { %3727 = vmatprep.subr.bf16.mxu0 %v8215_v33  ;;  %3768 = vmatprep.subr.bf16.mxu1 %v8217_v20 }
 0xa3b   :  { %3728 = vmatpush1.bf16.msra.mxu0 %v8221_v15  ;;  %3769 = vmatpush1.bf16.msra.mxu1 %v8223_v36 }
 0xa3c   :  { %3835 = vmatprep.subr.bf16.mxu0 %v8131_v31  ;;  %3876 = vmatprep.subr.bf16.mxu1 %v8133_v2 }
 0xa9e   :  { %v3244_v5 = vpop.f32.mrf.mxu0  ;;  %v3285_v27 = vpop.f32.mrf.mxu1 }
 0xa9f   :  { %v8277_v61 = vadd.f32 %v3244_v5, %v1265_v8  ;;  %v8279_v6 = vadd.f32 %v3285_v27, %v1267_v39  ;;  %v9354_v39 = vld [vmem:[#allocation10_spill] sm:$0xff] }
 0xaa0   :  { %v3246_v24 = vpop.f32.mrf.mxu0  ;;  %v3287_v1 = vpop.f32.mrf.mxu1  ;;  %v1011_v27 = vadd.f32 %v9354_v39, %v7401_v35  ;;  %v9356_v35 = vld [vmem:[#allocation11_spill] sm:$0xff] }
 0xaa1   :  { %9350 = vst [vmem:[#allocation60_spill] sm:$0xff] %v8277_v61  ;;  %9351 = vst [vmem:[#allocation62_spill] sm:$0xff] %v8279_v6  ;;  %v8281_v43 = vadd.f32 %v3246_v24, %v1266_v52  ;;  %v8283_v56 = vadd.f32 %v3287_v1, %v1268_v10  ;;  %v9355_v52 = vld [vmem:[#allocation12_spill] sm:$0xff]  ;;  %v1013_v39 = vadd.f32 %v9356_v35, %v9327_v9 }
 0xaa2   :  { %v3248_v30 = vpop.f32.mrf.mxu0  ;;  %v3289_v62 = vpop.f32.mrf.mxu1  ;;  %v1012_v24 = vadd.f32 %v9355_v52, %v9329_v47 }
 0xaa3   :  { %9352 = vst [vmem:[#allocation32_spill] sm:$0xff] %v8281_v43  ;;  %9353 = vst [vmem:[#allocation33_spill] sm:$0xff] %v8283_v56 }
 0xaa4   :  { %v3249_v16 = vpop.f32.mrf.mxu0  ;;  %v3290_v58 = vpop.f32.mrf.mxu1 }
 0xabe   :  { %v3338_v50 = vpop.f32.mrf.mxu0  ;;  %v3379_v48 = vpop.f32.mrf.mxu1 }
 0xabf   :  { %v3386_v10 = vadd.f32 %v3338_v50, %v1011_v27  ;;  %v3388_v47 = vadd.f32 %v3379_v48, %v1013_v39  ;;  %v9357_v27 = vld [vmem:[#allocation13_spill] sm:$0xff] }
 0xac0   :  { %v3340_v41 = vpop.f32.mrf.mxu0  ;;  %v3381_v0 = vpop.f32.mrf.mxu1 }
 0xac1   :  { %v3387_v62 = vadd.f32 %v3340_v41, %v1012_v24  ;;  %v1014_v41 = vadd.f32 %v9357_v27, %v7413_v21 }
 0xac2   :  { %v3342_v44 = vpop.f32.mrf.mxu0  ;;  %v3383_v32 = vpop.f32.mrf.mxu1 }
 0xac3   :  { %v3389_v52 = vadd.f32 %v3381_v0, %v1014_v41 }
 0xac4   :  { %v3343_v8 = vpop.f32.mrf.mxu0  ;;  %v3384_v5 = vpop.f32.mrf.mxu1 }
 0xade   :  { %v3625_v1 = vpop.f32.mrf.mxu0  ;;  %v3666_v30 = vpop.f32.mrf.mxu1 }
 0xadf   :  { %v3673_v16 = vadd.f32 %v3625_v1, %v3386_v10  ;;  %v3675_v50 = vadd.f32 %v3666_v30, %v3388_v47 }
 0xae0   :  { %v3627_v58 = vpop.f32.mrf.mxu0  ;;  %v3668_v56 = vpop.f32.mrf.mxu1 }
 0xae1   :  { %v4854_v6 = vmul.f32 -1.442695, %v3673_v16  ;;  %v3674_v43 = vadd.f32 %v3627_v58, %v3387_v62  ;;  %v4856_v24 = vmul.f32 -1.442695, %v3675_v50  ;;  %v3676_v10 = vadd.f32 %v3668_v56, %v3389_v52 }
 0xae2   :  { %v3629_v61 = vpop.f32.mrf.mxu0  ;;  %v3670_v44 = vpop.f32.mrf.mxu1 }
 0xae3   :  { %5265 = vpow2.f32 %v4854_v6  ;;  %v4855_v32 = vmul.f32 -1.442695, %v3674_v43 }
 0xae4   :  { %v3630_v8 = vpop.f32.mrf.mxu0  ;;  %v3671_v5 = vpop.f32.mrf.mxu1 }
 0xae5   :  { %5267 = vpow2.f32 %v4855_v32  ;;  %v3947_v5 = vsel %vm3946_vm3, 1, %v8914_v7  ;;  %vm4678_vm3 = vcmask 80896  }
 0xae6   :  { %5269 = vpow2.f32 %v4856_v24  ;;  %3949 = vperm.xlu1 %4924, %v3947_v5  }
 0xae7   :  { %5271 = vtanh.f32 %v3676_v10 }
 0xaf0   :  { %v5266_v1 = vpop.eup %5265 }
 0xaf1   :  { %v3686_v62 = vadd.f32 1.0, %v5266_v1 }
 0xaf2   :  { %v5268_v61 = vpop.eup %5267 }
 0xaf3   :  { %5273 = vrcp.f32 %v3686_v62  ;;  %v3687_v6 = vadd.f32 1.0, %v5268_v61  ;;  %v5270_v43 = vpop.eup %5269 }
 0xaf4   :  { %v5272_v16 = vpop.eup %5271  ;;  %v3688_v30 = vadd.f32 1.0, %v5270_v43 }
 0xaf5   :  { %5275 = vrcp.f32 %v3687_v6 }
 0xaf6   :  { %5277 = vrcp.f32 %v3688_v30 }
 0xb00   :  { %v5274_v9 = vpop.eup %5273 }
 0xb01   :  { %v3697_v58 = vmul.f32 %v5274_v9, %v5272_v16 }
 0xb02   :  { %v5276_v48 = vpop.eup %5275 }
 0xb03   :  { %v3696_v44 = vmul.f32 0.0, %v5276_v48  ;;  %v5278_v21 = vpop.eup %5277 }
 0xb05   :  { %v8293_v32 = vadd.f32 %v3697_v58, %v3696_v44 }
 0xb07   :  { %5279 = vtanh.f32 %v8293_v32 }
 0xb14   :  { %v5280_v0 = vpop.eup %5279 }
 0xb15   :  { %v8296_v56 = vmul.f32 %v5280_v0, %v5278_v21 }
 0xb17   :  { %v3701_v8 = vpack.c.bf16 %v8296_v56, %v8296_v56 }
 0xb19   :  { %3746 = vmatmul.mubr.bf16.vlgmr.msra.gmra.mxu0 %v3701_v8  ;;  %3787 = vmatmul.mubr.bf16.vlgmr.msra.gmra.mxu1 %v3701_v8 }
 0xb1a   :  { %3836 = vmatpush1.bf16.msra.mxu0 %v8135_v42  ;;  %3877 = vmatpush1.bf16.msra.mxu1 %v8137_v19 }
 0xb1b   :  { %3837 = vmatprep.subr.bf16.mxu0 %v8141_v46  ;;  %3878 = vmatprep.subr.bf16.mxu1 %v8143_v3 }
 0xb1c   :  { %3867 = vmatprep.mubr.bf16.mxu0 %v8914_v7  ;;  %3908 = vmatprep.mubr.bf16.mxu1 %v8914_v7 }
 0xb1e   :  { %3838 = vmatpush1.bf16.msra.mxu0 %v8147_v18  ;;  %3879 = vmatpush1.bf16.msra.mxu1 %v8149_v25 }
 0xb1f   :  { %3839 = vmatprep.subr.bf16.mxu0 %v8153_v11  ;;  %3880 = vmatprep.subr.bf16.mxu1 %v8155_v54 }
 0xb22   :  { %3840 = vmatpush1.bf16.msra.mxu0 %v8161_v34  ;;  %3881 = vmatpush1.bf16.msra.mxu1 %v8163_v60 }
 0xb23   :  { %3841 = vmatprep.subr.bf16.mxu0 %v8167_v17  ;;  %3882 = vmatprep.subr.bf16.mxu1 %v8169_v28 }
 0xb26   :  { %3842 = vmatpush1.bf16.msra.mxu0 %v8173_v23  ;;  %3883 = vmatpush1.bf16.msra.mxu1 %v8175_v14 }
 0xb27   :  { %3843 = vmatprep.subr.bf16.mxu0 %v8179_v59  ;;  %3884 = vmatprep.subr.bf16.mxu1 %v8181_v29 }
 0xb2a   :  { %3844 = vmatpush1.bf16.msra.mxu0 %v8185_v13  ;;  %3885 = vmatpush1.bf16.msra.mxu1 %v8187_v22 }
 0xb2b   :  { %3845 = vmatprep.subr.bf16.mxu0 %v8191_v57  ;;  %3886 = vmatprep.subr.bf16.mxu1 %v8193_v63 }
 0xb2e   :  { %3846 = vmatpush1.bf16.msra.mxu0 %v8197_v12  ;;  %3887 = vmatpush1.bf16.msra.mxu1 %v8199_v38 }
 0xb2f   :  { %3847 = vmatprep.subr.bf16.mxu0 %v8203_v55  ;;  %3888 = vmatprep.subr.bf16.mxu1 %v8205_v45 }
 0xb32   :  { %3848 = vmatpush1.bf16.msra.mxu0 %v8209_v37  ;;  %3889 = vmatpush1.bf16.msra.mxu1 %v8211_v4 }
 0xb33   :  { %3849 = vmatprep.subr.bf16.mxu0 %v8215_v33  ;;  %3890 = vmatprep.subr.bf16.mxu1 %v8217_v20 }
 0xb36   :  { %3850 = vmatpush1.bf16.msra.mxu0 %v8221_v15  ;;  %3891 = vmatpush1.bf16.msra.mxu1 %v8223_v36 }
 0xb37   :  { %3957 = vmatprep.subr.bf16.mxu0 %v8131_v31  ;;  %3998 = vmatprep.subr.bf16.mxu1 %v8133_v2 }
 0xbd9   :  { %v3747_v35 = vpop.f32.mrf.mxu0  ;;  %v3788_v39 = vpop.f32.mrf.mxu1 }
 0xbda   :  { %v3795_v47 = vadd.f32 %v3747_v35, %v8093_v53  ;;  %v3797_v6 = vadd.f32 %v3788_v39, %v8095_v26 }
 0xbdb   :  { %v3749_v50 = vpop.f32.mrf.mxu0  ;;  %v3790_v27 = vpop.f32.mrf.mxu1 }
 0xbdc   :  { %v4857_v41 = vmul.f32 -1.442695, %v3795_v47  ;;  %v3796_v52 = vadd.f32 %v3749_v50, %v8097_v40  ;;  %v4859_v43 = vmul.f32 -1.442695, %v3797_v6  ;;  %v3798_v16 = vadd.f32 %v3790_v27, %v8099_v51  ;;  %v3706_v51 = vpop.permute.xlu0 %3705 }
 0xbdd   :  { %v3751_v24 = vpop.f32.mrf.mxu0  ;;  %v3792_v10 = vpop.f32.mrf.mxu1  ;;  %vm3707_vm4 = vcmp.eq.s32.totalorder %v3706_v51, 1 }
 0xbde   :  { %5281 = vpow2.f32 %v4857_v41  ;;  %v4858_v1 = vmul.f32 -1.442695, %v3796_v52  ;;  %v3708_v27 = vsel %vm3707_vm4, %v8296_v56, 0.0  ;;  %v9358_v10 = vld [vmem:[#allocation97_spill] sm:$0xff] }
 0xbdf   :  { %v3752_v62 = vpop.f32.mrf.mxu0  ;;  %v3793_v61 = vpop.f32.mrf.mxu1 }
 0xbe0   :  { %5283 = vpow2.f32 %v4858_v1  ;;  %v3828_v35 = vpop.permute.xlu0 %3827 }
 0xbe1   :  { %5285 = vpow2.f32 %v4859_v43  ;;  %vm3829_vm5 = vcmp.eq.s32.totalorder %v3828_v35, 1  ;;  %v9359_v43 = vld [vmem:[#allocation91_spill] sm:$0xff] }
 0xbe2   :  { %5287 = vtanh.f32 %v3798_v16 }
 0xbeb   :  { %v5282_v9 = vpop.eup %5281 }
 0xbec   :  { %v3808_v58 = vadd.f32 1.0, %v5282_v9 }
 0xbed   :  { %v5284_v53 = vpop.eup %5283 }
 0xbee   :  { %5289 = vrcp.f32 %v3808_v58  ;;  %v3809_v48 = vadd.f32 1.0, %v5284_v53  ;;  %v5286_v40 = vpop.eup %5285 }
 0xbef   :  { %v5288_v30 = vpop.eup %5287  ;;  %v3810_v8 = vadd.f32 1.0, %v5286_v40 }
 0xbf0   :  { %5291 = vrcp.f32 %v3809_v48 }
 0xbf1   :  { %5293 = vrcp.f32 %v3810_v8 }
 0xbfb   :  { %v5290_v44 = vpop.eup %5289 }
 0xbfc   :  { %v3819_v21 = vmul.f32 %v5290_v44, %v5288_v30  ;;  %v9360_v30 = vld [vmem:[#allocation98_spill] sm:$0xff] }
 0xbfd   :  { %v5292_v0 = vpop.eup %5291 }
 0xbfe   :  { %v3818_v5 = vmul.f32 %v5292_v0, %v8293_v32  ;;  %v5294_v39 = vpop.eup %5293  ;;  %v4069_v32 = vsel %vm4068_vm6, 1, %v8914_v7  ;;  %v9361_v0 = vld [vmem:[#allocation92_spill] sm:$0xff] }
 0xbff   :  { %4071 = vperm.xlu1 %4924, %v4069_v32  }
 0xc00   :  { %v8341_v26 = vadd.f32 %v3819_v21, %v3818_v5 }
 0xc02   :  { %5295 = vtanh.f32 %v8341_v26 }
 0xc0f   :  { %v5296_v47 = vpop.eup %5295 }
 0xc10   :  { %v3822_v50 = vmul.f32 %v5296_v47, %v5294_v39 }
 0xc12   :  { %v3823_v41 = vpack.c.bf16 %v3822_v50, %v3822_v50  ;;  %v8345_v52 = vsel %vm3829_vm5, %v3822_v50, %v3708_v27 }
 0xc14   :  { %3868 = vmatmul.mubr.bf16.vlgmr.msra.gmra.mxu0 %v3823_v41  ;;  %3909 = vmatmul.mubr.bf16.vlgmr.msra.gmra.mxu1 %v3823_v41 }
 0xc15   :  { %3958 = vmatpush1.bf16.msra.mxu0 %v8135_v42  ;;  %3999 = vmatpush1.bf16.msra.mxu1 %v8137_v19 }
 0xc16   :  { %3959 = vmatprep.subr.bf16.mxu0 %v8141_v46  ;;  %4000 = vmatprep.subr.bf16.mxu1 %v8143_v3 }
 0xc17   :  { %3989 = vmatprep.mubr.bf16.mxu0 %v8914_v7  ;;  %4030 = vmatprep.mubr.bf16.mxu1 %v8914_v7 }
 0xc19   :  { %3960 = vmatpush1.bf16.msra.mxu0 %v8147_v18  ;;  %4001 = vmatpush1.bf16.msra.mxu1 %v8149_v25 }
 0xc1a   :  { %3961 = vmatprep.subr.bf16.mxu0 %v8153_v11  ;;  %4002 = vmatprep.subr.bf16.mxu1 %v8155_v54 }
 0xc1d   :  { %3962 = vmatpush1.bf16.msra.mxu0 %v8161_v34  ;;  %4003 = vmatpush1.bf16.msra.mxu1 %v8163_v60 }
 0xc1e   :  { %3963 = vmatprep.subr.bf16.mxu0 %v8167_v17  ;;  %4004 = vmatprep.subr.bf16.mxu1 %v8169_v28 }
 0xc21   :  { %3964 = vmatpush1.bf16.msra.mxu0 %v8173_v23  ;;  %4005 = vmatpush1.bf16.msra.mxu1 %v8175_v14 }
 0xc22   :  { %3965 = vmatprep.subr.bf16.mxu0 %v8179_v59  ;;  %4006 = vmatprep.subr.bf16.mxu1 %v8181_v29 }
 0xc25   :  { %3966 = vmatpush1.bf16.msra.mxu0 %v8185_v13  ;;  %4007 = vmatpush1.bf16.msra.mxu1 %v8187_v22 }
 0xc26   :  { %3967 = vmatprep.subr.bf16.mxu0 %v8191_v57  ;;  %4008 = vmatprep.subr.bf16.mxu1 %v8193_v63 }
 0xc29   :  { %3968 = vmatpush1.bf16.msra.mxu0 %v8197_v12  ;;  %4009 = vmatpush1.bf16.msra.mxu1 %v8199_v38 }
 0xc2a   :  { %3969 = vmatprep.subr.bf16.mxu0 %v8203_v55  ;;  %4010 = vmatprep.subr.bf16.mxu1 %v8205_v45 }
 0xc2d   :  { %3970 = vmatpush1.bf16.msra.mxu0 %v8209_v37  ;;  %4011 = vmatpush1.bf16.msra.mxu1 %v8211_v4 }
 0xc2e   :  { %3971 = vmatprep.subr.bf16.mxu0 %v8215_v33  ;;  %4012 = vmatprep.subr.bf16.mxu1 %v8217_v20 }
 0xc31   :  { %3972 = vmatpush1.bf16.msra.mxu0 %v8221_v15  ;;  %4013 = vmatpush1.bf16.msra.mxu1 %v8223_v36 }
 0xc32   :  { %4079 = vmatprep.subr.bf16.mxu0 %v8131_v31  ;;  %4120 = vmatprep.subr.bf16.mxu1 %v8133_v2 }
 0xcd4   :  { %v3869_v56 = vpop.f32.mrf.mxu0  ;;  %v3910_v24 = vpop.f32.mrf.mxu1 }
 0xcd5   :  { %v3917_v1 = vadd.f32 %v3869_v56, %v9358_v10  ;;  %v3919_v44 = vadd.f32 %v3910_v24, %v9360_v30 }
 0xcd6   :  { %v3871_v62 = vpop.f32.mrf.mxu0  ;;  %v3912_v61 = vpop.f32.mrf.mxu1 }
 0xcd7   :  { %v4860_v6 = vmul.f32 -1.442695, %v3917_v1  ;;  %v3918_v16 = vadd.f32 %v3871_v62, %v9359_v43  ;;  %v4862_v21 = vmul.f32 -1.442695, %v3919_v44  ;;  %v3920_v8 = vadd.f32 %v3912_v61, %v9361_v0  ;;  %v3950_v1 = vpop.permute.xlu1 %3949  ;;  %v9363_v44 = vld [vmem:[#allocation83_spill] sm:$0xff] }
 0xcd8   :  { %v3873_v9 = vpop.f32.mrf.mxu0  ;;  %v3914_v58 = vpop.f32.mrf.mxu1  ;;  %vm3951_vm7 = vcmp.eq.s32.totalorder %v3950_v1, 1 }
 0xcd9   :  { %5297 = vpow2.f32 %v4860_v6  ;;  %v4861_v53 = vmul.f32 -1.442695, %v3918_v16  ;;  %v9362_v58 = vld [vmem:[#allocation81_spill] sm:$0xff] }
 0xcda   :  { %v3874_v48 = vpop.f32.mrf.mxu0  ;;  %v3915_v40 = vpop.f32.mrf.mxu1 }
 0xcdb   :  { %5299 = vpow2.f32 %v4861_v53 }
 0xcdc   :  { %5301 = vpow2.f32 %v4862_v21 }
 0xcdd   :  { %5303 = vtanh.f32 %v3920_v8 }
 0xce6   :  { %v5298_v5 = vpop.eup %5297 }
 0xce7   :  { %v3930_v51 = vadd.f32 1.0, %v5298_v5 }
 0xce8   :  { %v5300_v35 = vpop.eup %5299 }
 0xce9   :  { %5305 = vrcp.f32 %v3930_v51  ;;  %v3931_v39 = vadd.f32 1.0, %v5300_v35  ;;  %v5302_v47 = vpop.eup %5301 }
 0xcea   :  { %v5304_v50 = vpop.eup %5303  ;;  %v3932_v56 = vadd.f32 1.0, %v5302_v47 }
 0xceb   :  { %5307 = vrcp.f32 %v3931_v39 }
 0xcec   :  { %5309 = vrcp.f32 %v3932_v56 }
 0xcf6   :  { %v5306_v27 = vpop.eup %5305 }
 0xcf7   :  { %v3941_v41 = vmul.f32 %v5306_v27, %v5304_v50  ;;  %v9365_v50 = vld [vmem:[#allocation31_spill] sm:$0xff] }
 0xcf8   :  { %v5308_v32 = vpop.eup %5307 }
 0xcf9   :  { %v3940_v10 = vmul.f32 %v5308_v32, %v8341_v26  ;;  %v5310_v62 = vpop.eup %5309  ;;  %v4191_v26 = vsel %vm4190_vm8, 1, %v8914_v7 }
 0xcfa   :  { %4193 = vperm.xlu0 %4923, %v4191_v26  }
 0xcfb   :  { %v8388_v24 = vadd.f32 %v3941_v41, %v3940_v10 }
 0xcfd   :  { %5311 = vtanh.f32 %v8388_v24 }
 0xd0a   :  { %v5312_v61 = vpop.eup %5311 }
 0xd0b   :  { %v3944_v6 = vmul.f32 %v5312_v61, %v5310_v62 }
 0xd0d   :  { %v3945_v43 = vpack.c.bf16 %v3944_v6, %v3944_v6  ;;  %v8392_v16 = vsel %vm3951_vm7, %v3944_v6, %v8345_v52 }
 0xd0f   :  { %3990 = vmatmul.mubr.bf16.vlgmr.msra.gmra.mxu0 %v3945_v43  ;;  %4031 = vmatmul.mubr.bf16.vlgmr.msra.gmra.mxu1 %v3945_v43 }
 0xd10   :  { %4080 = vmatpush1.bf16.msra.mxu0 %v8135_v42  ;;  %4121 = vmatpush1.bf16.msra.mxu1 %v8137_v19 }
 0xd11   :  { %4081 = vmatprep.subr.bf16.mxu0 %v8141_v46  ;;  %4122 = vmatprep.subr.bf16.mxu1 %v8143_v3 }
 0xd12   :  { %4111 = vmatprep.mubr.bf16.mxu0 %v8914_v7  ;;  %4152 = vmatprep.mubr.bf16.mxu1 %v8914_v7 }
 0xd14   :  { %4082 = vmatpush1.bf16.msra.mxu0 %v8147_v18  ;;  %4123 = vmatpush1.bf16.msra.mxu1 %v8149_v25 }
 0xd15   :  { %4083 = vmatprep.subr.bf16.mxu0 %v8153_v11  ;;  %4124 = vmatprep.subr.bf16.mxu1 %v8155_v54 }
 0xd18   :  { %4084 = vmatpush1.bf16.msra.mxu0 %v8161_v34  ;;  %4125 = vmatpush1.bf16.msra.mxu1 %v8163_v60 }
 0xd19   :  { %4085 = vmatprep.subr.bf16.mxu0 %v8167_v17  ;;  %4126 = vmatprep.subr.bf16.mxu1 %v8169_v28 }
 0xd1c   :  { %4086 = vmatpush1.bf16.msra.mxu0 %v8173_v23  ;;  %4127 = vmatpush1.bf16.msra.mxu1 %v8175_v14 }
 0xd1d   :  { %4087 = vmatprep.subr.bf16.mxu0 %v8179_v59  ;;  %4128 = vmatprep.subr.bf16.mxu1 %v8181_v29 }
 0xd20   :  { %4088 = vmatpush1.bf16.msra.mxu0 %v8185_v13  ;;  %4129 = vmatpush1.bf16.msra.mxu1 %v8187_v22 }
 0xd21   :  { %4089 = vmatprep.subr.bf16.mxu0 %v8191_v57  ;;  %4130 = vmatprep.subr.bf16.mxu1 %v8193_v63 }
 0xd24   :  { %4090 = vmatpush1.bf16.msra.mxu0 %v8197_v12  ;;  %4131 = vmatpush1.bf16.msra.mxu1 %v8199_v38 }
 0xd25   :  { %4091 = vmatprep.subr.bf16.mxu0 %v8203_v55  ;;  %4132 = vmatprep.subr.bf16.mxu1 %v8205_v45 }
 0xd28   :  { %4092 = vmatpush1.bf16.msra.mxu0 %v8209_v37  ;;  %4133 = vmatpush1.bf16.msra.mxu1 %v8211_v4 }
 0xd29   :  { %4093 = vmatprep.subr.bf16.mxu0 %v8215_v33  ;;  %4134 = vmatprep.subr.bf16.mxu1 %v8217_v20 }
 0xd2c   :  { %4094 = vmatpush1.bf16.msra.mxu0 %v8221_v15  ;;  %4135 = vmatpush1.bf16.msra.mxu1 %v8223_v36 }
 0xd2d   :  { %4201 = vmatprep.subr.bf16.mxu0 %v8131_v31  ;;  %4242 = vmatprep.subr.bf16.mxu1 %v8133_v2 }
 0xdcf   :  { %v3991_v52 = vpop.f32.mrf.mxu0  ;;  %v4032_v9 = vpop.f32.mrf.mxu1 }
 0xdd0   :  { %v4039_v53 = vadd.f32 %v3991_v52, %v9362_v58  ;;  %v4041_v39 = vadd.f32 %v4032_v9, %v9364_v49  ;;  %v4072_v58 = vpop.permute.xlu1 %4071 }
 0xdd1   :  { %v3993_v48 = vpop.f32.mrf.mxu0  ;;  %v4034_v40 = vpop.f32.mrf.mxu1  ;;  %vm4073_vm9 = vcmp.eq.s32.totalorder %v4072_v58, 1 }
 0xdd2   :  { %v4863_v30 = vmul.f32 -1.442695, %v4039_v53  ;;  %v4040_v21 = vadd.f32 %v3993_v48, %v9363_v44  ;;  %v4865_v47 = vmul.f32 -1.442695, %v4041_v39  ;;  %v4042_v27 = vadd.f32 %v4034_v40, %v9365_v50 }
 0xdd3   :  { %v3995_v0 = vpop.f32.mrf.mxu0  ;;  %v4036_v8 = vpop.f32.mrf.mxu1 }
 0xdd4   :  { %5313 = vpow2.f32 %v4863_v30  ;;  %v4864_v5 = vmul.f32 -1.442695, %v4040_v21  ;;  %v9366_v8 = vld [vmem:[#allocation52_spill] sm:$0xff] }
 0xdd5   :  { %v3996_v51 = vpop.f32.mrf.mxu0  ;;  %v4037_v35 = vpop.f32.mrf.mxu1 }
 0xdd6   :  { %5315 = vpow2.f32 %v4864_v5 }
 0xdd7   :  { %5317 = vpow2.f32 %v4865_v47 }
 0xdd8   :  { %5319 = vtanh.f32 %v4042_v27 }
 0xde1   :  { %v5314_v41 = vpop.eup %5313 }
 0xde2   :  { %v4052_v32 = vadd.f32 1.0, %v5314_v41 }
 0xde3   :  { %v5316_v56 = vpop.eup %5315 }
 0xde4   :  { %5321 = vrcp.f32 %v4052_v32  ;;  %v4053_v10 = vadd.f32 1.0, %v5316_v56  ;;  %v5318_v1 = vpop.eup %5317  ;;  %v9368_v32 = vld [vmem:[#allocation54_spill] sm:$0xff] }
 0xde5   :  { %v5320_v62 = vpop.eup %5319  ;;  %v4054_v26 = vadd.f32 1.0, %v5318_v1  ;;  %v9369_v1 = vld [vmem:[#allocation80_spill] sm:$0xff] }
 0xde6   :  { %5323 = vrcp.f32 %v4053_v10 }
 0xde7   :  { %5325 = vrcp.f32 %v4054_v26 }
 0xdf1   :  { %v5322_v61 = vpop.eup %5321 }
 0xdf2   :  { %v4063_v6 = vmul.f32 %v5322_v61, %v5320_v62 }
 0xdf3   :  { %v5324_v43 = vpop.eup %5323 }
 0xdf4   :  { %v4062_v52 = vmul.f32 %v5324_v43, %v8388_v24  ;;  %v5326_v53 = vpop.eup %5325  ;;  %v8478_v24 = vld [vmem:[%s8591_s1] sm:$0xff] }
 0xdf5   :  { %vm4312_vm10 = vcmp.eq.s32.totalorder %v8478_v24, 5  ;;  %vm4434_vm12 = vcmp.eq.s32.totalorder %v8478_v24, 6  ;;  %vm4555_vm14 = vcmp.eq.s32.totalorder %v8478_v24, 7  ;;  %v9376_v24 = vld [vmem:[#allocation94_spill] sm:$0xff] }
 0xdf6   :  { %v8435_v9 = vadd.f32 %v4063_v6, %v4062_v52 }
 0xdf8   :  { %5327 = vtanh.f32 %v8435_v9 }
 0xe05   :  { %v5328_v48 = vpop.eup %5327 }
 0xe06   :  { %v4066_v40 = vmul.f32 %v5328_v48, %v5326_v53 }
 0xe08   :  { %v4067_v30 = vpack.c.bf16 %v4066_v40, %v4066_v40  ;;  %v8439_v44 = vsel %vm4073_vm9, %v4066_v40, %v8392_v16  ;;  %v4313_v16 = vsel %vm4312_vm10, 1, %v8914_v7 }
 0xe09   :  { %4315 = vperm.xlu1 %4924, %v4313_v16  }
 0xe0a   :  { %4112 = vmatmul.mubr.bf16.vlgmr.msra.gmra.mxu0 %v4067_v30  ;;  %4153 = vmatmul.mubr.bf16.vlgmr.msra.gmra.mxu1 %v4067_v30 }
 0xe0b   :  { %4202 = vmatpush1.bf16.msra.mxu0 %v8135_v42  ;;  %4243 = vmatpush1.bf16.msra.mxu1 %v8137_v19 }
 0xe0c   :  { %4203 = vmatprep.subr.bf16.mxu0 %v8141_v46  ;;  %4244 = vmatprep.subr.bf16.mxu1 %v8143_v3 }
 0xe0d   :  { %4233 = vmatprep.mubr.bf16.mxu0 %v8914_v7  ;;  %4274 = vmatprep.mubr.bf16.mxu1 %v8914_v7 }
 0xe0f   :  { %4204 = vmatpush1.bf16.msra.mxu0 %v8147_v18  ;;  %4245 = vmatpush1.bf16.msra.mxu1 %v8149_v25 }
 0xe10   :  { %4205 = vmatprep.subr.bf16.mxu0 %v8153_v11  ;;  %4246 = vmatprep.subr.bf16.mxu1 %v8155_v54 }
 0xe13   :  { %4206 = vmatpush1.bf16.msra.mxu0 %v8161_v34  ;;  %4247 = vmatpush1.bf16.msra.mxu1 %v8163_v60 }
 0xe14   :  { %4207 = vmatprep.subr.bf16.mxu0 %v8167_v17  ;;  %4248 = vmatprep.subr.bf16.mxu1 %v8169_v28 }
 0xe17   :  { %4208 = vmatpush1.bf16.msra.mxu0 %v8173_v23  ;;  %4249 = vmatpush1.bf16.msra.mxu1 %v8175_v14 }
 0xe18   :  { %4209 = vmatprep.subr.bf16.mxu0 %v8179_v59  ;;  %4250 = vmatprep.subr.bf16.mxu1 %v8181_v29 }
 0xe1b   :  { %4210 = vmatpush1.bf16.msra.mxu0 %v8185_v13  ;;  %4251 = vmatpush1.bf16.msra.mxu1 %v8187_v22 }
 0xe1c   :  { %4211 = vmatprep.subr.bf16.mxu0 %v8191_v57  ;;  %4252 = vmatprep.subr.bf16.mxu1 %v8193_v63 }
 0xe1f   :  { %4212 = vmatpush1.bf16.msra.mxu0 %v8197_v12  ;;  %4253 = vmatpush1.bf16.msra.mxu1 %v8199_v38 }
 0xe20   :  { %4213 = vmatprep.subr.bf16.mxu0 %v8203_v55  ;;  %4254 = vmatprep.subr.bf16.mxu1 %v8205_v45 }
 0xe23   :  { %4214 = vmatpush1.bf16.msra.mxu0 %v8209_v37  ;;  %4255 = vmatpush1.bf16.msra.mxu1 %v8211_v4 }
 0xe24   :  { %4215 = vmatprep.subr.bf16.mxu0 %v8215_v33  ;;  %4256 = vmatprep.subr.bf16.mxu1 %v8217_v20 }
 0xe27   :  { %4216 = vmatpush1.bf16.msra.mxu0 %v8221_v15  ;;  %4257 = vmatpush1.bf16.msra.mxu1 %v8223_v36 }
 0xe28   :  { %4323 = vmatprep.subr.bf16.mxu0 %v8131_v31  ;;  %4364 = vmatprep.subr.bf16.mxu1 %v8133_v2  ;;  %v9367_v31 = vld [vmem:[#allocation79_spill] sm:$0xff] }
 0xeca   :  { %v4113_v21 = vpop.f32.mrf.mxu0  ;;  %v4154_v0 = vpop.f32.mrf.mxu1 }
 0xecb   :  { %v4161_v5 = vadd.f32 %v4113_v21, %v9366_v8  ;;  %v4163_v56 = vadd.f32 %v4154_v0, %v9368_v32  ;;  %v4194_v0 = vpop.permute.xlu0 %4193 }
 0xecc   :  { %v4115_v51 = vpop.f32.mrf.mxu0  ;;  %v4156_v35 = vpop.f32.mrf.mxu1  ;;  %vm4195_vm11 = vcmp.eq.s32.totalorder %v4194_v0, 1  ;;  %v5604_v0 = vld [vmem:[#allocation6 + $0x60] ss:$16 sps:$4 sm:$0xff]  }
 0xecd   :  { %v4866_v49 = vmul.f32 -1.442695, %v4161_v5  ;;  %v4162_v39 = vadd.f32 %v4115_v51, %v9367_v31  ;;  %v4868_v10 = vmul.f32 -1.442695, %v4163_v56  ;;  %v4164_v62 = vadd.f32 %v4156_v35, %v9369_v1  ;;  %v5588_v56 = vld [vmem:[#allocation6 + $0xe0] ss:$16 sps:$4 sm:$0xff]  }
 0xece   :  { %v4117_v2 = vpop.f32.mrf.mxu0  ;;  %v4158_v47 = vpop.f32.mrf.mxu1  ;;  %v5590_v1 = vld [vmem:[#allocation6 + $0xc4] ss:$16 sps:$4 sm:$0xff]  }
 0xecf   :  { %5329 = vpow2.f32 %v4866_v49  ;;  %v4867_v50 = vmul.f32 -1.442695, %v4162_v39  ;;  %v4316_v2 = vpop.permute.xlu1 %4315 }
 0xed0   :  { %v4118_v27 = vpop.f32.mrf.mxu0  ;;  %v4159_v41 = vpop.f32.mrf.mxu1  ;;  %vm4317_vm13 = vcmp.eq.s32.totalorder %v4316_v2, 1 }
 0xed1   :  { %5331 = vpow2.f32 %v4867_v50 }
 0xed2   :  { %5333 = vpow2.f32 %v4868_v10  ;;  %v5589_v10 = vld [vmem:[#allocation6 + $0xe8] ss:$16 sps:$4 sm:$0xff]  }
 0xed3   :  { %5335 = vtanh.f32 %v4164_v62  ;;  %v5591_v62 = vld [vmem:[#allocation6 + $0xcc] ss:$16 sps:$4 sm:$0xff]  }
 0xedc   :  { %v5330_v61 = vpop.eup %5329 }
 0xedd   :  { %v4174_v6 = vadd.f32 1.0, %v5330_v61  ;;  %v5592_v61 = vld [vmem:[#allocation6 + $0xc0] ss:$16 sps:$4 sm:$0xff]  }
 0xede   :  { %v5332_v43 = vpop.eup %5331 }
 0xedf   :  { %5337 = vrcp.f32 %v4174_v6  ;;  %v4175_v26 = vadd.f32 1.0, %v5332_v43  ;;  %v5334_v52 = vpop.eup %5333  ;;  %v5593_v6 = vld [vmem:[#allocation6 + $0xc8] ss:$16 sps:$4 sm:$0xff]   ;;  %v5594_v43 = vld [vmem:[#allocation6 + $0xa4] ss:$16 sps:$4 sm:$0xff]  }
 0xee0   :  { %v5336_v58 = vpop.eup %5335  ;;  %v4176_v30 = vadd.f32 1.0, %v5334_v52  ;;  %v5596_v52 = vld [vmem:[#allocation6 + $0xa0] ss:$16 sps:$4 sm:$0xff]  }
 0xee1   :  { %5339 = vrcp.f32 %v4175_v26  ;;  %v5595_v26 = vld [vmem:[#allocation6 + $0xac] ss:$16 sps:$4 sm:$0xff]  }
 0xee2   :  { %5341 = vrcp.f32 %v4176_v30  ;;  %v5601_v30 = vld [vmem:[#allocation6 + $0x88] ss:$16 sps:$4 sm:$0xff]  }
 0xeec   :  { %v5338_v53 = vpop.eup %5337 }
 0xeed   :  { %v4185_v48 = vmul.f32 %v5338_v53, %v5336_v58  ;;  %v5597_v58 = vld [vmem:[#allocation6 + $0xa8] ss:$16 sps:$4 sm:$0xff]   ;;  %v5598_v53 = vld [vmem:[#allocation6 + $0x84] ss:$16 sps:$4 sm:$0xff]  }
 0xeee   :  { %v5340_v40 = vpop.eup %5339 }
 0xeef   :  { %v4184_v16 = vmul.f32 %v5340_v40, %v8435_v9  ;;  %v5342_v8 = vpop.eup %5341  ;;  %v5600_v40 = vld [vmem:[#allocation6 + $0x80] ss:$16 sps:$4 sm:$0xff]  }
 0xef1   :  { %v8487_v21 = vadd.f32 %v4185_v48, %v4184_v16  ;;  %v5599_v48 = vld [vmem:[#allocation6 + $0x8c] ss:$16 sps:$4 sm:$0xff]   ;;  %v5602_v16 = vld [vmem:[#allocation6 + $0x64] ss:$16 sps:$4 sm:$0xff]  }
 0xef3   :  { %5343 = vtanh.f32 %v8487_v21 }
 0xf00   :  { %v5344_v5 = vpop.eup %5343 }
 0xf01   :  { %v4188_v51 = vmul.f32 %v5344_v5, %v5342_v8  ;;  %v5605_v8 = vld [vmem:[#allocation6 + $0x68] ss:$16 sps:$4 sm:$0xff]   ;;  %v5606_v5 = vld [vmem:[#allocation6 + $0x44] ss:$16 sps:$4 sm:$0xff]  }
 0xf03   :  { %v4189_v35 = vpack.c.bf16 %v4188_v51, %v4188_v51  ;;  %v8491_v49 = vsel %vm4195_vm11, %v4188_v51, %v8439_v44  ;;  %v5607_v51 = vld [vmem:[#allocation6 + $0x4c] ss:$16 sps:$4 sm:$0xff]  }
 0xf05   :  { %4234 = vmatmul.mubr.bf16.vlgmr.msra.gmra.mxu0 %v4189_v35  ;;  %4275 = vmatmul.mubr.bf16.vlgmr.msra.gmra.mxu1 %v4189_v35  ;;  %v5608_v35 = vld [vmem:[#allocation6 + $0x40] ss:$16 sps:$4 sm:$0xff]  }
 0xf06   :  { %4324 = vmatpush1.bf16.msra.mxu0 %v8135_v42  ;;  %4365 = vmatpush1.bf16.msra.mxu1 %v8137_v19  ;;  %v5586_v42 = vld [vmem:[#allocation6 + $0xe4] ss:$16 sps:$4 sm:$0xff]   ;;  %v5587_v19 = vld [vmem:[#allocation6 + $0xec] ss:$16 sps:$4 sm:$0xff]  }
 0xf07   :  { %4325 = vmatprep.subr.bf16.mxu0 %v8141_v46  ;;  %4366 = vmatprep.subr.bf16.mxu1 %v8143_v3  ;;  %v4435_v46 = vsel %vm4434_vm12, 1, %v8914_v7 }
 0xf08   :  { %4355 = vmatprep.mubr.bf16.mxu0 %v8914_v7  ;;  %4396 = vmatprep.mubr.bf16.mxu1 %v8914_v7 }
 0xf09   :  { %4437 = vperm.xlu0 %4923, %v4435_v46   ;;  %v5612_v46 = vld [vmem:[#allocation6 + $0x20] ss:$16 sps:$4 sm:$0xff]  }
 0xf0a   :  { %4326 = vmatpush1.bf16.msra.mxu0 %v8147_v18  ;;  %4367 = vmatpush1.bf16.msra.mxu1 %v8149_v25  ;;  %v9370_v25 = vld [vmem:[#allocation56_spill] sm:$0xff] }
 0xf0b   :  { %4327 = vmatprep.subr.bf16.mxu0 %v8153_v11  ;;  %4368 = vmatprep.subr.bf16.mxu1 %v8155_v54 }
 0xf0e   :  { %4328 = vmatpush1.bf16.msra.mxu0 %v8161_v34  ;;  %4369 = vmatpush1.bf16.msra.mxu1 %v8163_v60 }
 0xf0f   :  { %4329 = vmatprep.subr.bf16.mxu0 %v8167_v17  ;;  %4370 = vmatprep.subr.bf16.mxu1 %v8169_v28  ;;  %v9371_v17 = vld [vmem:[#allocation95_spill] sm:$0xff] }
 0xf12   :  { %4330 = vmatpush1.bf16.msra.mxu0 %v8173_v23  ;;  %4371 = vmatpush1.bf16.msra.mxu1 %v8175_v14 }
 0xf13   :  { %4331 = vmatprep.subr.bf16.mxu0 %v8179_v59  ;;  %4372 = vmatprep.subr.bf16.mxu1 %v8181_v29 }
 0xf16   :  { %4332 = vmatpush1.bf16.msra.mxu0 %v8185_v13  ;;  %4373 = vmatpush1.bf16.msra.mxu1 %v8187_v22  ;;  %v9372_v22 = vld [vmem:[#allocation58_spill] sm:$0xff] }
 0xf17   :  { %4333 = vmatprep.subr.bf16.mxu0 %v8191_v57  ;;  %4374 = vmatprep.subr.bf16.mxu1 %v8193_v63 }
 0xf1a   :  { %4334 = vmatpush1.bf16.msra.mxu0 %v8197_v12  ;;  %4375 = vmatpush1.bf16.msra.mxu1 %v8199_v38  ;;  %v9373_v12 = vld [vmem:[#allocation96_spill] sm:$0xff] }
 0xf1b   :  { %4335 = vmatprep.subr.bf16.mxu0 %v8203_v55  ;;  %4376 = vmatprep.subr.bf16.mxu1 %v8205_v45 }
 0xf1e   :  { %4336 = vmatpush1.bf16.msra.mxu0 %v8209_v37  ;;  %4377 = vmatpush1.bf16.msra.mxu1 %v8211_v4 }
 0xf1f   :  { %4337 = vmatprep.subr.bf16.mxu0 %v8215_v33  ;;  %4378 = vmatprep.subr.bf16.mxu1 %v8217_v20 }
 0xf22   :  { %4338 = vmatpush1.bf16.msra.mxu0 %v8221_v15  ;;  %4379 = vmatpush1.bf16.msra.mxu1 %v8223_v36 }
 0xf23   :  { %4445 = vmatprep.subr.bf16.mxu0 %v5586_v42  ;;  %4486 = vmatprep.subr.bf16.mxu1 %v5587_v19  ;;  %v5610_v42 = vld [vmem:[#allocation6 + $0x24] ss:$16 sps:$4 sm:$0xff]   ;;  %v5611_v19 = vld [vmem:[#allocation6 + $0x2c] ss:$16 sps:$4 sm:$0xff]  }
 0xfc5   :  { %v4235_v3 = vpop.f32.mrf.mxu0  ;;  %v4276_v18 = vpop.f32.mrf.mxu1 }
 0xfc6   :  { %v4283_v11 = vadd.f32 %v4235_v3, %v9370_v25  ;;  %v4285_v57 = vadd.f32 %v4276_v18, %v9372_v22  ;;  %v5613_v3 = vld [vmem:[#allocation6 + $0x28] ss:$16 sps:$4 sm:$0xff]   ;;  %v5614_v18 = vld [vmem:[#allocation6 + $0x4] ss:$16 sps:$4 sm:$0xff]   ;;  %v5615_v25 = vld [vmem:[#allocation6 + $0xc] ss:$16 sps:$4 sm:$0xff]  }
 0xfc7   :  { %v4237_v54 = vpop.f32.mrf.mxu0  ;;  %v4278_v34 = vpop.f32.mrf.mxu1 }
 0xfc8   :  { %v4869_v60 = vmul.f32 -1.442695, %v4283_v11  ;;  %v4284_v28 = vadd.f32 %v4237_v54, %v9371_v17  ;;  %v4871_v63 = vmul.f32 -1.442695, %v4285_v57  ;;  %v4286_v38 = vadd.f32 %v4278_v34, %v9373_v12  ;;  %v5616_v11 = vld [vmem:[#allocation6] ss:$16 sps:$4 sm:$0xff]  }
 0xfc9   :  { %v4239_v23 = vpop.f32.mrf.mxu0  ;;  %v4280_v14 = vpop.f32.mrf.mxu1  ;;  %v5617_v54 = vld [vmem:[#allocation6 + $0x8] ss:$16 sps:$4 sm:$0xff]   ;;  %v4556_v34 = vsel %vm4555_vm14, 1, %v8914_v7 }
 0xfca   :  { %5345 = vpow2.f32 %v4869_v60  ;;  %v4870_v59 = vmul.f32 -1.442695, %v4284_v28  ;;  %4558 = vperm.xlu1 %4924, %v4556_v34   ;;  %v9374_v28 = vld [vmem:[#allocation93_spill] sm:$0xff] }
 0xfcb   :  { %v4240_v29 = vpop.f32.mrf.mxu0  ;;  %v4281_v13 = vpop.f32.mrf.mxu1  ;;  %v9381_v34 = vld [vmem:[#allocation33_spill] sm:$0xff] }
 0xfcc   :  { %5347 = vpow2.f32 %v4870_v59  ;;  %v9375_v13 = vld [vmem:[#allocation59_spill] sm:$0xff] }
 0xfcd   :  { %5349 = vpow2.f32 %v4871_v63 }
 0xfce   :  { %5351 = vtanh.f32 %v4286_v38 }
 0xfd7   :  { %v5346_v55 = vpop.eup %5345 }
 0xfd8   :  { %v4296_v45 = vadd.f32 1.0, %v5346_v55 }
 0xfd9   :  { %v5348_v37 = vpop.eup %5347 }
 0xfda   :  { %5353 = vrcp.f32 %v4296_v45  ;;  %v4297_v4 = vadd.f32 1.0, %v5348_v37  ;;  %v5350_v33 = vpop.eup %5349  ;;  %v9377_v37 = vld [vmem:[#allocation61_spill] sm:$0xff] }
 0xfdb   :  { %v5352_v20 = vpop.eup %5351  ;;  %v4298_v44 = vadd.f32 1.0, %v5350_v33 }
 0xfdc   :  { %5355 = vrcp.f32 %v4297_v4 }
 0xfdd   :  { %5357 = vrcp.f32 %v4298_v44 }
 0xfe7   :  { %v5354_v15 = vpop.eup %5353 }
 0xfe8   :  { %v4307_v36 = vmul.f32 %v5354_v15, %v5352_v20 }
 0xfe9   :  { %v5356_v9 = vpop.eup %5355 }
 0xfea   :  { %v4306_v31 = vmul.f32 %v5356_v9, %v8487_v21  ;;  %v5358_v47 = vpop.eup %5357  ;;  %v5603_v21 = vld [vmem:[#allocation6 + $0x6c] ss:$16 sps:$4 sm:$0xff]  }
 0xfec   :  { %v8532_v39 = vadd.f32 %v4307_v36, %v4306_v31 }
 0xfee   :  { %5359 = vtanh.f32 %v8532_v39 }
 0xffb   :  { %v5360_v50 = vpop.eup %5359 }
 0xffc   :  { %v4310_v27 = vmul.f32 %v5360_v50, %v5358_v47 }
 0xffe   :  { %v4311_v41 = vpack.c.bf16 %v4310_v27, %v4310_v27  ;;  %v8536_v32 = vsel %vm4317_vm13, %v4310_v27, %v8491_v49  ;;  %v5609_v49 = vld [vmem:[#allocation6 + $0x48] ss:$16 sps:$4 sm:$0xff]  }
0x1000   :  { %4356 = vmatmul.mubr.bf16.vlgmr.msra.gmra.mxu0 %v4311_v41  ;;  %4397 = vmatmul.mubr.bf16.vlgmr.msra.gmra.mxu1 %v4311_v41 }
0x1001   :  { %4446 = vmatpush1.bf16.msra.mxu0 %v5588_v56  ;;  %4487 = vmatpush1.bf16.msra.mxu1 %v5589_v10  ;;  %v4438_v56 = vpop.permute.xlu0 %4437 }
0x1002   :  { %4447 = vmatprep.subr.bf16.mxu0 %v5590_v1  ;;  %4488 = vmatprep.subr.bf16.mxu1 %v5591_v62  ;;  %vm4439_vm15 = vcmp.eq.s32.totalorder %v4438_v56, 1 }
0x1003   :  { %4477 = vmatprep.mubr.bf16.mxu0 %v8914_v7  ;;  %4518 = vmatprep.mubr.bf16.mxu1 %v8914_v7 }
0x1005   :  { %4448 = vmatpush1.bf16.msra.mxu0 %v5592_v61  ;;  %4489 = vmatpush1.bf16.msra.mxu1 %v5593_v6 }
0x1006   :  { %4449 = vmatprep.subr.bf16.mxu0 %v5594_v43  ;;  %4490 = vmatprep.subr.bf16.mxu1 %v5595_v26  ;;  %v5667_v43 = vmov 0.0   ;;  %v5130_v26 = vld [vmem:[%s8599_s9 + $0x30] sm:$0xff]  }
0x1009   :  { %4450 = vmatpush1.bf16.msra.mxu0 %v5596_v52  ;;  %4491 = vmatpush1.bf16.msra.mxu1 %v5597_v58  ;;  %v5132_v52 = vld [vmem:[%s8599_s9 + $0x20] sm:$0xff]   ;;  %v5133_v58 = vld [vmem:[%s8599_s9 + $0x18] sm:$0xff]  }
0x100a   :  { %4451 = vmatprep.subr.bf16.mxu0 %v5598_v53  ;;  %4492 = vmatprep.subr.bf16.mxu1 %v5599_v48  ;;  %v5134_v53 = vld [vmem:[%s8599_s9 + $0x10] sm:$0xff]   ;;  %v5135_v48 = vld [vmem:[%s8599_s9 + $0x8] sm:$0xff]  }
0x100d   :  { %4452 = vmatpush1.bf16.msra.mxu0 %v5600_v40  ;;  %4493 = vmatpush1.bf16.msra.mxu1 %v5601_v30  ;;  %v5136_v40 = vld [vmem:[%s8599_s9] sm:$0xff]  }
0x100e   :  { %4453 = vmatprep.subr.bf16.mxu0 %v5602_v16  ;;  %4494 = vmatprep.subr.bf16.mxu1 %v5603_v21  ;;  %v9378_v21 = vld [vmem:[#allocation60_spill] sm:$0xff] }
0x1011   :  { %4454 = vmatpush1.bf16.msra.mxu0 %v5604_v0  ;;  %4495 = vmatpush1.bf16.msra.mxu1 %v5605_v8 }
0x1012   :  { %4455 = vmatprep.subr.bf16.mxu0 %v5606_v5  ;;  %4496 = vmatprep.subr.bf16.mxu1 %v5607_v51 }
0x1015   :  { %4456 = vmatpush1.bf16.msra.mxu0 %v5608_v35  ;;  %4497 = vmatpush1.bf16.msra.mxu1 %v5609_v49  ;;  %v9379_v35 = vld [vmem:[#allocation32_spill] sm:$0xff] }
0x1016   :  { %4457 = vmatprep.subr.bf16.mxu0 %v5610_v42  ;;  %4498 = vmatprep.subr.bf16.mxu1 %v5611_v19 }
0x1019   :  { %4458 = vmatpush1.bf16.msra.mxu0 %v5612_v46  ;;  %4499 = vmatpush1.bf16.msra.mxu1 %v5613_v3 }
0x101a   :  { %4459 = vmatprep.subr.bf16.mxu0 %v5614_v18  ;;  %4500 = vmatprep.subr.bf16.mxu1 %v5615_v25  ;;  %v9380_v25 = vld [vmem:[#allocation62_spill] sm:$0xff] }
0x101d   :  { %4460 = vmatpush1.bf16.msra.mxu0 %v5616_v11  ;;  %4501 = vmatpush1.bf16.msra.mxu1 %v5617_v54 }
0x101e   :  { %4896 = vmatprep.subr.bf16.mxu0 %v5667_v43 }
0x10c0   :  { %v4357_v60 = vpop.f32.mrf.mxu0  ;;  %v4398_v17 = vpop.f32.mrf.mxu1 }
0x10c1   :  { %v4405_v23 = vadd.f32 %v4357_v60, %v9374_v28  ;;  %v4407_v45 = vadd.f32 %v4398_v17, %v9376_v24 }
0x10c2   :  { %v4359_v14 = vpop.f32.mrf.mxu0  ;;  %v4400_v59 = vpop.f32.mrf.mxu1 }
0x10c3   :  { %v4872_v29 = vmul.f32 -1.442695, %v4405_v23  ;;  %v4406_v22 = vadd.f32 %v4359_v14, %v9375_v13  ;;  %v4874_v7 = vmul.f32 -1.442695, %v4407_v45  ;;  %v4408_v4 = vadd.f32 %v4400_v59, %v9377_v37 }
0x10c4   :  { %v4361_v57 = vpop.f32.mrf.mxu0  ;;  %v4402_v63 = vpop.f32.mrf.mxu1 }
0x10c5   :  { %5361 = vpow2.f32 %v4872_v29  ;;  %v4873_v12 = vmul.f32 -1.442695, %v4406_v22 }
0x10c6   :  { %v4362_v38 = vpop.f32.mrf.mxu0  ;;  %v4403_v55 = vpop.f32.mrf.mxu1 }
0x10c7   :  { %5363 = vpow2.f32 %v4873_v12  ;;  %v9382_v55 = vlaneseq }
0x10c8   :  { %5365 = vpow2.f32 %v4874_v7  ;;  %v4559_v7 = vpop.permute.xlu1 %4558 }
0x10c9   :  { %5367 = vtanh.f32 %v4408_v4  ;;  %v4563_v24 = vand.u32 127, %v9382_v55  ;;  %vm4560_vm2 = vcmp.eq.s32.totalorder %v4559_v7, 1 }
0x10cb   :  { %vm4564_vm1 = vcmp.lt.s32.totalorder %v4563_v24, 64 }
0x10d2   :  { %v5362_v33 = vpop.eup %5361 }
0x10d3   :  { %v4418_v20 = vadd.f32 1.0, %v5362_v33 }
0x10d4   :  { %v5364_v15 = vpop.eup %5363 }
0x10d5   :  { %5369 = vrcp.f32 %v4418_v20  ;;  %v4419_v36 = vadd.f32 1.0, %v5364_v15  ;;  %v5366_v9 = vpop.eup %5365 }
0x10d6   :  { %v5368_v44 = vpop.eup %5367  ;;  %v4420_v50 = vadd.f32 1.0, %v5366_v9 }
0x10d7   :  { %5371 = vrcp.f32 %v4419_v36  ;;  %v4878_v36 = vld [vmem:[%s8600_s10] ss:$0 sm:$0xff] }
0x10d8   :  { %5373 = vrcp.f32 %v4420_v50 }
0x10e2   :  { %v5370_v31 = vpop.eup %5369 }
0x10e3   :  { %v4429_v2 = vmul.f32 %v5370_v31, %v5368_v44 }
0x10e4   :  { %v5372_v47 = vpop.eup %5371 }
0x10e5   :  { %v4428_v27 = vmul.f32 %v5372_v47, %v8532_v39  ;;  %v5374_v10 = vpop.eup %5373  ;;  %v5129_v39 = vld [vmem:[%s8599_s9 + $0x38] sm:$0xff]  }
0x10e7   :  { %v8547_v41 = vadd.f32 %v4429_v2, %v4428_v27 }
0x10e9   :  { %5375 = vtanh.f32 %v8547_v41 }
0x10f6   :  { %v5376_v1 = vpop.eup %5375 }
0x10f7   :  { %v4432_v62 = vmul.f32 %v5376_v1, %v5374_v10 }
0x10f9   :  { %v4433_v61 = vpack.c.bf16 %v4432_v62, %v4432_v62  ;;  %v8551_v6 = vsel %vm4439_vm15, %v4432_v62, %v8536_v32  ;;  %v5131_v32 = vld [vmem:[%s8599_s9 + $0x28] sm:$0xff]  }
0x10fb   :  { %4478 = vmatmul.mubr.bf16.vlgmr.msra.gmra.mxu0 %v4433_v61  ;;  %4519 = vmatmul.mubr.bf16.vlgmr.msra.gmra.mxu1 %v4433_v61 }
0x10fc   :  { %4897 = vmatpush3.bf16.msra.mxu0 %v5129_v39  ;;  %4912 = vmatprep.mubr.msk.bf16.mxu0 %vm5668_vm0, %v5667_v43 }
0x10fd   :  { %4898 = vmatprep.subr.bf16.mxu0 %v5667_v43 }
0x1100   :  { %4899 = vmatpush3.bf16.msra.mxu0 %v5130_v26 }
0x1101   :  { %4900 = vmatprep.subr.bf16.mxu0 %v5667_v43 }
0x1104   :  { %4901 = vmatpush3.bf16.msra.mxu0 %v5131_v32 }
0x1105   :  { %4902 = vmatprep.subr.bf16.mxu0 %v5667_v43 }
0x1108   :  { %4903 = vmatpush3.bf16.msra.mxu0 %v5132_v52 }
0x1109   :  { %4904 = vmatprep.subr.bf16.mxu0 %v5667_v43 }
0x110c   :  { %4905 = vmatpush3.bf16.msra.mxu0 %v5133_v58 }
0x110d   :  { %4906 = vmatprep.subr.bf16.mxu0 %v5667_v43 }
0x1110   :  { %4907 = vmatpush3.bf16.msra.mxu0 %v5134_v53 }
0x1111   :  { %4908 = vmatprep.subr.bf16.mxu0 %v5667_v43 }
0x1114   :  { %4909 = vmatpush3.bf16.msra.mxu0 %v5135_v48 }
0x1115   :  { %4910 = vmatprep.subr.bf16.mxu0 %v5667_v43 }
0x1118   :  { %4911 = vmatpush3.bf16.msra.mxu0 %v5136_v40 }
0x11bb   :  { %v4479_v30 = vpop.f32.mrf.mxu0  ;;  %v4520_v16 = vpop.f32.mrf.mxu1 }
0x11bc   :  { %v4527_v0 = vadd.f32 %v4479_v30, %v9378_v21  ;;  %v4529_v11 = vadd.f32 %v4520_v16, %v9380_v25 }
0x11bd   :  { %v4481_v8 = vpop.f32.mrf.mxu0  ;;  %v4522_v5 = vpop.f32.mrf.mxu1 }
0x11be   :  { %v4875_v51 = vmul.f32 -1.442695, %v4527_v0  ;;  %v4528_v49 = vadd.f32 %v4481_v8, %v9379_v35  ;;  %v4877_v54 = vmul.f32 -1.442695, %v4529_v11  ;;  %v4530_v60 = vadd.f32 %v4522_v5, %v9381_v34 }
0x11bf   :  { %v4483_v42 = vpop.f32.mrf.mxu0  ;;  %v4524_v19 = vpop.f32.mrf.mxu1 }
0x11c0   :  { %5377 = vpow2.f32 %v4875_v51  ;;  %v4876_v46 = vmul.f32 -1.442695, %v4528_v49 }
0x11c1   :  { %v4484_v3 = vpop.f32.mrf.mxu0  ;;  %v4525_v18 = vpop.f32.mrf.mxu1 }
0x11c2   :  { %5379 = vpow2.f32 %v4876_v46 }
0x11c3   :  { %5381 = vpow2.f32 %v4877_v54 }
0x11c4   :  { %5383 = vtanh.f32 %v4530_v60 }
0x11cd   :  { %v5378_v17 = vpop.eup %5377 }
0x11ce   :  { %v4540_v28 = vadd.f32 1.0, %v5378_v17 }
0x11cf   :  { %v5380_v23 = vpop.eup %5379 }
0x11d0   :  { %5385 = vrcp.f32 %v4540_v28  ;;  %v4541_v14 = vadd.f32 1.0, %v5380_v23  ;;  %v5382_v59 = vpop.eup %5381 }
0x11d1   :  { %v5384_v29 = vpop.eup %5383  ;;  %v4542_v63 = vadd.f32 1.0, %v5382_v59 }
0x11d2   :  { %5387 = vrcp.f32 %v4541_v14 }
0x11d3   :  { %5389 = vrcp.f32 %v4542_v63 }
0x11dd   :  { %v5386_v13 = vpop.eup %5385 }
0x11de   :  { %v4551_v22 = vmul.f32 %v5386_v13, %v5384_v29 }
0x11df   :  { %v5388_v57 = vpop.eup %5387 }
0x11e0   :  { %v4550_v12 = vmul.f32 %v5388_v57, %v8547_v41  ;;  %v5390_v45 = vpop.eup %5389 }
0x11e2   :  { %v4552_v38 = vadd.f32 %v4551_v22, %v4550_v12 }
0x11e4   :  { %5391 = vtanh.f32 %v4552_v38 }
0x11f1   :  { %v5392_v37 = vpop.eup %5391 }
0x11f2   :  { %v4554_v4 = vmul.f32 %v5392_v37, %v5390_v45 }
0x11f4   :  { %v4561_v33 = vsel %vm4560_vm2, %v4554_v4, %v8551_v6 }
0x11f5   :  { %v4565_v20 = vsel %vm4564_vm1, %v4561_v33, %v4554_v4 }
0x11f6   :  { %v4566_v15 = vpack.c.bf16 %v4565_v20, %v4565_v20 }
0x11f8   :  { %4913 = vmatmul.mubr.bf16.vlgmr.msra.gmra.mxu0 %v4566_v15 }
0x12b8   :  { %v4672_v9 = vpop.f32.mrf.mxu0 }
0x12b9   :  { %v4673_v44 = vadd.f32 %v4878_v36, %v4672_v9 }
0x12ba   :  { %v4914_v31 = vpop.f32.mrf.mxu0 }
0x12bb   :  { %4679 = vst.msk [vmem:[%s8601_s11] sm:$0xff] %vm4678_vm3, %v4673_v44 }
0x12bc   :  { %v4675_v2 = vpop.f32.mrf.mxu0 }
0x12be   :  { %v4915_v47 = vpop.f32.mrf.mxu0 }
0x12bf   :  { %4684 = vsyncpa [#allocation5], 1 }
0x12c0   :  { %4685 = vsyncpa [#allocation7], 1 }

</bundles_post_ra>
